<compile_context>
chip_gen: v5e
topology: v5e:2x2
jax: 0.10.0
libtpu: 0.0.40
codegen_flags: <defaults>
</compile_context>

<pallas_src>
import jax
import jax.numpy as jnp
from jax.experimental import pallas as pl
from jax.experimental.pallas import tpu as pltpu


# ------------------------------ fused kernel --------------------------------
# In-kernel activation layout (rows are (spatial_row, batch)-major):
#   z1_ref: [12*TB, 128] bf16, z1[py1*TB + b, px1*10 + c1]  (lanes 120..127 = 0)
#   z2_ref: [ 4*TB, 128] bf16, z2[py2*TB + b, px2*20 + c2]  (lanes  80..127 = 0)

def _net_fused_kernel(x_ref, w1e_ref, w1o_ref, b1_ref,
                      w2e_ref, w2o_ref, b2_ref,
                      wf1_ref, bf1_ref, wf2_ref, bf2_ref,
                      o_ref, z1_ref, z2_ref):
    # x_ref  : [28, TB, 28] bf16   rows (y_in, b), lanes x_in
    # w1e/w1o: [5, 28, 128] bf16   banded conv1 weights, col = px1*10 + c1
    # b1_ref : [1, 128]     f32    conv1 bias tiled over px1 (pad lanes zero)
    # w2e/w2o: [5, 128, 128] bf16  banded conv2 weights, col = px2*20 + c2
    # b2_ref : [1, 128]     f32
    # wf1_ref: [4, 128, 50] bf16   fc1 weights pre-permuted to kernel layout
    # bf1_ref: [1, 50] f32 ; wf2_ref: [50, 10] bf16 ; bf2_ref: [1, 10] f32
    # o_ref  : [TB, 10]     f32    log-probabilities
    TB = x_ref.shape[1]
    f32 = jnp.float32

    # ---- conv1 (valid 5x5) + 2x2 maxpool + bias + relu ----------------------
    # Layout-preserving reshape (no copy loop): row index = y_in*TB + b.
    xs = x_ref[...].reshape(28 * TB, 28)
    acc_e = acc_o = None
    for dy in range(5):
        slab = xs[dy * TB:(dy + 24) * TB, :]                 # rows (y_out, b)
        te = jnp.dot(slab, w1e_ref[dy], preferred_element_type=f32)
        to = jnp.dot(slab, w1o_ref[dy], preferred_element_type=f32)
        acc_e = te if acc_e is None else acc_e + te
        acc_o = to if acc_o is None else acc_o + to
    # x-pool is a free VPU max of the even/odd accumulators; then bias.
    xp = jnp.maximum(acc_e, acc_o) + b1_ref[...]             # [24*TB, 128] f32
    # y-pool: rows 2k*TB.. and (2k+1)*TB.. are the two halves; relu; store bf16.
    for k in range(12):
        top = xp[(2 * k) * TB:(2 * k + 1) * TB, :]
        bot = xp[(2 * k + 1) * TB:(2 * k + 2) * TB, :]
        z1_ref[k * TB:(k + 1) * TB, :] = jnp.maximum(
            jnp.maximum(top, bot), 0.0).astype(z1_ref.dtype)

    # ---- conv2 (valid 5x5 over 10 ch) + 2x2 maxpool + bias + relu ----------
    acc_e = acc_o = None
    for dy in range(5):
        slab = z1_ref[dy * TB:(dy + 8) * TB, :]              # [8*TB, 128] bf16
        te = jnp.dot(slab, w2e_ref[dy], preferred_element_type=f32)
        to = jnp.dot(slab, w2o_ref[dy], preferred_element_type=f32)
        acc_e = te if acc_e is None else acc_e + te
        acc_o = to if acc_o is None else acc_o + to
    xp2 = jnp.maximum(acc_e, acc_o) + b2_ref[...]            # [8*TB, 128] f32
    for k in range(4):
        top = xp2[(2 * k) * TB:(2 * k + 1) * TB, :]
        bot = xp2[(2 * k + 1) * TB:(2 * k + 2) * TB, :]
        z2_ref[k * TB:(k + 1) * TB, :] = jnp.maximum(
            jnp.maximum(top, bot), 0.0).astype(z2_ref.dtype)

    # ---- fc1 + relu + fc2 + log_softmax ------------------------------------
    h = None
    for p in range(4):
        t = jnp.dot(z2_ref[p * TB:(p + 1) * TB, :], wf1_ref[p],
                    preferred_element_type=f32)
        h = t if h is None else h + t                        # [TB, 50] f32
    h = jnp.maximum(h + bf1_ref[...], 0.0)
    logits = jnp.dot(h.astype(jnp.bfloat16), wf2_ref[...],
                     preferred_element_type=f32) + bf2_ref[...]
    m = jnp.max(logits, axis=1, keepdims=True)
    s = logits - m
    lse = jnp.log(jnp.sum(jnp.exp(s), axis=1, keepdims=True))
    o_ref[...] = s - lse


# --------------------------- parameter preparation ---------------------------

def prepare_params(p):
    """One-time conversion of PyTorch-format weights into kernel-ready form."""
    f32, bf16 = jnp.float32, jnp.bfloat16
    w1 = p["conv1_w"].astype(f32)               # [10, 1, 5, 5]  (cout, cin, ky, kx)
    w2 = p["conv2_w"].astype(f32)               # [20, 10, 5, 5]

    # Banded conv1 weights split into even-/odd-x output columns:
    #   w1e[dy, x_in, px1*10 + c] = w1[c, 0, dy, x_in - 2*px1]
    #   w1o[dy, x_in, px1*10 + c] = w1[c, 0, dy, x_in - (2*px1+1)]
    w1e = jnp.zeros((5, 28, 12, 10), f32)
    w1o = jnp.zeros((5, 28, 12, 10), f32)
    xo1 = jnp.arange(12)
    for dy in range(5):
        for dx in range(5):
            v = jnp.broadcast_to(w1[:, 0, dy, dx], (12, 10))
            w1e = w1e.at[dy, 2 * xo1 + dx, xo1, :].set(v)
            w1o = w1o.at[dy, 2 * xo1 + 1 + dx, xo1, :].set(v)
    w1e = jnp.pad(w1e.reshape(5, 28, 120), ((0, 0), (0, 0), (0, 8))).astype(bf16)
    w1o = jnp.pad(w1o.reshape(5, 28, 120), ((0, 0), (0, 0), (0, 8))).astype(bf16)

    # Banded conv2 weights (row = X*10 + c1, X in [0,12)), even/odd x2 split:
    #   w2e[dy, X*10 + c1, px2*20 + c2] = w2[c2, c1, dy, X - 2*px2]
    w2e = jnp.zeros((5, 12, 10, 4, 20), f32)
    w2o = jnp.zeros((5, 12, 10, 4, 20), f32)
    xo2 = jnp.arange(4)
    for dy in range(5):
        for dx in range(5):
            v = jnp.broadcast_to(w2[:, :, dy, dx].T, (4, 10, 20))
            w2e = w2e.at[dy, 2 * xo2 + dx, :, xo2, :].set(v)
            w2o = w2o.at[dy, 2 * xo2 + 1 + dx, :, xo2, :].set(v)
    w2e = jnp.pad(w2e.reshape(5, 120, 80), ((0, 0), (0, 8), (0, 48))).astype(bf16)
    w2o = jnp.pad(w2o.reshape(5, 120, 80), ((0, 0), (0, 8), (0, 48))).astype(bf16)

    b1 = jnp.pad(jnp.tile(p["conv1_b"].astype(f32), 12), (0, 8)).reshape(1, 128)
    b2 = jnp.pad(jnp.tile(p["conv2_b"].astype(f32), 4), (0, 48)).reshape(1, 128)

    # fc1: PyTorch flat index c2*16 + py2*4 + px2 -> kernel index (py2, px2*20+c2),
    # contraction rows padded 80 -> 128 (padded z2 lanes are zero anyway).
    fc1 = p["fc1_w"].astype(f32).reshape(50, 20, 4, 4)       # [j, c2, py2, px2]
    wf1 = jnp.transpose(fc1, (2, 3, 1, 0)).reshape(4, 80, 50)
    wf1 = jnp.pad(wf1, ((0, 0), (0, 48), (0, 0))).astype(bf16)   # [4, 128, 50]

    return {
        "w1e": w1e, "w1o": w1o, "b1": b1,
        "w2e": w2e, "w2o": w2o, "b2": b2,
        "wf1": wf1,
        "bf1": p["fc1_b"].astype(f32).reshape(1, 50),
        "wf2": p["fc2_w"].astype(f32).T.astype(bf16),        # [50, 10]
        "bf2": p["fc2_b"].astype(f32).reshape(1, 10),
    }


# --------------------------------- forward -----------------------------------

def _round_up(x, m):
    return ((x + m - 1) // m) * m


def _choose_tb(batch):
    """Batch tile: multiple of 16, <=128, and >=2 grid steps when batch > 16
    so v7x's two TensorCores both get work (v5e/v6e: single TC, unaffected)."""
    b16 = _round_up(max(int(batch), 1), 16)
    if b16 <= 16:
        return 16
    return min(_round_up(b16 // 2, 16), 128)


_WEIGHT_KEYS = ("w1e", "w1o", "b1", "w2e", "w2o", "b2", "wf1", "bf1", "wf2", "bf2")


def net_forward(prepped, x_nchw):
    """x_nchw: [B, 1, 28, 28] float32 -> [B, 10] log-probabilities."""
    B = x_nchw.shape[0]
    TB = _choose_tb(B)
    B_pad = _round_up(B, TB)

    # (y, batch, x) layout so banded conv slabs are contiguous row ranges.
    # TODO(synk): produce this layout upstream to avoid the standalone transpose.
    x = jnp.transpose(x_nchw[:, 0, :, :].astype(jnp.bfloat16), (1, 0, 2))
    if B_pad != B:
        x = jnp.pad(x, ((0, 0), (0, B_pad - B), (0, 0)))

    grid = (B_pad // TB,)
    cparams = pltpu.CompilerParams(
        dimension_semantics=("parallel",),
        vmem_limit_bytes=32 * 1024 * 1024,
    )

    def full(a):
        nd = a.ndim
        return pl.BlockSpec(a.shape, lambda i, nd=nd: (0,) * nd)

    weights = [prepped[k] for k in _WEIGHT_KEYS]

    out = pl.pallas_call(
        _net_fused_kernel,
        out_shape=jax.ShapeDtypeStruct((B_pad, 10), jnp.float32),
        grid=grid,
        in_specs=[pl.BlockSpec((28, TB, 28), lambda i: (0, i, 0))]
                 + [full(w) for w in weights],
        out_specs=pl.BlockSpec((TB, 10), lambda i: (i, 0)),
        scratch_shapes=[pltpu.VMEM((12 * TB, 128), jnp.bfloat16),
                        pltpu.VMEM((4 * TB, 128), jnp.bfloat16)],
        compiler_params=cparams,
        cost_estimate=pl.CostEstimate(
            flops=int(B_pad) * 4_400_000,
            transcendentals=int(B_pad) * 11,
            bytes_accessed=int(B_pad) * 1_700 + 500_000),
    )(x, *weights)

    return out[:B]


# ------------------------------ pure-JAX reference ----------------------------

def net_reference(p, x):
    hi = jax.lax.Precision.HIGHEST
    dn = ("NCHW", "OIHW", "NCHW")
    y = jax.lax.conv_general_dilated(x.astype(jnp.float32), p["conv1_w"],
                                     (1, 1), "VALID", dimension_numbers=dn,
                                     precision=hi)
    y = y + p["conv1_b"][None, :, None, None]
    y = jax.lax.reduce_window(y, -jnp.inf, jax.lax.max,
                              (1, 1, 2, 2), (1, 1, 2, 2), "VALID")
    y = jax.nn.relu(y)
    y = jax.lax.conv_general_dilated(y, p["conv2_w"], (1, 1), "VALID",
                                     dimension_numbers=dn, precision=hi)
    y = y + p["conv2_b"][None, :, None, None]
    y = jax.lax.reduce_window(y, -jnp.inf, jax.lax.max,
                              (1, 1, 2, 2), (1, 1, 2, 2), "VALID")
    y = jax.nn.relu(y)
    y = y.reshape(y.shape[0], -1)                             # [B, 320]
    y = jax.nn.relu(jnp.dot(y, p["fc1_w"].T, precision=hi) + p["fc1_b"])
    y = jnp.dot(y, p["fc2_w"].T, precision=hi) + p["fc2_b"]
    return jax.nn.log_softmax(y, axis=1)


# ---------------------------------- params ------------------------------------

def init_params(key):
    ks = jax.random.split(key, 8)
    return {
        # PyTorch shapes: conv weight [Cout, Cin, kh, kw], linear weight [out, in]
        "conv1_w": 0.1 * jax.random.normal(ks[0], (10, 1, 5, 5), jnp.float32),
        "conv1_b": 0.1 * jax.random.normal(ks[1], (10,), jnp.float32),
        "conv2_w": 0.1 * jax.random.normal(ks[2], (20, 10, 5, 5), jnp.float32),
        "conv2_b": 0.1 * jax.random.normal(ks[3], (20,), jnp.float32),
        "fc1_w":   0.1 * jax.random.normal(ks[4], (50, 320), jnp.float32),
        "fc1_b":   0.1 * jax.random.normal(ks[5], (50,), jnp.float32),
        "fc2_w":   0.1 * jax.random.normal(ks[6], (10, 50), jnp.float32),
        "fc2_b":   0.1 * jax.random.normal(ks[7], (10,), jnp.float32),
    }


if __name__ == "__main__":
    key = jax.random.PRNGKey(0)
    pkey, xkey = jax.random.split(key)
    params = init_params(pkey)
    prepped = prepare_params(params)                 # one-time weight prep

    # MNIST-shaped input (forward implies 28x28 single channel -> flatten == 320)
    x = jax.random.normal(xkey, (2, 1, 28, 28), jnp.float32)

    fwd = jax.jit(net_forward)
    out = jax.block_until_ready(fwd(prepped, x))

    assert out.shape == (2, 10), out.shape
    assert bool(jnp.all(jnp.isfinite(out)))
    # log_softmax rows must sum to ~1 in prob space
    assert bool(jnp.allclose(jnp.sum(jnp.exp(out), axis=1), 1.0, atol=1e-4))
    # agree with a pure-JAX f32 reference (bf16 MXU operands -> loose tolerance)
    ref = net_reference(params, x)
    err = float(jnp.max(jnp.abs(out - ref)))
    assert err < 0.2, f"max |kernel - reference| too large: {err}"

    print("KERNEL_OK")
</pallas_src>

<mosaic_0001>
module attributes {stable_mosaic.version = 11 : i64} {
  func.func @_net_fused_kernel(%arg0: i32, %arg1: memref<28x16x28xbf16, #tpu.memory_space<vmem>>, %arg2: memref<5x28x128xbf16, #tpu.memory_space<vmem>>, %arg3: memref<5x28x128xbf16, #tpu.memory_space<vmem>>, %arg4: memref<1x128xf32, #tpu.memory_space<vmem>>, %arg5: memref<5x128x128xbf16, #tpu.memory_space<vmem>>, %arg6: memref<5x128x128xbf16, #tpu.memory_space<vmem>>, %arg7: memref<1x128xf32, #tpu.memory_space<vmem>>, %arg8: memref<4x128x50xbf16, #tpu.memory_space<vmem>>, %arg9: memref<1x50xf32, #tpu.memory_space<vmem>>, %arg10: memref<50x10xbf16, #tpu.memory_space<vmem>>, %arg11: memref<1x10xf32, #tpu.memory_space<vmem>>, %arg12: memref<16x10xf32, #tpu.memory_space<vmem>>, %arg13: memref<192x128xbf16, #tpu.memory_space<vmem>>, %arg14: memref<64x128xbf16, #tpu.memory_space<vmem>>) attributes {dimension_semantics = [#tpu.dimension_semantics<parallel>], iteration_bounds = array<i64: 1>, scalar_prefetch = 0 : i64, scratch_operands = 2 : i64, tpu.core_type = #tpu.core_type<tc>, window_params = [{transform_indices = @transform_0, window_bounds = array<i64: 28, 16, 28>}, {pipeline_mode = #tpu.pipeline_mode<synchronous>, transform_indices = @transform_1, window_bounds = array<i64: 5, 28, 128>}, {pipeline_mode = #tpu.pipeline_mode<synchronous>, transform_indices = @transform_2, window_bounds = array<i64: 5, 28, 128>}, {pipeline_mode = #tpu.pipeline_mode<synchronous>, transform_indices = @transform_3, window_bounds = array<i64: 1, 128>}, {pipeline_mode = #tpu.pipeline_mode<synchronous>, transform_indices = @transform_4, window_bounds = array<i64: 5, 128, 128>}, {pipeline_mode = #tpu.pipeline_mode<synchronous>, transform_indices = @transform_5, window_bounds = array<i64: 5, 128, 128>}, {pipeline_mode = #tpu.pipeline_mode<synchronous>, transform_indices = @transform_6, window_bounds = array<i64: 1, 128>}, {pipeline_mode = #tpu.pipeline_mode<synchronous>, transform_indices = @transform_7, window_bounds = array<i64: 4, 128, 50>}, {pipeline_mode = #tpu.pipeline_mode<synchronous>, transform_indices = @transform_8, window_bounds = array<i64: 1, 50>}, {pipeline_mode = #tpu.pipeline_mode<synchronous>, transform_indices = @transform_9, window_bounds = array<i64: 50, 10>}, {pipeline_mode = #tpu.pipeline_mode<synchronous>, transform_indices = @transform_10, window_bounds = array<i64: 1, 10>}, {transform_indices = @transform_11, window_bounds = array<i64: 16, 10>}]} {
    %c0 = arith.constant 0 : index
    %c0_0 = arith.constant 0 : index
    %c0_1 = arith.constant 0 : index
    %0 = vector.load %arg1[%c0, %c0_0, %c0_1] : memref<28x16x28xbf16, #tpu.memory_space<vmem>>, vector<28x16x28xbf16>
    %1 = vector.shape_cast %0 : vector<28x16x28xbf16> to vector<448x28xbf16>
    %2 = vector.extract_strided_slice %1 {offsets = [0, 0], sizes = [384, 28], strides = [1, 1]} : vector<448x28xbf16> to vector<384x28xbf16>
    %c0_2 = arith.constant 0 : index
    %c0_3 = arith.constant 0 : index
    %c0_4 = arith.constant 0 : index
    %3 = vector.load %arg2[%c0_2, %c0_3, %c0_4] : memref<5x28x128xbf16, #tpu.memory_space<vmem>>, vector<1x28x128xbf16>
    %4 = vector.shape_cast %3 : vector<1x28x128xbf16> to vector<28x128xbf16>
    %cst = arith.constant dense<0.000000e+00> : vector<384x128xf32>
    %5 = tpu.matmul %2, %4, %cst {dimension_numbers = #tpu.dot_dimension_numbers<[1], [0], [0], [1], [0, 0, 1, 1], [], []>} : vector<384x28xbf16>, vector<28x128xbf16>, vector<384x128xf32> -> vector<384x128xf32>
    %c0_5 = arith.constant 0 : index
    %c0_6 = arith.constant 0 : index
    %c0_7 = arith.constant 0 : index
    %6 = vector.load %arg3[%c0_5, %c0_6, %c0_7] : memref<5x28x128xbf16, #tpu.memory_space<vmem>>, vector<1x28x128xbf16>
    %7 = vector.shape_cast %6 : vector<1x28x128xbf16> to vector<28x128xbf16>
    %cst_8 = arith.constant dense<0.000000e+00> : vector<384x128xf32>
    %8 = tpu.matmul %2, %7, %cst_8 {dimension_numbers = #tpu.dot_dimension_numbers<[1], [0], [0], [1], [0, 0, 1, 1], [], []>} : vector<384x28xbf16>, vector<28x128xbf16>, vector<384x128xf32> -> vector<384x128xf32>
    %9 = vector.extract_strided_slice %1 {offsets = [16, 0], sizes = [384, 28], strides = [1, 1]} : vector<448x28xbf16> to vector<384x28xbf16>
    %c1 = arith.constant 1 : index
    %c0_9 = arith.constant 0 : index
    %c0_10 = arith.constant 0 : index
    %10 = vector.load %arg2[%c1, %c0_9, %c0_10] : memref<5x28x128xbf16, #tpu.memory_space<vmem>>, vector<1x28x128xbf16>
    %11 = vector.shape_cast %10 : vector<1x28x128xbf16> to vector<28x128xbf16>
    %cst_11 = arith.constant dense<0.000000e+00> : vector<384x128xf32>
    %12 = tpu.matmul %9, %11, %cst_11 {dimension_numbers = #tpu.dot_dimension_numbers<[1], [0], [0], [1], [0, 0, 1, 1], [], []>} : vector<384x28xbf16>, vector<28x128xbf16>, vector<384x128xf32> -> vector<384x128xf32>
    %c1_12 = arith.constant 1 : index
    %c0_13 = arith.constant 0 : index
    %c0_14 = arith.constant 0 : index
    %13 = vector.load %arg3[%c1_12, %c0_13, %c0_14] : memref<5x28x128xbf16, #tpu.memory_space<vmem>>, vector<1x28x128xbf16>
    %14 = vector.shape_cast %13 : vector<1x28x128xbf16> to vector<28x128xbf16>
    %cst_15 = arith.constant dense<0.000000e+00> : vector<384x128xf32>
    %15 = tpu.matmul %9, %14, %cst_15 {dimension_numbers = #tpu.dot_dimension_numbers<[1], [0], [0], [1], [0, 0, 1, 1], [], []>} : vector<384x28xbf16>, vector<28x128xbf16>, vector<384x128xf32> -> vector<384x128xf32>
    %16 = arith.addf %5, %12 : vector<384x128xf32>
    %17 = arith.addf %8, %15 : vector<384x128xf32>
    %18 = vector.extract_strided_slice %1 {offsets = [32, 0], sizes = [384, 28], strides = [1, 1]} : vector<448x28xbf16> to vector<384x28xbf16>
    %c2 = arith.constant 2 : index
    %c0_16 = arith.constant 0 : index
    %c0_17 = arith.constant 0 : index
    %19 = vector.load %arg2[%c2, %c0_16, %c0_17] : memref<5x28x128xbf16, #tpu.memory_space<vmem>>, vector<1x28x128xbf16>
    %20 = vector.shape_cast %19 : vector<1x28x128xbf16> to vector<28x128xbf16>
    %cst_18 = arith.constant dense<0.000000e+00> : vector<384x128xf32>
    %21 = tpu.matmul %18, %20, %cst_18 {dimension_numbers = #tpu.dot_dimension_numbers<[1], [0], [0], [1], [0, 0, 1, 1], [], []>} : vector<384x28xbf16>, vector<28x128xbf16>, vector<384x128xf32> -> vector<384x128xf32>
    %c2_19 = arith.constant 2 : index
    %c0_20 = arith.constant 0 : index
    %c0_21 = arith.constant 0 : index
    %22 = vector.load %arg3[%c2_19, %c0_20, %c0_21] : memref<5x28x128xbf16, #tpu.memory_space<vmem>>, vector<1x28x128xbf16>
    %23 = vector.shape_cast %22 : vector<1x28x128xbf16> to vector<28x128xbf16>
    %cst_22 = arith.constant dense<0.000000e+00> : vector<384x128xf32>
    %24 = tpu.matmul %18, %23, %cst_22 {dimension_numbers = #tpu.dot_dimension_numbers<[1], [0], [0], [1], [0, 0, 1, 1], [], []>} : vector<384x28xbf16>, vector<28x128xbf16>, vector<384x128xf32> -> vector<384x128xf32>
    %25 = arith.addf %16, %21 : vector<384x128xf32>
    %26 = arith.addf %17, %24 : vector<384x128xf32>
    %27 = vector.extract_strided_slice %1 {offsets = [48, 0], sizes = [384, 28], strides = [1, 1]} : vector<448x28xbf16> to vector<384x28xbf16>
    %c3 = arith.constant 3 : index
    %c0_23 = arith.constant 0 : index
    %c0_24 = arith.constant 0 : index
    %28 = vector.load %arg2[%c3, %c0_23, %c0_24] : memref<5x28x128xbf16, #tpu.memory_space<vmem>>, vector<1x28x128xbf16>
    %29 = vector.shape_cast %28 : vector<1x28x128xbf16> to vector<28x128xbf16>
    %cst_25 = arith.constant dense<0.000000e+00> : vector<384x128xf32>
    %30 = tpu.matmul %27, %29, %cst_25 {dimension_numbers = #tpu.dot_dimension_numbers<[1], [0], [0], [1], [0, 0, 1, 1], [], []>} : vector<384x28xbf16>, vector<28x128xbf16>, vector<384x128xf32> -> vector<384x128xf32>
    %c3_26 = arith.constant 3 : index
    %c0_27 = arith.constant 0 : index
    %c0_28 = arith.constant 0 : index
    %31 = vector.load %arg3[%c3_26, %c0_27, %c0_28] : memref<5x28x128xbf16, #tpu.memory_space<vmem>>, vector<1x28x128xbf16>
    %32 = vector.shape_cast %31 : vector<1x28x128xbf16> to vector<28x128xbf16>
    %cst_29 = arith.constant dense<0.000000e+00> : vector<384x128xf32>
    %33 = tpu.matmul %27, %32, %cst_29 {dimension_numbers = #tpu.dot_dimension_numbers<[1], [0], [0], [1], [0, 0, 1, 1], [], []>} : vector<384x28xbf16>, vector<28x128xbf16>, vector<384x128xf32> -> vector<384x128xf32>
    %34 = arith.addf %25, %30 : vector<384x128xf32>
    %35 = arith.addf %26, %33 : vector<384x128xf32>
    %36 = vector.extract_strided_slice %1 {offsets = [64, 0], sizes = [384, 28], strides = [1, 1]} : vector<448x28xbf16> to vector<384x28xbf16>
    %c4 = arith.constant 4 : index
    %c0_30 = arith.constant 0 : index
    %c0_31 = arith.constant 0 : index
    %37 = vector.load %arg2[%c4, %c0_30, %c0_31] : memref<5x28x128xbf16, #tpu.memory_space<vmem>>, vector<1x28x128xbf16>
    %38 = vector.shape_cast %37 : vector<1x28x128xbf16> to vector<28x128xbf16>
    %cst_32 = arith.constant dense<0.000000e+00> : vector<384x128xf32>
    %39 = tpu.matmul %36, %38, %cst_32 {dimension_numbers = #tpu.dot_dimension_numbers<[1], [0], [0], [1], [0, 0, 1, 1], [], []>} : vector<384x28xbf16>, vector<28x128xbf16>, vector<384x128xf32> -> vector<384x128xf32>
    %c4_33 = arith.constant 4 : index
    %c0_34 = arith.constant 0 : index
    %c0_35 = arith.constant 0 : index
    %40 = vector.load %arg3[%c4_33, %c0_34, %c0_35] : memref<5x28x128xbf16, #tpu.memory_space<vmem>>, vector<1x28x128xbf16>
    %41 = vector.shape_cast %40 : vector<1x28x128xbf16> to vector<28x128xbf16>
    %cst_36 = arith.constant dense<0.000000e+00> : vector<384x128xf32>
    %42 = tpu.matmul %36, %41, %cst_36 {dimension_numbers = #tpu.dot_dimension_numbers<[1], [0], [0], [1], [0, 0, 1, 1], [], []>} : vector<384x28xbf16>, vector<28x128xbf16>, vector<384x128xf32> -> vector<384x128xf32>
    %43 = arith.addf %34, %39 : vector<384x128xf32>
    %44 = arith.addf %35, %42 : vector<384x128xf32>
    %45 = arith.maximumf %43, %44 : vector<384x128xf32>
    %c0_37 = arith.constant 0 : index
    %c0_38 = arith.constant 0 : index
    %46 = vector.load %arg4[%c0_37, %c0_38] : memref<1x128xf32, #tpu.memory_space<vmem>>, vector<1x128xf32>
    %47 = vector.broadcast %46 : vector<1x128xf32> to vector<384x128xf32>
    %48 = arith.addf %45, %47 : vector<384x128xf32>
    %49 = vector.extract_strided_slice %48 {offsets = [0, 0], sizes = [16, 128], strides = [1, 1]} : vector<384x128xf32> to vector<16x128xf32>
    %50 = vector.extract_strided_slice %48 {offsets = [16, 0], sizes = [16, 128], strides = [1, 1]} : vector<384x128xf32> to vector<16x128xf32>
    %51 = arith.maximumf %49, %50 : vector<16x128xf32>
    %cst_39 = arith.constant 0.000000e+00 : f32
    %52 = vector.broadcast %cst_39 : f32 to vector<16x128xf32>
    %53 = arith.maximumf %51, %52 : vector<16x128xf32>
    %54 = arith.truncf %53 : vector<16x128xf32> to vector<16x128xbf16>
    %c0_40 = arith.constant 0 : index
    %c0_41 = arith.constant 0 : index
    %55 = vector.load %arg13[%c0_40, %c0_41] : memref<192x128xbf16, #tpu.memory_space<vmem>>, vector<16x128xbf16>
    tpu.vector_store %arg13[%c0_40, %c0_41], %54 {strides = array<i32>} : memref<192x128xbf16, #tpu.memory_space<vmem>>, vector<16x128xbf16>,
    %56 = vector.extract_strided_slice %48 {offsets = [32, 0], sizes = [16, 128], strides = [1, 1]} : vector<384x128xf32> to vector<16x128xf32>
    %57 = vector.extract_strided_slice %48 {offsets = [48, 0], sizes = [16, 128], strides = [1, 1]} : vector<384x128xf32> to vector<16x128xf32>
    %58 = arith.maximumf %56, %57 : vector<16x128xf32>
    %cst_42 = arith.constant 0.000000e+00 : f32
    %59 = vector.broadcast %cst_42 : f32 to vector<16x128xf32>
    %60 = arith.maximumf %58, %59 : vector<16x128xf32>
    %61 = arith.truncf %60 : vector<16x128xf32> to vector<16x128xbf16>
    %c16 = arith.constant 16 : index
    %c0_43 = arith.constant 0 : index
    %62 = vector.load %arg13[%c16, %c0_43] : memref<192x128xbf16, #tpu.memory_space<vmem>>, vector<16x128xbf16>
    tpu.vector_store %arg13[%c16, %c0_43], %61 {strides = array<i32>} : memref<192x128xbf16, #tpu.memory_space<vmem>>, vector<16x128xbf16>,
    %63 = vector.extract_strided_slice %48 {offsets = [64, 0], sizes = [16, 128], strides = [1, 1]} : vector<384x128xf32> to vector<16x128xf32>
    %64 = vector.extract_strided_slice %48 {offsets = [80, 0], sizes = [16, 128], strides = [1, 1]} : vector<384x128xf32> to vector<16x128xf32>
    %65 = arith.maximumf %63, %64 : vector<16x128xf32>
    %cst_44 = arith.constant 0.000000e+00 : f32
    %66 = vector.broadcast %cst_44 : f32 to vector<16x128xf32>
    %67 = arith.maximumf %65, %66 : vector<16x128xf32>
    %68 = arith.truncf %67 : vector<16x128xf32> to vector<16x128xbf16>
    %c32 = arith.constant 32 : index
    %c0_45 = arith.constant 0 : index
    %69 = vector.load %arg13[%c32, %c0_45] : memref<192x128xbf16, #tpu.memory_space<vmem>>, vector<16x128xbf16>
    tpu.vector_store %arg13[%c32, %c0_45], %68 {strides = array<i32>} : memref<192x128xbf16, #tpu.memory_space<vmem>>, vector<16x128xbf16>,
    %70 = vector.extract_strided_slice %48 {offsets = [96, 0], sizes = [16, 128], strides = [1, 1]} : vector<384x128xf32> to vector<16x128xf32>
    %71 = vector.extract_strided_slice %48 {offsets = [112, 0], sizes = [16, 128], strides = [1, 1]} : vector<384x128xf32> to vector<16x128xf32>
    %72 = arith.maximumf %70, %71 : vector<16x128xf32>
    %cst_46 = arith.constant 0.000000e+00 : f32
    %73 = vector.broadcast %cst_46 : f32 to vector<16x128xf32>
    %74 = arith.maximumf %72, %73 : vector<16x128xf32>
    %75 = arith.truncf %74 : vector<16x128xf32> to vector<16x128xbf16>
    %c48 = arith.constant 48 : index
    %c0_47 = arith.constant 0 : index
    %76 = vector.load %arg13[%c48, %c0_47] : memref<192x128xbf16, #tpu.memory_space<vmem>>, vector<16x128xbf16>
    tpu.vector_store %arg13[%c48, %c0_47], %75 {strides = array<i32>} : memref<192x128xbf16, #tpu.memory_space<vmem>>, vector<16x128xbf16>,
    %77 = vector.extract_strided_slice %48 {offsets = [128, 0], sizes = [16, 128], strides = [1, 1]} : vector<384x128xf32> to vector<16x128xf32>
    %78 = vector.extract_strided_slice %48 {offsets = [144, 0], sizes = [16, 128], strides = [1, 1]} : vector<384x128xf32> to vector<16x128xf32>
    %79 = arith.maximumf %77, %78 : vector<16x128xf32>
    %cst_48 = arith.constant 0.000000e+00 : f32
    %80 = vector.broadcast %cst_48 : f32 to vector<16x128xf32>
    %81 = arith.maximumf %79, %80 : vector<16x128xf32>
    %82 = arith.truncf %81 : vector<16x128xf32> to vector<16x128xbf16>
    %c64 = arith.constant 64 : index
    %c0_49 = arith.constant 0 : index
    %83 = vector.load %arg13[%c64, %c0_49] : memref<192x128xbf16, #tpu.memory_space<vmem>>, vector<16x128xbf16>
    tpu.vector_store %arg13[%c64, %c0_49], %82 {strides = array<i32>} : memref<192x128xbf16, #tpu.memory_space<vmem>>, vector<16x128xbf16>,
    %84 = vector.extract_strided_slice %48 {offsets = [160, 0], sizes = [16, 128], strides = [1, 1]} : vector<384x128xf32> to vector<16x128xf32>
    %85 = vector.extract_strided_slice %48 {offsets = [176, 0], sizes = [16, 128], strides = [1, 1]} : vector<384x128xf32> to vector<16x128xf32>
    %86 = arith.maximumf %84, %85 : vector<16x128xf32>
    %cst_50 = arith.constant 0.000000e+00 : f32
    %87 = vector.broadcast %cst_50 : f32 to vector<16x128xf32>
    %88 = arith.maximumf %86, %87 : vector<16x128xf32>
    %89 = arith.truncf %88 : vector<16x128xf32> to vector<16x128xbf16>
    %c80 = arith.constant 80 : index
    %c0_51 = arith.constant 0 : index
    %90 = vector.load %arg13[%c80, %c0_51] : memref<192x128xbf16, #tpu.memory_space<vmem>>, vector<16x128xbf16>
    tpu.vector_store %arg13[%c80, %c0_51], %89 {strides = array<i32>} : memref<192x128xbf16, #tpu.memory_space<vmem>>, vector<16x128xbf16>,
    %91 = vector.extract_strided_slice %48 {offsets = [192, 0], sizes = [16, 128], strides = [1, 1]} : vector<384x128xf32> to vector<16x128xf32>
    %92 = vector.extract_strided_slice %48 {offsets = [208, 0], sizes = [16, 128], strides = [1, 1]} : vector<384x128xf32> to vector<16x128xf32>
    %93 = arith.maximumf %91, %92 : vector<16x128xf32>
    %cst_52 = arith.constant 0.000000e+00 : f32
    %94 = vector.broadcast %cst_52 : f32 to vector<16x128xf32>
    %95 = arith.maximumf %93, %94 : vector<16x128xf32>
    %96 = arith.truncf %95 : vector<16x128xf32> to vector<16x128xbf16>
    %c96 = arith.constant 96 : index
    %c0_53 = arith.constant 0 : index
    %97 = vector.load %arg13[%c96, %c0_53] : memref<192x128xbf16, #tpu.memory_space<vmem>>, vector<16x128xbf16>
    tpu.vector_store %arg13[%c96, %c0_53], %96 {strides = array<i32>} : memref<192x128xbf16, #tpu.memory_space<vmem>>, vector<16x128xbf16>,
    %98 = vector.extract_strided_slice %48 {offsets = [224, 0], sizes = [16, 128], strides = [1, 1]} : vector<384x128xf32> to vector<16x128xf32>
    %99 = vector.extract_strided_slice %48 {offsets = [240, 0], sizes = [16, 128], strides = [1, 1]} : vector<384x128xf32> to vector<16x128xf32>
    %100 = arith.maximumf %98, %99 : vector<16x128xf32>
    %cst_54 = arith.constant 0.000000e+00 : f32
    %101 = vector.broadcast %cst_54 : f32 to vector<16x128xf32>
    %102 = arith.maximumf %100, %101 : vector<16x128xf32>
    %103 = arith.truncf %102 : vector<16x128xf32> to vector<16x128xbf16>
    %c112 = arith.constant 112 : index
    %c0_55 = arith.constant 0 : index
    %104 = vector.load %arg13[%c112, %c0_55] : memref<192x128xbf16, #tpu.memory_space<vmem>>, vector<16x128xbf16>
    tpu.vector_store %arg13[%c112, %c0_55], %103 {strides = array<i32>} : memref<192x128xbf16, #tpu.memory_space<vmem>>, vector<16x128xbf16>,
    %105 = vector.extract_strided_slice %48 {offsets = [256, 0], sizes = [16, 128], strides = [1, 1]} : vector<384x128xf32> to vector<16x128xf32>
    %106 = vector.extract_strided_slice %48 {offsets = [272, 0], sizes = [16, 128], strides = [1, 1]} : vector<384x128xf32> to vector<16x128xf32>
    %107 = arith.maximumf %105, %106 : vector<16x128xf32>
    %cst_56 = arith.constant 0.000000e+00 : f32
    %108 = vector.broadcast %cst_56 : f32 to vector<16x128xf32>
    %109 = arith.maximumf %107, %108 : vector<16x128xf32>
    %110 = arith.truncf %109 : vector<16x128xf32> to vector<16x128xbf16>
    %c128 = arith.constant 128 : index
    %c0_57 = arith.constant 0 : index
    %111 = vector.load %arg13[%c128, %c0_57] : memref<192x128xbf16, #tpu.memory_space<vmem>>, vector<16x128xbf16>
    tpu.vector_store %arg13[%c128, %c0_57], %110 {strides = array<i32>} : memref<192x128xbf16, #tpu.memory_space<vmem>>, vector<16x128xbf16>,
    %112 = vector.extract_strided_slice %48 {offsets = [288, 0], sizes = [16, 128], strides = [1, 1]} : vector<384x128xf32> to vector<16x128xf32>
    %113 = vector.extract_strided_slice %48 {offsets = [304, 0], sizes = [16, 128], strides = [1, 1]} : vector<384x128xf32> to vector<16x128xf32>
    %114 = arith.maximumf %112, %113 : vector<16x128xf32>
    %cst_58 = arith.constant 0.000000e+00 : f32
    %115 = vector.broadcast %cst_58 : f32 to vector<16x128xf32>
    %116 = arith.maximumf %114, %115 : vector<16x128xf32>
    %117 = arith.truncf %116 : vector<16x128xf32> to vector<16x128xbf16>
    %c144 = arith.constant 144 : index
    %c0_59 = arith.constant 0 : index
    %118 = vector.load %arg13[%c144, %c0_59] : memref<192x128xbf16, #tpu.memory_space<vmem>>, vector<16x128xbf16>
    tpu.vector_store %arg13[%c144, %c0_59], %117 {strides = array<i32>} : memref<192x128xbf16, #tpu.memory_space<vmem>>, vector<16x128xbf16>,
    %119 = vector.extract_strided_slice %48 {offsets = [320, 0], sizes = [16, 128], strides = [1, 1]} : vector<384x128xf32> to vector<16x128xf32>
    %120 = vector.extract_strided_slice %48 {offsets = [336, 0], sizes = [16, 128], strides = [1, 1]} : vector<384x128xf32> to vector<16x128xf32>
    %121 = arith.maximumf %119, %120 : vector<16x128xf32>
    %cst_60 = arith.constant 0.000000e+00 : f32
    %122 = vector.broadcast %cst_60 : f32 to vector<16x128xf32>
    %123 = arith.maximumf %121, %122 : vector<16x128xf32>
    %124 = arith.truncf %123 : vector<16x128xf32> to vector<16x128xbf16>
    %c160 = arith.constant 160 : index
    %c0_61 = arith.constant 0 : index
    %125 = vector.load %arg13[%c160, %c0_61] : memref<192x128xbf16, #tpu.memory_space<vmem>>, vector<16x128xbf16>
    tpu.vector_store %arg13[%c160, %c0_61], %124 {strides = array<i32>} : memref<192x128xbf16, #tpu.memory_space<vmem>>, vector<16x128xbf16>,
    %126 = vector.extract_strided_slice %48 {offsets = [352, 0], sizes = [16, 128], strides = [1, 1]} : vector<384x128xf32> to vector<16x128xf32>
    %127 = vector.extract_strided_slice %48 {offsets = [368, 0], sizes = [16, 128], strides = [1, 1]} : vector<384x128xf32> to vector<16x128xf32>
    %128 = arith.maximumf %126, %127 : vector<16x128xf32>
    %cst_62 = arith.constant 0.000000e+00 : f32
    %129 = vector.broadcast %cst_62 : f32 to vector<16x128xf32>
    %130 = arith.maximumf %128, %129 : vector<16x128xf32>
    %131 = arith.truncf %130 : vector<16x128xf32> to vector<16x128xbf16>
    %c176 = arith.constant 176 : index
    %c0_63 = arith.constant 0 : index
    %132 = vector.load %arg13[%c176, %c0_63] : memref<192x128xbf16, #tpu.memory_space<vmem>>, vector<16x128xbf16>
    tpu.vector_store %arg13[%c176, %c0_63], %131 {strides = array<i32>} : memref<192x128xbf16, #tpu.memory_space<vmem>>, vector<16x128xbf16>,
    %c0_64 = arith.constant 0 : index
    %c0_65 = arith.constant 0 : index
    %133 = vector.load %arg13[%c0_64, %c0_65] : memref<192x128xbf16, #tpu.memory_space<vmem>>, vector<128x128xbf16>
    %c0_66 = arith.constant 0 : index
    %c0_67 = arith.constant 0 : index
    %c0_68 = arith.constant 0 : index
    %134 = vector.load %arg5[%c0_66, %c0_67, %c0_68] : memref<5x128x128xbf16, #tpu.memory_space<vmem>>, vector<1x128x128xbf16>
    %135 = vector.shape_cast %134 : vector<1x128x128xbf16> to vector<128x128xbf16>
    %cst_69 = arith.constant dense<0.000000e+00> : vector<128x128xf32>
    %136 = tpu.matmul %133, %135, %cst_69 {dimension_numbers = #tpu.dot_dimension_numbers<[1], [0], [0], [1], [0, 0, 1, 1], [], []>} : vector<128x128xbf16>, vector<128x128xbf16>, vector<128x128xf32> -> vector<128x128xf32>
    %c0_70 = arith.constant 0 : index
    %c0_71 = arith.constant 0 : index
    %c0_72 = arith.constant 0 : index
    %137 = vector.load %arg6[%c0_70, %c0_71, %c0_72] : memref<5x128x128xbf16, #tpu.memory_space<vmem>>, vector<1x128x128xbf16>
    %138 = vector.shape_cast %137 : vector<1x128x128xbf16> to vector<128x128xbf16>
    %cst_73 = arith.constant dense<0.000000e+00> : vector<128x128xf32>
    %139 = tpu.matmul %133, %138, %cst_73 {dimension_numbers = #tpu.dot_dimension_numbers<[1], [0], [0], [1], [0, 0, 1, 1], [], []>} : vector<128x128xbf16>, vector<128x128xbf16>, vector<128x128xf32> -> vector<128x128xf32>
    %c16_74 = arith.constant 16 : index
    %c0_75 = arith.constant 0 : index
    %140 = vector.load %arg13[%c16_74, %c0_75] : memref<192x128xbf16, #tpu.memory_space<vmem>>, vector<128x128xbf16>
    %c1_76 = arith.constant 1 : index
    %c0_77 = arith.constant 0 : index
    %c0_78 = arith.constant 0 : index
    %141 = vector.load %arg5[%c1_76, %c0_77, %c0_78] : memref<5x128x128xbf16, #tpu.memory_space<vmem>>, vector<1x128x128xbf16>
    %142 = vector.shape_cast %141 : vector<1x128x128xbf16> to vector<128x128xbf16>
    %cst_79 = arith.constant dense<0.000000e+00> : vector<128x128xf32>
    %143 = tpu.matmul %140, %142, %cst_79 {dimension_numbers = #tpu.dot_dimension_numbers<[1], [0], [0], [1], [0, 0, 1, 1], [], []>} : vector<128x128xbf16>, vector<128x128xbf16>, vector<128x128xf32> -> vector<128x128xf32>
    %c1_80 = arith.constant 1 : index
    %c0_81 = arith.constant 0 : index
    %c0_82 = arith.constant 0 : index
    %144 = vector.load %arg6[%c1_80, %c0_81, %c0_82] : memref<5x128x128xbf16, #tpu.memory_space<vmem>>, vector<1x128x128xbf16>
    %145 = vector.shape_cast %144 : vector<1x128x128xbf16> to vector<128x128xbf16>
    %cst_83 = arith.constant dense<0.000000e+00> : vector<128x128xf32>
    %146 = tpu.matmul %140, %145, %cst_83 {dimension_numbers = #tpu.dot_dimension_numbers<[1], [0], [0], [1], [0, 0, 1, 1], [], []>} : vector<128x128xbf16>, vector<128x128xbf16>, vector<128x128xf32> -> vector<128x128xf32>
    %147 = arith.addf %136, %143 : vector<128x128xf32>
    %148 = arith.addf %139, %146 : vector<128x128xf32>
    %c32_84 = arith.constant 32 : index
    %c0_85 = arith.constant 0 : index
    %149 = vector.load %arg13[%c32_84, %c0_85] : memref<192x128xbf16, #tpu.memory_space<vmem>>, vector<128x128xbf16>
    %c2_86 = arith.constant 2 : index
    %c0_87 = arith.constant 0 : index
    %c0_88 = arith.constant 0 : index
    %150 = vector.load %arg5[%c2_86, %c0_87, %c0_88] : memref<5x128x128xbf16, #tpu.memory_space<vmem>>, vector<1x128x128xbf16>
    %151 = vector.shape_cast %150 : vector<1x128x128xbf16> to vector<128x128xbf16>
    %cst_89 = arith.constant dense<0.000000e+00> : vector<128x128xf32>
    %152 = tpu.matmul %149, %151, %cst_89 {dimension_numbers = #tpu.dot_dimension_numbers<[1], [0], [0], [1], [0, 0, 1, 1], [], []>} : vector<128x128xbf16>, vector<128x128xbf16>, vector<128x128xf32> -> vector<128x128xf32>
    %c2_90 = arith.constant 2 : index
    %c0_91 = arith.constant 0 : index
    %c0_92 = arith.constant 0 : index
    %153 = vector.load %arg6[%c2_90, %c0_91, %c0_92] : memref<5x128x128xbf16, #tpu.memory_space<vmem>>, vector<1x128x128xbf16>
    %154 = vector.shape_cast %153 : vector<1x128x128xbf16> to vector<128x128xbf16>
    %cst_93 = arith.constant dense<0.000000e+00> : vector<128x128xf32>
    %155 = tpu.matmul %149, %154, %cst_93 {dimension_numbers = #tpu.dot_dimension_numbers<[1], [0], [0], [1], [0, 0, 1, 1], [], []>} : vector<128x128xbf16>, vector<128x128xbf16>, vector<128x128xf32> -> vector<128x128xf32>
    %156 = arith.addf %147, %152 : vector<128x128xf32>
    %157 = arith.addf %148, %155 : vector<128x128xf32>
    %c48_94 = arith.constant 48 : index
    %c0_95 = arith.constant 0 : index
    %158 = vector.load %arg13[%c48_94, %c0_95] : memref<192x128xbf16, #tpu.memory_space<vmem>>, vector<128x128xbf16>
    %c3_96 = arith.constant 3 : index
    %c0_97 = arith.constant 0 : index
    %c0_98 = arith.constant 0 : index
    %159 = vector.load %arg5[%c3_96, %c0_97, %c0_98] : memref<5x128x128xbf16, #tpu.memory_space<vmem>>, vector<1x128x128xbf16>
    %160 = vector.shape_cast %159 : vector<1x128x128xbf16> to vector<128x128xbf16>
    %cst_99 = arith.constant dense<0.000000e+00> : vector<128x128xf32>
    %161 = tpu.matmul %158, %160, %cst_99 {dimension_numbers = #tpu.dot_dimension_numbers<[1], [0], [0], [1], [0, 0, 1, 1], [], []>} : vector<128x128xbf16>, vector<128x128xbf16>, vector<128x128xf32> -> vector<128x128xf32>
    %c3_100 = arith.constant 3 : index
    %c0_101 = arith.constant 0 : index
    %c0_102 = arith.constant 0 : index
    %162 = vector.load %arg6[%c3_100, %c0_101, %c0_102] : memref<5x128x128xbf16, #tpu.memory_space<vmem>>, vector<1x128x128xbf16>
    %163 = vector.shape_cast %162 : vector<1x128x128xbf16> to vector<128x128xbf16>
    %cst_103 = arith.constant dense<0.000000e+00> : vector<128x128xf32>
    %164 = tpu.matmul %158, %163, %cst_103 {dimension_numbers = #tpu.dot_dimension_numbers<[1], [0], [0], [1], [0, 0, 1, 1], [], []>} : vector<128x128xbf16>, vector<128x128xbf16>, vector<128x128xf32> -> vector<128x128xf32>
    %165 = arith.addf %156, %161 : vector<128x128xf32>
    %166 = arith.addf %157, %164 : vector<128x128xf32>
    %c64_104 = arith.constant 64 : index
    %c0_105 = arith.constant 0 : index
    %167 = vector.load %arg13[%c64_104, %c0_105] : memref<192x128xbf16, #tpu.memory_space<vmem>>, vector<128x128xbf16>
    %c4_106 = arith.constant 4 : index
    %c0_107 = arith.constant 0 : index
    %c0_108 = arith.constant 0 : index
    %168 = vector.load %arg5[%c4_106, %c0_107, %c0_108] : memref<5x128x128xbf16, #tpu.memory_space<vmem>>, vector<1x128x128xbf16>
    %169 = vector.shape_cast %168 : vector<1x128x128xbf16> to vector<128x128xbf16>
    %cst_109 = arith.constant dense<0.000000e+00> : vector<128x128xf32>
    %170 = tpu.matmul %167, %169, %cst_109 {dimension_numbers = #tpu.dot_dimension_numbers<[1], [0], [0], [1], [0, 0, 1, 1], [], []>} : vector<128x128xbf16>, vector<128x128xbf16>, vector<128x128xf32> -> vector<128x128xf32>
    %c4_110 = arith.constant 4 : index
    %c0_111 = arith.constant 0 : index
    %c0_112 = arith.constant 0 : index
    %171 = vector.load %arg6[%c4_110, %c0_111, %c0_112] : memref<5x128x128xbf16, #tpu.memory_space<vmem>>, vector<1x128x128xbf16>
    %172 = vector.shape_cast %171 : vector<1x128x128xbf16> to vector<128x128xbf16>
    %cst_113 = arith.constant dense<0.000000e+00> : vector<128x128xf32>
    %173 = tpu.matmul %167, %172, %cst_113 {dimension_numbers = #tpu.dot_dimension_numbers<[1], [0], [0], [1], [0, 0, 1, 1], [], []>} : vector<128x128xbf16>, vector<128x128xbf16>, vector<128x128xf32> -> vector<128x128xf32>
    %174 = arith.addf %165, %170 : vector<128x128xf32>
    %175 = arith.addf %166, %173 : vector<128x128xf32>
    %176 = arith.maximumf %174, %175 : vector<128x128xf32>
    %c0_114 = arith.constant 0 : index
    %c0_115 = arith.constant 0 : index
    %177 = vector.load %arg7[%c0_114, %c0_115] : memref<1x128xf32, #tpu.memory_space<vmem>>, vector<1x128xf32>
    %178 = vector.broadcast %177 : vector<1x128xf32> to vector<128x128xf32>
    %179 = arith.addf %176, %178 : vector<128x128xf32>
    %180 = vector.extract_strided_slice %179 {offsets = [0, 0], sizes = [16, 128], strides = [1, 1]} : vector<128x128xf32> to vector<16x128xf32>
    %181 = vector.extract_strided_slice %179 {offsets = [16, 0], sizes = [16, 128], strides = [1, 1]} : vector<128x128xf32> to vector<16x128xf32>
    %182 = arith.maximumf %180, %181 : vector<16x128xf32>
    %cst_116 = arith.constant 0.000000e+00 : f32
    %183 = vector.broadcast %cst_116 : f32 to vector<16x128xf32>
    %184 = arith.maximumf %182, %183 : vector<16x128xf32>
    %185 = arith.truncf %184 : vector<16x128xf32> to vector<16x128xbf16>
    %c0_117 = arith.constant 0 : index
    %c0_118 = arith.constant 0 : index
    %186 = vector.load %arg14[%c0_117, %c0_118] : memref<64x128xbf16, #tpu.memory_space<vmem>>, vector<16x128xbf16>
    tpu.vector_store %arg14[%c0_117, %c0_118], %185 {strides = array<i32>} : memref<64x128xbf16, #tpu.memory_space<vmem>>, vector<16x128xbf16>,
    %187 = vector.extract_strided_slice %179 {offsets = [32, 0], sizes = [16, 128], strides = [1, 1]} : vector<128x128xf32> to vector<16x128xf32>
    %188 = vector.extract_strided_slice %179 {offsets = [48, 0], sizes = [16, 128], strides = [1, 1]} : vector<128x128xf32> to vector<16x128xf32>
    %189 = arith.maximumf %187, %188 : vector<16x128xf32>
    %cst_119 = arith.constant 0.000000e+00 : f32
    %190 = vector.broadcast %cst_119 : f32 to vector<16x128xf32>
    %191 = arith.maximumf %189, %190 : vector<16x128xf32>
    %192 = arith.truncf %191 : vector<16x128xf32> to vector<16x128xbf16>
    %c16_120 = arith.constant 16 : index
    %c0_121 = arith.constant 0 : index
    %193 = vector.load %arg14[%c16_120, %c0_121] : memref<64x128xbf16, #tpu.memory_space<vmem>>, vector<16x128xbf16>
    tpu.vector_store %arg14[%c16_120, %c0_121], %192 {strides = array<i32>} : memref<64x128xbf16, #tpu.memory_space<vmem>>, vector<16x128xbf16>,
    %194 = vector.extract_strided_slice %179 {offsets = [64, 0], sizes = [16, 128], strides = [1, 1]} : vector<128x128xf32> to vector<16x128xf32>
    %195 = vector.extract_strided_slice %179 {offsets = [80, 0], sizes = [16, 128], strides = [1, 1]} : vector<128x128xf32> to vector<16x128xf32>
    %196 = arith.maximumf %194, %195 : vector<16x128xf32>
    %cst_122 = arith.constant 0.000000e+00 : f32
    %197 = vector.broadcast %cst_122 : f32 to vector<16x128xf32>
    %198 = arith.maximumf %196, %197 : vector<16x128xf32>
    %199 = arith.truncf %198 : vector<16x128xf32> to vector<16x128xbf16>
    %c32_123 = arith.constant 32 : index
    %c0_124 = arith.constant 0 : index
    %200 = vector.load %arg14[%c32_123, %c0_124] : memref<64x128xbf16, #tpu.memory_space<vmem>>, vector<16x128xbf16>
    tpu.vector_store %arg14[%c32_123, %c0_124], %199 {strides = array<i32>} : memref<64x128xbf16, #tpu.memory_space<vmem>>, vector<16x128xbf16>,
    %201 = vector.extract_strided_slice %179 {offsets = [96, 0], sizes = [16, 128], strides = [1, 1]} : vector<128x128xf32> to vector<16x128xf32>
    %202 = vector.extract_strided_slice %179 {offsets = [112, 0], sizes = [16, 128], strides = [1, 1]} : vector<128x128xf32> to vector<16x128xf32>
    %203 = arith.maximumf %201, %202 : vector<16x128xf32>
    %cst_125 = arith.constant 0.000000e+00 : f32
    %204 = vector.broadcast %cst_125 : f32 to vector<16x128xf32>
    %205 = arith.maximumf %203, %204 : vector<16x128xf32>
    %206 = arith.truncf %205 : vector<16x128xf32> to vector<16x128xbf16>
    %c48_126 = arith.constant 48 : index
    %c0_127 = arith.constant 0 : index
    %207 = vector.load %arg14[%c48_126, %c0_127] : memref<64x128xbf16, #tpu.memory_space<vmem>>, vector<16x128xbf16>
    tpu.vector_store %arg14[%c48_126, %c0_127], %206 {strides = array<i32>} : memref<64x128xbf16, #tpu.memory_space<vmem>>, vector<16x128xbf16>,
    %c0_128 = arith.constant 0 : index
    %c0_129 = arith.constant 0 : index
    %208 = vector.load %arg14[%c0_128, %c0_129] : memref<64x128xbf16, #tpu.memory_space<vmem>>, vector<16x128xbf16>
    %c0_130 = arith.constant 0 : index
    %c0_131 = arith.constant 0 : index
    %c0_132 = arith.constant 0 : index
    %209 = vector.load %arg8[%c0_130, %c0_131, %c0_132] : memref<4x128x50xbf16, #tpu.memory_space<vmem>>, vector<1x128x50xbf16>
    %210 = vector.shape_cast %209 : vector<1x128x50xbf16> to vector<128x50xbf16>
    %cst_133 = arith.constant dense<0.000000e+00> : vector<16x50xf32>
    %211 = tpu.matmul %208, %210, %cst_133 {dimension_numbers = #tpu.dot_dimension_numbers<[1], [0], [0], [1], [0, 0, 1, 1], [], []>} : vector<16x128xbf16>, vector<128x50xbf16>, vector<16x50xf32> -> vector<16x50xf32>
    %c16_134 = arith.constant 16 : index
    %c0_135 = arith.constant 0 : index
    %212 = vector.load %arg14[%c16_134, %c0_135] : memref<64x128xbf16, #tpu.memory_space<vmem>>, vector<16x128xbf16>
    %c1_136 = arith.constant 1 : index
    %c0_137 = arith.constant 0 : index
    %c0_138 = arith.constant 0 : index
    %213 = vector.load %arg8[%c1_136, %c0_137, %c0_138] : memref<4x128x50xbf16, #tpu.memory_space<vmem>>, vector<1x128x50xbf16>
    %214 = vector.shape_cast %213 : vector<1x128x50xbf16> to vector<128x50xbf16>
    %cst_139 = arith.constant dense<0.000000e+00> : vector<16x50xf32>
    %215 = tpu.matmul %212, %214, %cst_139 {dimension_numbers = #tpu.dot_dimension_numbers<[1], [0], [0], [1], [0, 0, 1, 1], [], []>} : vector<16x128xbf16>, vector<128x50xbf16>, vector<16x50xf32> -> vector<16x50xf32>
    %216 = arith.addf %211, %215 : vector<16x50xf32>
    %c32_140 = arith.constant 32 : index
    %c0_141 = arith.constant 0 : index
    %217 = vector.load %arg14[%c32_140, %c0_141] : memref<64x128xbf16, #tpu.memory_space<vmem>>, vector<16x128xbf16>
    %c2_142 = arith.constant 2 : index
    %c0_143 = arith.constant 0 : index
    %c0_144 = arith.constant 0 : index
    %218 = vector.load %arg8[%c2_142, %c0_143, %c0_144] : memref<4x128x50xbf16, #tpu.memory_space<vmem>>, vector<1x128x50xbf16>
    %219 = vector.shape_cast %218 : vector<1x128x50xbf16> to vector<128x50xbf16>
    %cst_145 = arith.constant dense<0.000000e+00> : vector<16x50xf32>
    %220 = tpu.matmul %217, %219, %cst_145 {dimension_numbers = #tpu.dot_dimension_numbers<[1], [0], [0], [1], [0, 0, 1, 1], [], []>} : vector<16x128xbf16>, vector<128x50xbf16>, vector<16x50xf32> -> vector<16x50xf32>
    %221 = arith.addf %216, %220 : vector<16x50xf32>
    %c48_146 = arith.constant 48 : index
    %c0_147 = arith.constant 0 : index
    %222 = vector.load %arg14[%c48_146, %c0_147] : memref<64x128xbf16, #tpu.memory_space<vmem>>, vector<16x128xbf16>
    %c3_148 = arith.constant 3 : index
    %c0_149 = arith.constant 0 : index
    %c0_150 = arith.constant 0 : index
    %223 = vector.load %arg8[%c3_148, %c0_149, %c0_150] : memref<4x128x50xbf16, #tpu.memory_space<vmem>>, vector<1x128x50xbf16>
    %224 = vector.shape_cast %223 : vector<1x128x50xbf16> to vector<128x50xbf16>
    %cst_151 = arith.constant dense<0.000000e+00> : vector<16x50xf32>
    %225 = tpu.matmul %222, %224, %cst_151 {dimension_numbers = #tpu.dot_dimension_numbers<[1], [0], [0], [1], [0, 0, 1, 1], [], []>} : vector<16x128xbf16>, vector<128x50xbf16>, vector<16x50xf32> -> vector<16x50xf32>
    %226 = arith.addf %221, %225 : vector<16x50xf32>
    %c0_152 = arith.constant 0 : index
    %c0_153 = arith.constant 0 : index
    %227 = vector.load %arg9[%c0_152, %c0_153] : memref<1x50xf32, #tpu.memory_space<vmem>>, vector<1x50xf32>
    %228 = vector.broadcast %227 : vector<1x50xf32> to vector<16x50xf32>
    %229 = arith.addf %226, %228 : vector<16x50xf32>
    %cst_154 = arith.constant 0.000000e+00 : f32
    %230 = vector.broadcast %cst_154 : f32 to vector<16x50xf32>
    %231 = arith.maximumf %229, %230 : vector<16x50xf32>
    %232 = arith.truncf %231 : vector<16x50xf32> to vector<16x50xbf16>
    %c0_155 = arith.constant 0 : index
    %c0_156 = arith.constant 0 : index
    %233 = vector.load %arg10[%c0_155, %c0_156] : memref<50x10xbf16, #tpu.memory_space<vmem>>, vector<50x10xbf16>
    %cst_157 = arith.constant dense<0.000000e+00> : vector<16x10xf32>
    %234 = tpu.matmul %232, %233, %cst_157 {dimension_numbers = #tpu.dot_dimension_numbers<[1], [0], [0], [1], [0, 0, 1, 1], [], []>} : vector<16x50xbf16>, vector<50x10xbf16>, vector<16x10xf32> -> vector<16x10xf32>
    %c0_158 = arith.constant 0 : index
    %c0_159 = arith.constant 0 : index
    %235 = vector.load %arg11[%c0_158, %c0_159] : memref<1x10xf32, #tpu.memory_space<vmem>>, vector<1x10xf32>
    %236 = vector.broadcast %235 : vector<1x10xf32> to vector<16x10xf32>
    %237 = arith.addf %234, %236 : vector<16x10xf32>
    %cst_160 = arith.constant dense<0xFF800000> : vector<16xf32>
    %238 = vector.multi_reduction <maximumf>, %237, %cst_160 [1] : vector<16x10xf32> to vector<16xf32>
    %239 = vector.shape_cast %238 : vector<16xf32> to vector<16x1xf32>
    %240 = vector.broadcast %239 : vector<16x1xf32> to vector<16x10xf32>
    %241 = arith.subf %237, %240 : vector<16x10xf32>
    %242 = math.exp %241 : vector<16x10xf32>
    %cst_161 = arith.constant dense<0.000000e+00> : vector<16xf32>
    %243 = vector.multi_reduction <add>, %242, %cst_161 [1] : vector<16x10xf32> to vector<16xf32>
    %244 = vector.shape_cast %243 : vector<16xf32> to vector<16x1xf32>
    %245 = math.log %244 : vector<16x1xf32>
    %246 = vector.broadcast %245 : vector<16x1xf32> to vector<16x10xf32>
    %247 = arith.subf %241, %246 : vector<16x10xf32>
    %c0_162 = arith.constant 0 : index
    %c0_163 = arith.constant 0 : index
    %248 = vector.load %arg12[%c0_162, %c0_163] : memref<16x10xf32, #tpu.memory_space<vmem>>, vector<16x10xf32>
    tpu.vector_store %arg12[%c0_162, %c0_163], %247 {strides = array<i32>} : memref<16x10xf32, #tpu.memory_space<vmem>>, vector<16x10xf32>,
    return
  }
  func.func @transform_0(%arg0: i32) -> (i32, i32, i32) {
    %c0_i32 = arith.constant 0 : i32
    %c0_i32_0 = arith.constant 0 : i32
    %c0_i32_1 = arith.constant 0 : i32
    return %c0_i32, %arg0, %c0_i32_0 : i32, i32, i32
  }
  func.func @transform_1(%arg0: i32) -> (i32, i32, i32) {
    %c0_i32 = arith.constant 0 : i32
    %c0_i32_0 = arith.constant 0 : i32
    %c0_i32_1 = arith.constant 0 : i32
    %c0_i32_2 = arith.constant 0 : i32
    return %c0_i32, %c0_i32_0, %c0_i32_1 : i32, i32, i32
  }
  func.func @transform_2(%arg0: i32) -> (i32, i32, i32) {
    %c0_i32 = arith.constant 0 : i32
    %c0_i32_0 = arith.constant 0 : i32
    %c0_i32_1 = arith.constant 0 : i32
    %c0_i32_2 = arith.constant 0 : i32
    return %c0_i32, %c0_i32_0, %c0_i32_1 : i32, i32, i32
  }
  func.func @transform_3(%arg0: i32) -> (i32, i32) {
    %c0_i32 = arith.constant 0 : i32
    %c0_i32_0 = arith.constant 0 : i32
    %c0_i32_1 = arith.constant 0 : i32
    return %c0_i32, %c0_i32_0 : i32, i32
  }
  func.func @transform_4(%arg0: i32) -> (i32, i32, i32) {
    %c0_i32 = arith.constant 0 : i32
    %c0_i32_0 = arith.constant 0 : i32
    %c0_i32_1 = arith.constant 0 : i32
    %c0_i32_2 = arith.constant 0 : i32
    return %c0_i32, %c0_i32_0, %c0_i32_1 : i32, i32, i32
  }
  func.func @transform_5(%arg0: i32) -> (i32, i32, i32) {
    %c0_i32 = arith.constant 0 : i32
    %c0_i32_0 = arith.constant 0 : i32
    %c0_i32_1 = arith.constant 0 : i32
    %c0_i32_2 = arith.constant 0 : i32
    return %c0_i32, %c0_i32_0, %c0_i32_1 : i32, i32, i32
  }
  func.func @transform_6(%arg0: i32) -> (i32, i32) {
    %c0_i32 = arith.constant 0 : i32
    %c0_i32_0 = arith.constant 0 : i32
    %c0_i32_1 = arith.constant 0 : i32
    return %c0_i32, %c0_i32_0 : i32, i32
  }
  func.func @transform_7(%arg0: i32) -> (i32, i32, i32) {
    %c0_i32 = arith.constant 0 : i32
    %c0_i32_0 = arith.constant 0 : i32
    %c0_i32_1 = arith.constant 0 : i32
    %c0_i32_2 = arith.constant 0 : i32
    return %c0_i32, %c0_i32_0, %c0_i32_1 : i32, i32, i32
  }
  func.func @transform_8(%arg0: i32) -> (i32, i32) {
    %c0_i32 = arith.constant 0 : i32
    %c0_i32_0 = arith.constant 0 : i32
    %c0_i32_1 = arith.constant 0 : i32
    return %c0_i32, %c0_i32_0 : i32, i32
  }
  func.func @transform_9(%arg0: i32) -> (i32, i32) {
    %c0_i32 = arith.constant 0 : i32
    %c0_i32_0 = arith.constant 0 : i32
    %c0_i32_1 = arith.constant 0 : i32
    return %c0_i32, %c0_i32_0 : i32, i32
  }
  func.func @transform_10(%arg0: i32) -> (i32, i32) {
    %c0_i32 = arith.constant 0 : i32
    %c0_i32_0 = arith.constant 0 : i32
    %c0_i32_1 = arith.constant 0 : i32
    return %c0_i32, %c0_i32_0 : i32, i32
  }
  func.func @transform_11(%arg0: i32) -> (i32, i32) {
    %c0_i32 = arith.constant 0 : i32
    %c0_i32_0 = arith.constant 0 : i32
    return %arg0, %c0_i32 : i32, i32
  }
}

</mosaic_0001>

<bundles_post_ra>
// kernel: net_forward.1
= control target key start
LH: loop header
LB: loop body
LE: loop exit
PB: predicated region body
PF: predicated region fallthrough
CT: control target
= control target key end

     0   :  { %16 = vsyncpa [#allocation5], 0  ;;  %s5901_s20 = smov [#allocation4]   ;;  %s5902_s22 = smov 64   ;;  %s8066_s0 = inlined_call_operand.vmem [shape: bf16[28,16,28], index: 0, kind: input, shape index: {}]   ;;  %s8067_s1 = inlined_call_operand.vmem [shape: bf16[5,28,128], index: 1, kind: input, shape index: {}]   ;;  %s8068_s2 = inlined_call_operand.hbm [shape: bf16[5,28,128], index: 2, kind: input, shape index: {}]   ;;  %s8069_s3 = inlined_call_operand.vmem [shape: f32[1,128], index: 3, kind: input, shape index: {}]   ;;  %s8070_s4 = inlined_call_operand.vmem [shape: bf16[5,128,128], index: 4, kind: input, shape index: {}]   ;;  %s8071_s5 = inlined_call_operand.vmem [shape: bf16[5,128,128], index: 5, kind: input, shape index: {}]   ;;  %s8072_s6 = inlined_call_operand.vmem [shape: f32[1,128], index: 6, kind: input, shape index: {}]   ;;  %s8073_s7 = inlined_call_operand.vmem [shape: bf16[4,128,50], index: 7, kind: input, shape index: {}]   ;;  %s8074_s8 = inlined_call_operand.vmem [shape: f32[1,50], index: 8, kind: input, shape index: {}]   ;;  %s8075_s9 = inlined_call_operand.vmem [shape: bf16[50,10], index: 9, kind: input, shape index: {}]   ;;  %s8076_s10 = inlined_call_operand.vmem [shape: f32[1,10], index: 10, kind: input, shape index: {}]   ;;  %s8077_s11 = inlined_call_operand.vmem [shape: f32[16,10], index: 11, kind: output, shape index: {}]  }
   0x1   :  { %s25_s19 = sshll.u32 %s8068_s2, 4  ;;  %s27_s21 = sshll.u32 %s5901_s20, 4  ;;  %s26_s19 = int_to_ptr.hbm [resolvable:$true] %s25_s19  ;;  %s28_s21 = int_to_ptr.vmem [resolvable:$true] %s27_s21 }
   0x2   :  { %s5903_s23 = smov 4  }
   0x3   :  { %33 = dma.hbm_to_vmem [thread:$0]  %s26_s19, 1280, %s28_s21, [#allocation5], %s5902_s22, %s5902_s22, %s5903_s23  }
   0x4   :  { %5899 = dma.done.wait [#allocation5], 1280  }
   0x5   :  { %5900 = vsyncadd [#allocation5], 4294966016  ;;  %vm328_vm0 = vcmask 1045504   ;;  %v4417_v0 = vld [vmem:[%s8067_s1 + $0x18] sm:$0xf]  ;;  %v5576_v13 = vld [vmem:[%s8067_s1 + $0x10] sm:$0xff] }
   0x6   :  { %v5577_v1 = vld [vmem:[%s8067_s1 + $0x18] sm:$0x30]  ;;  %v4449_v2 = vld [vmem:[#allocation4 + $0x18] sm:$0xf]  ;;  %v4485_v5 = vld [vmem:[%s8067_s1 + $0x8] sm:$0xf] }
   0x7   :  { %v4418_v3 = vor.u32 %v5577_v1, %v4417_v0  ;;  %v5579_v4 = vld [vmem:[#allocation4 + $0x18] sm:$0x30]  ;;  %v5573_v6 = vld [vmem:[%s8067_s1 + $0x8] sm:$0x30]  ;;  %v4517_v9 = vld [vmem:[#allocation4 + $0x8] sm:$0xf] }
   0x8   :  { %v4450_v7 = vor.u32 %v5579_v4, %v4449_v2  ;;  %v4486_v8 = vor.u32 %v5573_v6, %v4485_v5  ;;  %v5575_v10 = vld [vmem:[#allocation4 + $0x8] sm:$0x30]  ;;  %v5578_v16 = vld [vmem:[#allocation4 + $0x10] sm:$0xff]  ;;  %v5572_v17 = vld [vmem:[%s8067_s1] sm:$0xff]  ;;  %vm255_vm1 = vcmask 228352   ;;  %vm4261_vm2 = vcmask 1040384  }
   0x9   :  { %v330_v11 = vsel %vm328_vm0, %v4418_v3, 0  ;;  %v4518_v12 = vor.u32 %v5575_v10, %v4517_v9  ;;  %v4557_v18 = vld [vmem:[%s8067_s1 + $0x28] sm:$0xf]  ;;  %v5574_v20 = vld [vmem:[#allocation4] sm:$0xff]  ;;  %v5581_v21 = vld [vmem:[%s8067_s1 + $0x28] sm:$0x30] }
   0xa   :  { %338 = vmatpush.bf16.msra.mxu0 %v330_v11  ;;  %v478_v14 = vsel %vm328_vm0, %v4450_v7, 0  ;;  %v629_v15 = vsel %vm328_vm0, %v4486_v8, 0  ;;  %v4589_v22 = vld [vmem:[#allocation4 + $0x28] sm:$0xf]  ;;  %v4558_v24 = vor.u32 %v5581_v21, %v4557_v18  ;;  %v5583_v25 = vld [vmem:[#allocation4 + $0x28] sm:$0x30] }
   0xb   :  { %486 = vmatpush.bf16.msra.mxu1 %v478_v14  ;;  %637 = vmatpush.bf16.msra.mxu2 %v629_v15  ;;  %v772_v19 = vsel %vm328_vm0, %v4518_v12, 0  ;;  %v5545_v23 = vld [vmem:[%s8066_s0 + $0x8] sm:$0xff]  ;;  %v4590_v26 = vor.u32 %v5583_v25, %v4589_v22  ;;  %v5544_v27 = vld [vmem:[%s8066_s0] sm:$0xff]  ;;  %v6010_v30 = vld [vmem:[%s8066_s0 + $0x10] sm:$0xff]  ;;  %vm4257_vm3 = vcmask 408576   ;;  %vm4279_vm4 = vcmask 80896  }
   0xc   :  { %780 = vmatpush.bf16.msra.mxu3 %v772_v19  ;;  %v928_v28 = vsel %vm328_vm0, %v4558_v24, 0  ;;  %v6021_v31 = vld [vmem:[%s8066_s0 + $0x18] sm:$0xff]  ;;  %v6034_v32 = vld [vmem:[%s8066_s0 + $0x20] sm:$0xff]  ;;  %v6047_v33 = vld [vmem:[%s8066_s0 + $0x28] sm:$0xff] }
   0xd   :  { %v1076_v29 = vsel %vm328_vm0, %v4590_v26, 0  ;;  %v6060_v34 = vld [vmem:[%s8066_s0 + $0x30] sm:$0xff]  ;;  %v6073_v35 = vld [vmem:[%s8066_s0 + $0x38] sm:$0xff]  ;;  %v6086_v36 = vld [vmem:[%s8066_s0 + $0x40] sm:$0xff] }
   0xe   :  { %339 = vmatpush.bf16.msra.mxu0 %v5576_v13  ;;  %v6099_v37 = vld [vmem:[%s8066_s0 + $0x48] sm:$0xff]  ;;  %v6116_v47 = vld [vmem:[%s8066_s0 + $0x50] sm:$0xff]  ;;  %v6137_v60 = vld [vmem:[%s8066_s0 + $0x58] sm:$0xff] }
   0xf   :  { %487 = vmatpush.bf16.msra.mxu1 %v5578_v16  ;;  %638 = vmatpush.bf16.msra.mxu2 %v5572_v17  ;;  %v5580_v2 = vld [vmem:[%s8067_s1 + $0x20] sm:$0xff]  ;;  %v6182_v24 = vld [vmem:[%s8066_s0 + $0x68] sm:$0xff] }
  0x10   :  { %781 = vmatpush.bf16.msra.mxu3 %v5574_v20  ;;  %v5582_v3 = vld [vmem:[#allocation4 + $0x20] sm:$0xff] }
  0x11   :  { %4419 = vmatmul.msk.bf16.vlgmr.msra.gmra.mxu0 %vm255_vm1, %v5545_v23  ;;  %v6161_v11 = vld [vmem:[%s8066_s0 + $0x60] sm:$0xff] }
  0x12   :  { %936 = vmatpush.bf16.msrb.mxu0 %v928_v28  ;;  %4451 = vmatmul.msk.bf16.vlgmr.msra.gmra.mxu1 %vm255_vm1, %v5545_v23 }
  0x13   :  { %1084 = vmatpush.bf16.msrb.mxu1 %v1076_v29  ;;  %4487 = vmatmul.msk.bf16.vlgmr.msra.gmra.mxu2 %vm255_vm1, %v5544_v27 }
  0x14   :  { %4519 = vmatmul.msk.bf16.vlgmr.msra.gmra.mxu3 %vm255_vm1, %v5544_v27 }
  0x16   :  { %937 = vmatpush.bf16.msrb.mxu0 %v5580_v2 }
  0x17   :  { %1085 = vmatpush.bf16.msrb.mxu1 %v5582_v3 }
  0x21   :  { %4420 = vmatmul.msk.bf16.gmra.mxu0 %vm255_vm1, %v6010_v30 }
  0x22   :  { %4452 = vmatmul.msk.bf16.gmra.mxu1 %vm255_vm1, %v6010_v30 }
  0x23   :  { %4488 = vmatmul.msk.bf16.gmra.mxu2 %vm255_vm1, %v5545_v23 }
  0x24   :  { %4520 = vmatmul.msk.bf16.gmra.mxu3 %vm255_vm1, %v5545_v23 }
  0x31   :  { %4421 = vmatmul.msk.bf16.gmra.mxu0 %vm255_vm1, %v6021_v31 }
  0x32   :  { %4453 = vmatmul.msk.bf16.gmra.mxu1 %vm255_vm1, %v6021_v31 }
  0x33   :  { %4489 = vmatmul.msk.bf16.gmra.mxu2 %vm255_vm1, %v6010_v30 }
  0x34   :  { %4521 = vmatmul.msk.bf16.gmra.mxu3 %vm255_vm1, %v6010_v30 }
  0x41   :  { %4422 = vmatmul.msk.bf16.gmra.mxu0 %vm255_vm1, %v6034_v32 }
  0x42   :  { %4454 = vmatmul.msk.bf16.gmra.mxu1 %vm255_vm1, %v6034_v32 }
  0x43   :  { %4490 = vmatmul.msk.bf16.gmra.mxu2 %vm255_vm1, %v6021_v31 }
  0x44   :  { %4522 = vmatmul.msk.bf16.gmra.mxu3 %vm255_vm1, %v6021_v31 }
  0x51   :  { %4423 = vmatmul.msk.bf16.gmra.mxu0 %vm255_vm1, %v6047_v33 }
  0x52   :  { %4455 = vmatmul.msk.bf16.gmra.mxu1 %vm255_vm1, %v6047_v33 }
  0x53   :  { %4491 = vmatmul.msk.bf16.gmra.mxu2 %vm255_vm1, %v6034_v32 }
  0x54   :  { %4523 = vmatmul.msk.bf16.gmra.mxu3 %vm255_vm1, %v6034_v32 }
  0x61   :  { %4424 = vmatmul.msk.bf16.gmra.mxu0 %vm255_vm1, %v6060_v34 }
  0x62   :  { %4456 = vmatmul.msk.bf16.gmra.mxu1 %vm255_vm1, %v6060_v34 }
  0x63   :  { %4492 = vmatmul.msk.bf16.gmra.mxu2 %vm255_vm1, %v6047_v33 }
  0x64   :  { %4524 = vmatmul.msk.bf16.gmra.mxu3 %vm255_vm1, %v6047_v33 }
  0x71   :  { %4425 = vmatmul.msk.bf16.gmra.mxu0 %vm255_vm1, %v6073_v35 }
  0x72   :  { %4457 = vmatmul.msk.bf16.gmra.mxu1 %vm255_vm1, %v6073_v35 }
  0x73   :  { %4493 = vmatmul.msk.bf16.gmra.mxu2 %vm255_vm1, %v6060_v34 }
  0x74   :  { %4525 = vmatmul.msk.bf16.gmra.mxu3 %vm255_vm1, %v6060_v34 }
  0x81   :  { %4426 = vmatmul.msk.bf16.gmra.mxu0 %vm255_vm1, %v6086_v36 }
  0x82   :  { %4458 = vmatmul.msk.bf16.gmra.mxu1 %vm255_vm1, %v6086_v36 }
  0x83   :  { %4494 = vmatmul.msk.bf16.gmra.mxu2 %vm255_vm1, %v6073_v35 }
  0x84   :  { %4526 = vmatmul.msk.bf16.gmra.mxu3 %vm255_vm1, %v6073_v35 }
  0x8e   :  { %v341_v38 = vpop.f32.mrf.mxu0 }
  0x8f   :  { %v489_v39 = vpop.f32.mrf.mxu1 }
  0x91   :  { %4427 = vmatmul.msk.bf16.gmra.mxu0 %vm255_vm1, %v6099_v37 }
  0x92   :  { %4459 = vmatmul.msk.bf16.gmra.mxu1 %vm255_vm1, %v6099_v37 }
  0x93   :  { %4495 = vmatmul.msk.bf16.gmra.mxu2 %vm255_vm1, %v6086_v36 }
  0x94   :  { %4527 = vmatmul.msk.bf16.gmra.mxu3 %vm255_vm1, %v6086_v36 }
  0x96   :  { %v640_v40 = vpop.f32.mrf.mxu2  ;;  %v343_v43 = vpop.f32.mrf.mxu0 }
  0x97   :  { %v6109_v41 = vadd.f32 %v640_v40, %v341_v38  ;;  %v783_v42 = vpop.f32.mrf.mxu3  ;;  %v491_v45 = vpop.f32.mrf.mxu1 }
  0x98   :  { %v6111_v44 = vadd.f32 %v783_v42, %v489_v39 }
  0x9e   :  { %v642_v46 = vpop.f32.mrf.mxu2  ;;  %v346_v50 = vpop.f32.mrf.mxu0 }
  0x9f   :  { %v6118_v48 = vadd.f32 %v642_v46, %v343_v43  ;;  %v785_v49 = vpop.f32.mrf.mxu3  ;;  %v494_v52 = vpop.f32.mrf.mxu1 }
  0xa0   :  { %v6120_v51 = vadd.f32 %v785_v49, %v491_v45  ;;  %v6203_v49 = vld [vmem:[%s8066_s0 + $0x70] sm:$0xff] }
  0xa1   :  { %4428 = vmatmul.msk.bf16.gmra.mxu0 %vm255_vm1, %v6116_v47 }
  0xa2   :  { %4460 = vmatmul.msk.bf16.gmra.mxu1 %vm255_vm1, %v6116_v47 }
  0xa3   :  { %4496 = vmatmul.msk.bf16.gmra.mxu2 %vm255_vm1, %v6099_v37 }
  0xa4   :  { %4528 = vmatmul.msk.bf16.gmra.mxu3 %vm255_vm1, %v6099_v37 }
  0xa6   :  { %v645_v53 = vpop.f32.mrf.mxu2  ;;  %v348_v56 = vpop.f32.mrf.mxu0 }
  0xa7   :  { %v6130_v54 = vadd.f32 %v645_v53, %v346_v50  ;;  %v788_v55 = vpop.f32.mrf.mxu3  ;;  %v496_v58 = vpop.f32.mrf.mxu1 }
  0xa8   :  { %v6132_v57 = vadd.f32 %v788_v55, %v494_v52 }
  0xae   :  { %v647_v59 = vpop.f32.mrf.mxu2  ;;  %v351_v63 = vpop.f32.mrf.mxu0 }
  0xaf   :  { %v6139_v61 = vadd.f32 %v647_v59, %v348_v56  ;;  %v790_v62 = vpop.f32.mrf.mxu3  ;;  %v499_v1 = vpop.f32.mrf.mxu1 }
  0xb0   :  { %v6141_v0 = vadd.f32 %v790_v62, %v496_v58 }
  0xb1   :  { %4429 = vmatmul.msk.bf16.gmra.mxu0 %vm255_vm1, %v6137_v60 }
  0xb2   :  { %4461 = vmatmul.msk.bf16.gmra.mxu1 %vm255_vm1, %v6137_v60 }
  0xb3   :  { %4497 = vmatmul.msk.bf16.gmra.mxu2 %vm255_vm1, %v6116_v47 }
  0xb4   :  { %4529 = vmatmul.msk.bf16.gmra.mxu3 %vm255_vm1, %v6116_v47 }
  0xb6   :  { %v650_v4 = vpop.f32.mrf.mxu2  ;;  %v353_v7 = vpop.f32.mrf.mxu0 }
  0xb7   :  { %v6154_v5 = vadd.f32 %v650_v4, %v351_v63  ;;  %v793_v6 = vpop.f32.mrf.mxu3  ;;  %v501_v9 = vpop.f32.mrf.mxu1  ;;  %v6224_v4 = vld [vmem:[%s8066_s0 + $0x78] sm:$0xff] }
  0xb8   :  { %v6156_v8 = vadd.f32 %v793_v6, %v499_v1 }
  0xbe   :  { %v652_v10 = vpop.f32.mrf.mxu2  ;;  %v356_v14 = vpop.f32.mrf.mxu0 }
  0xbf   :  { %v6163_v12 = vadd.f32 %v652_v10, %v353_v7  ;;  %v795_v13 = vpop.f32.mrf.mxu3  ;;  %v504_v16 = vpop.f32.mrf.mxu1 }
  0xc0   :  { %v6165_v15 = vadd.f32 %v795_v13, %v501_v9 }
  0xc1   :  { %4430 = vmatmul.msk.bf16.gmra.mxu0 %vm255_vm1, %v6161_v11 }
  0xc2   :  { %4462 = vmatmul.msk.bf16.gmra.mxu1 %vm255_vm1, %v6161_v11 }
  0xc3   :  { %4498 = vmatmul.msk.bf16.gmra.mxu2 %vm255_vm1, %v6137_v60 }
  0xc4   :  { %4530 = vmatmul.msk.bf16.gmra.mxu3 %vm255_vm1, %v6137_v60 }
  0xc6   :  { %v655_v17 = vpop.f32.mrf.mxu2  ;;  %v358_v20 = vpop.f32.mrf.mxu0 }
  0xc7   :  { %v6175_v18 = vadd.f32 %v655_v17, %v356_v14  ;;  %v798_v19 = vpop.f32.mrf.mxu3  ;;  %v506_v22 = vpop.f32.mrf.mxu1 }
  0xc8   :  { %v6177_v21 = vadd.f32 %v798_v19, %v504_v16 }
  0xce   :  { %v657_v23 = vpop.f32.mrf.mxu2  ;;  %v361_v27 = vpop.f32.mrf.mxu0 }
  0xcf   :  { %v6184_v25 = vadd.f32 %v657_v23, %v358_v20  ;;  %v800_v26 = vpop.f32.mrf.mxu3  ;;  %v509_v29 = vpop.f32.mrf.mxu1 }
  0xd0   :  { %v6186_v28 = vadd.f32 %v800_v26, %v506_v22  ;;  %v6245_v26 = vld [vmem:[%s8066_s0 + $0x80] sm:$0xff] }
  0xd1   :  { %4431 = vmatmul.msk.bf16.gmra.mxu0 %vm255_vm1, %v6182_v24 }
  0xd2   :  { %4463 = vmatmul.msk.bf16.gmra.mxu1 %vm255_vm1, %v6182_v24 }
  0xd3   :  { %4499 = vmatmul.msk.bf16.gmra.mxu2 %vm255_vm1, %v6161_v11 }
  0xd4   :  { %4531 = vmatmul.msk.bf16.gmra.mxu3 %vm255_vm1, %v6161_v11 }
  0xd6   :  { %v660_v38 = vpop.f32.mrf.mxu2  ;;  %v363_v42 = vpop.f32.mrf.mxu0 }
  0xd7   :  { %v6196_v39 = vadd.f32 %v660_v38, %v361_v27  ;;  %v803_v40 = vpop.f32.mrf.mxu3  ;;  %v511_v45 = vpop.f32.mrf.mxu1 }
  0xd8   :  { %v6198_v43 = vadd.f32 %v803_v40, %v509_v29 }
  0xde   :  { %v662_v46 = vpop.f32.mrf.mxu2  ;;  %v366_v53 = vpop.f32.mrf.mxu0 }
  0xdf   :  { %v6205_v50 = vadd.f32 %v662_v46, %v363_v42  ;;  %v805_v52 = vpop.f32.mrf.mxu3  ;;  %v514_v56 = vpop.f32.mrf.mxu1 }
  0xe0   :  { %v6207_v55 = vadd.f32 %v805_v52, %v511_v45 }
  0xe1   :  { %4432 = vmatmul.msk.bf16.gmra.mxu0 %vm255_vm1, %v6203_v49 }
  0xe2   :  { %4464 = vmatmul.msk.bf16.gmra.mxu1 %vm255_vm1, %v6203_v49 }
  0xe3   :  { %4500 = vmatmul.msk.bf16.gmra.mxu2 %vm255_vm1, %v6182_v24 }
  0xe4   :  { %4532 = vmatmul.msk.bf16.gmra.mxu3 %vm255_vm1, %v6182_v24 }
  0xe6   :  { %v665_v58 = vpop.f32.mrf.mxu2  ;;  %v368_v63 = vpop.f32.mrf.mxu0 }
  0xe7   :  { %v6217_v59 = vadd.f32 %v665_v58, %v366_v53  ;;  %v808_v62 = vpop.f32.mrf.mxu3  ;;  %v516_v2 = vpop.f32.mrf.mxu1 }
  0xe8   :  { %v6219_v1 = vadd.f32 %v808_v62, %v514_v56 }
  0xee   :  { %v667_v3 = vpop.f32.mrf.mxu2  ;;  %v371_v9 = vpop.f32.mrf.mxu0 }
  0xef   :  { %v6226_v6 = vadd.f32 %v667_v3, %v368_v63  ;;  %v810_v7 = vpop.f32.mrf.mxu3  ;;  %v519_v13 = vpop.f32.mrf.mxu1  ;;  %v6266_v63 = vld [vmem:[%s8066_s0 + $0x88] sm:$0xff] }
  0xf0   :  { %v6228_v10 = vadd.f32 %v810_v7, %v516_v2 }
  0xf1   :  { %4433 = vmatmul.msk.bf16.gmra.mxu0 %vm255_vm1, %v6224_v4 }
  0xf2   :  { %4465 = vmatmul.msk.bf16.gmra.mxu1 %vm255_vm1, %v6224_v4 }
  0xf3   :  { %4501 = vmatmul.msk.bf16.gmra.mxu2 %vm255_vm1, %v6203_v49 }
  0xf4   :  { %4533 = vmatmul.msk.bf16.gmra.mxu3 %vm255_vm1, %v6203_v49 }
  0xf6   :  { %v670_v14 = vpop.f32.mrf.mxu2  ;;  %v373_v19 = vpop.f32.mrf.mxu0 }
  0xf7   :  { %v6238_v16 = vadd.f32 %v670_v14, %v371_v9  ;;  %v813_v17 = vpop.f32.mrf.mxu3  ;;  %v521_v22 = vpop.f32.mrf.mxu1 }
  0xf8   :  { %v6240_v20 = vadd.f32 %v813_v17, %v519_v13 }
  0xfe   :  { %v672_v23 = vpop.f32.mrf.mxu2  ;;  %v376_v38 = vpop.f32.mrf.mxu0 }
  0xff   :  { %v6247_v27 = vadd.f32 %v672_v23, %v373_v19  ;;  %v815_v29 = vpop.f32.mrf.mxu3  ;;  %v524_v42 = vpop.f32.mrf.mxu1 }
 0x100   :  { %v6249_v40 = vadd.f32 %v815_v29, %v521_v22 }
 0x101   :  { %4434 = vmatmul.msk.bf16.gmra.mxu0 %vm255_vm1, %v6245_v26 }
 0x102   :  { %4466 = vmatmul.msk.bf16.gmra.mxu1 %vm255_vm1, %v6245_v26 }
 0x103   :  { %4502 = vmatmul.msk.bf16.gmra.mxu2 %vm255_vm1, %v6224_v4 }
 0x104   :  { %4534 = vmatmul.msk.bf16.gmra.mxu3 %vm255_vm1, %v6224_v4 }
 0x106   :  { %v675_v45 = vpop.f32.mrf.mxu2  ;;  %v378_v53 = vpop.f32.mrf.mxu0 }
 0x107   :  { %v6259_v46 = vadd.f32 %v675_v45, %v376_v38  ;;  %v818_v52 = vpop.f32.mrf.mxu3  ;;  %v526_v58 = vpop.f32.mrf.mxu1 }
 0x108   :  { %v6261_v56 = vadd.f32 %v818_v52, %v524_v42  ;;  %v6287_v42 = vld [vmem:[%s8066_s0 + $0x90] sm:$0xff] }
 0x109   :  { %8094 = vst [vmem:[#allocation11_spill] sm:$0xff] %v6287_v42 }
 0x10e   :  { %v677_v62 = vpop.f32.mrf.mxu2  ;;  %v381_v7 = vpop.f32.mrf.mxu0 }
 0x10f   :  { %v6268_v2 = vadd.f32 %v677_v62, %v378_v53  ;;  %v820_v3 = vpop.f32.mrf.mxu3  ;;  %v529_v13 = vpop.f32.mrf.mxu1 }
 0x110   :  { %v6270_v9 = vadd.f32 %v820_v3, %v526_v58 }
 0x111   :  { %8090 = vst [vmem:[#allocation7_spill] sm:$0xff] %v6268_v2  ;;  %4435 = vmatmul.msk.bf16.gmra.mxu0 %vm255_vm1, %v6266_v63 }
 0x112   :  { %8091 = vst [vmem:[#allocation8_spill] sm:$0xff] %v6270_v9  ;;  %4467 = vmatmul.msk.bf16.gmra.mxu1 %vm255_vm1, %v6266_v63 }
 0x113   :  { %4503 = vmatmul.msk.bf16.gmra.mxu2 %vm255_vm1, %v6245_v26 }
 0x114   :  { %4535 = vmatmul.msk.bf16.gmra.mxu3 %vm255_vm1, %v6245_v26 }
 0x116   :  { %v680_v14 = vpop.f32.mrf.mxu2  ;;  %v383_v22 = vpop.f32.mrf.mxu0 }
 0x117   :  { %v6280_v17 = vadd.f32 %v680_v14, %v381_v7  ;;  %v823_v19 = vpop.f32.mrf.mxu3  ;;  %v531_v29 = vpop.f32.mrf.mxu1 }
 0x118   :  { %v6282_v23 = vadd.f32 %v823_v19, %v529_v13 }
 0x119   :  { %8092 = vst [vmem:[#allocation9_spill] sm:$0xff] %v6280_v17 }
 0x11a   :  { %8093 = vst [vmem:[#allocation10_spill] sm:$0xff] %v6282_v23 }
 0x11e   :  { %v682_v38 = vpop.f32.mrf.mxu2  ;;  %v386_v53 = vpop.f32.mrf.mxu0 }
 0x11f   :  { %v6289_v45 = vadd.f32 %v682_v38, %v383_v22  ;;  %v825_v52 = vpop.f32.mrf.mxu3  ;;  %v534_v62 = vpop.f32.mrf.mxu1  ;;  %v6308_v38 = vld [vmem:[%s8066_s0 + $0x98] sm:$0xff] }
 0x120   :  { %v6291_v58 = vadd.f32 %v825_v52, %v531_v29  ;;  %8099 = vst [vmem:[#allocation16_spill] sm:$0xff] %v6308_v38 }
 0x121   :  { %8095 = vst [vmem:[#allocation12_spill] sm:$0xff] %v6289_v45  ;;  %4436 = vmatmul.msk.bf16.gmra.mxu0 %vm255_vm1, %v6287_v42 }
 0x122   :  { %8096 = vst [vmem:[#allocation13_spill] sm:$0xff] %v6291_v58  ;;  %4468 = vmatmul.msk.bf16.gmra.mxu1 %vm255_vm1, %v6287_v42 }
 0x123   :  { %4504 = vmatmul.msk.bf16.gmra.mxu2 %vm255_vm1, %v6266_v63 }
 0x124   :  { %4536 = vmatmul.msk.bf16.gmra.mxu3 %vm255_vm1, %v6266_v63 }
 0x126   :  { %v685_v3 = vpop.f32.mrf.mxu2  ;;  %v388_v14 = vpop.f32.mrf.mxu0 }
 0x127   :  { %v6301_v7 = vadd.f32 %v685_v3, %v386_v53  ;;  %v828_v13 = vpop.f32.mrf.mxu3  ;;  %v536_v22 = vpop.f32.mrf.mxu1  ;;  %v4629_v53 = vld [vmem:[%s8067_s1 + $0x38] sm:$0xf] }
 0x128   :  { %v6303_v19 = vadd.f32 %v828_v13, %v534_v62  ;;  %v5585_v62 = vld [vmem:[%s8067_s1 + $0x38] sm:$0x30]  ;;  %v4661_v3 = vld [vmem:[#allocation4 + $0x38] sm:$0xf] }
 0x129   :  { %8097 = vst [vmem:[#allocation14_spill] sm:$0xff] %v6301_v7  ;;  %v4630_v13 = vor.u32 %v5585_v62, %v4629_v53 }
 0x12a   :  { %8098 = vst [vmem:[#allocation15_spill] sm:$0xff] %v6303_v19  ;;  %v5587_v19 = vld [vmem:[#allocation4 + $0x38] sm:$0x30] }
 0x12e   :  { %v687_v29 = vpop.f32.mrf.mxu2  ;;  %v391_v45 = vpop.f32.mrf.mxu0 }
 0x12f   :  { %v6310_v52 = vadd.f32 %v687_v29, %v388_v14  ;;  %v830_v58 = vpop.f32.mrf.mxu3  ;;  %v539_v17 = vpop.f32.mrf.mxu1  ;;  %v4662_v14 = vor.u32 %v5587_v19, %v4661_v3 }
 0x130   :  { %v6312_v23 = vadd.f32 %v830_v58, %v536_v22  ;;  %v1328_v58 = vsel %vm328_vm0, %v4630_v13, 0  ;;  %v6337_v13 = vld [vmem:[%s8066_s0 + $0xa0] sm:$0xff] }
 0x131   :  { %8100 = vst [vmem:[#allocation17_spill] sm:$0xff] %v6310_v52  ;;  %4437 = vmatmul.msk.bf16.gmra.mxu0 %vm255_vm1, %v6308_v38  ;;  %1336 = vmatpush.bf16.msrb.mxu2 %v1328_v58  ;;  %v1476_v22 = vsel %vm328_vm0, %v4662_v14, 0 }
 0x132   :  { %8101 = vst [vmem:[#allocation18_spill] sm:$0xff] %v6312_v23  ;;  %4469 = vmatmul.msk.bf16.gmra.mxu1 %vm255_vm1, %v6308_v38  ;;  %1484 = vmatpush.bf16.msrb.mxu3 %v1476_v22 }
 0x133   :  { %4505 = vmatmul.msk.bf16.gmra.mxu2 %vm255_vm1, %v6287_v42  ;;  %8104 = vst [vmem:[#allocation21_spill] sm:$0xff] %v6337_v13 }
 0x134   :  { %4537 = vmatmul.msk.bf16.gmra.mxu3 %vm255_vm1, %v6287_v42 }
 0x136   :  { %v690_v29 = vpop.f32.mrf.mxu2  ;;  %v393_v19 = vpop.f32.mrf.mxu0 }
 0x137   :  { %v6330_v53 = vadd.f32 %v690_v29, %v391_v45  ;;  %v833_v62 = vpop.f32.mrf.mxu3  ;;  %v541_v23 = vpop.f32.mrf.mxu1 }
 0x138   :  { %v6332_v3 = vadd.f32 %v833_v62, %v539_v17 }
 0x139   :  { %8102 = vst [vmem:[#allocation19_spill] sm:$0xff] %v6330_v53 }
 0x13a   :  { %8103 = vst [vmem:[#allocation20_spill] sm:$0xff] %v6332_v3 }
 0x13e   :  { %v692_v52 = vpop.f32.mrf.mxu2  ;;  %v396_v9 = vpop.f32.mrf.mxu0 }
 0x13f   :  { %v6339_v7 = vadd.f32 %v692_v52, %v393_v19  ;;  %v835_v58 = vpop.f32.mrf.mxu3  ;;  %v544_v22 = vpop.f32.mrf.mxu1 }
 0x140   :  { %v6341_v14 = vadd.f32 %v835_v58, %v541_v23  ;;  %v6358_v58 = vld [vmem:[%s8066_s0 + $0xa8] sm:$0xff] }
 0x141   :  { %8105 = vst [vmem:[#allocation22_spill] sm:$0xff] %v6339_v7  ;;  %4438 = vmatmul.msk.bf16.gmra.mxu0 %vm255_vm1, %v6337_v13 }
 0x142   :  { %8106 = vst [vmem:[#allocation23_spill] sm:$0xff] %v6341_v14  ;;  %4470 = vmatmul.msk.bf16.gmra.mxu1 %vm255_vm1, %v6337_v13 }
 0x143   :  { %4506 = vmatmul.msk.bf16.gmra.mxu2 %vm255_vm1, %v6308_v38  ;;  %8109 = vst [vmem:[#allocation26_spill] sm:$0xff] %v6358_v58 }
 0x144   :  { %4538 = vmatmul.msk.bf16.gmra.mxu3 %vm255_vm1, %v6308_v38 }
 0x146   :  { %v695_v17 = vpop.f32.mrf.mxu2  ;;  %v398_v29 = vpop.f32.mrf.mxu0 }
 0x147   :  { %v6351_v45 = vadd.f32 %v695_v17, %v396_v9  ;;  %v838_v52 = vpop.f32.mrf.mxu3  ;;  %v546_v62 = vpop.f32.mrf.mxu1 }
 0x148   :  { %v6353_v23 = vadd.f32 %v838_v52, %v544_v22 }
 0x149   :  { %8107 = vst [vmem:[#allocation24_spill] sm:$0xff] %v6351_v45 }
 0x14a   :  { %8108 = vst [vmem:[#allocation25_spill] sm:$0xff] %v6353_v23 }
 0x14e   :  { %v697_v19 = vpop.f32.mrf.mxu2  ;;  %v401_v3 = vpop.f32.mrf.mxu0 }
 0x14f   :  { %v6360_v14 = vadd.f32 %v697_v19, %v398_v29  ;;  %v840_v7 = vpop.f32.mrf.mxu3  ;;  %v549_v38 = vpop.f32.mrf.mxu1  ;;  %v6379_v19 = vld [vmem:[%s8066_s0 + $0xb0] sm:$0xff] }
 0x150   :  { %v6362_v53 = vadd.f32 %v840_v7, %v546_v62  ;;  %8114 = vst [vmem:[#allocation31_spill] sm:$0xff] %v6379_v19 }
 0x151   :  { %8110 = vst [vmem:[#allocation27_spill] sm:$0xff] %v6360_v14  ;;  %4439 = vmatmul.msk.bf16.gmra.mxu0 %vm255_vm1, %v6358_v58 }
 0x152   :  { %8111 = vst [vmem:[#allocation28_spill] sm:$0xff] %v6362_v53  ;;  %4471 = vmatmul.msk.bf16.gmra.mxu1 %vm255_vm1, %v6358_v58 }
 0x153   :  { %4507 = vmatmul.msk.bf16.gmra.mxu2 %vm255_vm1, %v6337_v13 }
 0x154   :  { %4539 = vmatmul.msk.bf16.gmra.mxu3 %vm255_vm1, %v6337_v13 }
 0x156   :  { %v700_v9 = vpop.f32.mrf.mxu2  ;;  %v403_v52 = vpop.f32.mrf.mxu0 }
 0x157   :  { %v6372_v22 = vadd.f32 %v700_v9, %v401_v3  ;;  %v843_v17 = vpop.f32.mrf.mxu3  ;;  %v551_v29 = vpop.f32.mrf.mxu1 }
 0x158   :  { %v6374_v7 = vadd.f32 %v843_v17, %v549_v38 }
 0x159   :  { %8112 = vst [vmem:[#allocation29_spill] sm:$0xff] %v6372_v22 }
 0x15a   :  { %8113 = vst [vmem:[#allocation30_spill] sm:$0xff] %v6374_v7 }
 0x15e   :  { %v702_v62 = vpop.f32.mrf.mxu2  ;;  %v406_v23 = vpop.f32.mrf.mxu0 }
 0x15f   :  { %v6381_v53 = vadd.f32 %v702_v62, %v403_v52  ;;  %v845_v14 = vpop.f32.mrf.mxu3  ;;  %v554_v13 = vpop.f32.mrf.mxu1  ;;  %v6400_v62 = vld [vmem:[%s8066_s0 + $0xb8] sm:$0xff] }
 0x160   :  { %v6383_v45 = vadd.f32 %v845_v14, %v551_v29 }
 0x161   :  { %8115 = vst [vmem:[#allocation32_spill] sm:$0xff] %v6381_v53  ;;  %4440 = vmatmul.msk.bf16.gmra.mxu0 %vm255_vm1, %v6379_v19 }
 0x162   :  { %8116 = vst [vmem:[#allocation33_spill] sm:$0xff] %v6383_v45  ;;  %4472 = vmatmul.msk.bf16.gmra.mxu1 %vm255_vm1, %v6379_v19 }
 0x163   :  { %4508 = vmatmul.msk.bf16.gmra.mxu2 %vm255_vm1, %v6358_v58 }
 0x164   :  { %4540 = vmatmul.msk.bf16.gmra.mxu3 %vm255_vm1, %v6358_v58 }
 0x166   :  { %v705_v38 = vpop.f32.mrf.mxu2  ;;  %v408_v17 = vpop.f32.mrf.mxu0 }
 0x167   :  { %v6393_v3 = vadd.f32 %v705_v38, %v406_v23  ;;  %v848_v9 = vpop.f32.mrf.mxu3  ;;  %v556_v52 = vpop.f32.mrf.mxu1  ;;  %v5584_v23 = vld [vmem:[%s8067_s1 + $0x30] sm:$0xff] }
 0x168   :  { %v6395_v14 = vadd.f32 %v848_v9, %v554_v13  ;;  %v5586_v38 = vld [vmem:[#allocation4 + $0x30] sm:$0xff]  ;;  %1337 = vmatpush.bf16.msrb.mxu2 %v5584_v23  ;;  %v5589_v9 = vld [vmem:[%s8067_s1 + $0x48] sm:$0x30] }
 0x169   :  { %8117 = vst [vmem:[#allocation34_spill] sm:$0xff] %v6393_v3  ;;  %1485 = vmatpush.bf16.msrb.mxu3 %v5586_v38 }
 0x16a   :  { %8118 = vst [vmem:[#allocation35_spill] sm:$0xff] %v6395_v14 }
 0x16e   :  { %v707_v29 = vpop.f32.mrf.mxu2  ;;  %v411_v7 = vpop.f32.mrf.mxu0 }
 0x16f   :  { %v6402_v45 = vadd.f32 %v707_v29, %v408_v17  ;;  %v850_v53 = vpop.f32.mrf.mxu3  ;;  %v559_v13 = vpop.f32.mrf.mxu1  ;;  %v4733_v17 = vld [vmem:[#allocation4 + $0x48] sm:$0xf]  ;;  %v5591_v29 = vld [vmem:[#allocation4 + $0x48] sm:$0x30] }
 0x170   :  { %v6407_v3 = vadd.f32 %v850_v53, %v556_v52  ;;  %v4701_v53 = vld [vmem:[%s8067_s1 + $0x48] sm:$0xf]  ;;  %v4734_v38 = vor.u32 %v5591_v29, %v4733_v17 }
 0x171   :  { %8119 = vst [vmem:[#allocation36_spill] sm:$0xff] %v6402_v45  ;;  %4441 = vmatmul.msk.bf16.gmra.mxu0 %vm255_vm1, %v6400_v62  ;;  %v4702_v52 = vor.u32 %v5589_v9, %v4701_v53  ;;  %v6432_v53 = vld [vmem:[%s8066_s0 + $0xc0] sm:$0xff] }
 0x172   :  { %8120 = vst [vmem:[#allocation37_spill] sm:$0xff] %v6407_v3  ;;  %4473 = vmatmul.msk.bf16.gmra.mxu1 %vm255_vm1, %v6400_v62  ;;  %v1876_v2 = vsel %vm328_vm0, %v4734_v38, 0 }
 0x173   :  { %4509 = vmatmul.msk.bf16.gmra.mxu2 %vm255_vm1, %v6379_v19  ;;  %v1728_v22 = vsel %vm328_vm0, %v4702_v52, 0  ;;  %1884 = vmatpush.bf16.msra.mxu1 %v1876_v2 }
 0x174   :  { %4541 = vmatmul.msk.bf16.gmra.mxu3 %vm255_vm1, %v6379_v19  ;;  %1736 = vmatpush.bf16.msra.mxu0 %v1728_v22 }
 0x176   :  { %v710_v23 = vpop.f32.mrf.mxu2  ;;  %v413_v14 = vpop.f32.mrf.mxu0 }
 0x177   :  { %v6423_v3 = vadd.f32 %v710_v23, %v411_v7  ;;  %v853_v45 = vpop.f32.mrf.mxu3  ;;  %v561_v58 = vpop.f32.mrf.mxu1 }
 0x178   :  { %v6426_v19 = vadd.f32 %v853_v45, %v559_v13 }
 0x17e   :  { %v712_v42 = vpop.f32.mrf.mxu2  ;;  %v416_v17 = vpop.f32.mrf.mxu0 }
 0x17f   :  { %v6434_v9 = vadd.f32 %v712_v42, %v413_v14  ;;  %v855_v7 = vpop.f32.mrf.mxu3  ;;  %v564_v52 = vpop.f32.mrf.mxu1 }
 0x180   :  { %v6436_v29 = vadd.f32 %v855_v7, %v561_v58 }
 0x181   :  { %8121 = vst [vmem:[#allocation38_spill] sm:$0xff] %v6434_v9  ;;  %4442 = vmatmul.msk.bf16.gmra.mxu0 %vm255_vm1, %v6432_v53 }
 0x182   :  { %8122 = vst [vmem:[#allocation39_spill] sm:$0xff] %v6436_v29  ;;  %4474 = vmatmul.msk.bf16.gmra.mxu1 %vm255_vm1, %v6432_v53 }
 0x183   :  { %4510 = vmatmul.msk.bf16.gmra.mxu2 %vm255_vm1, %v6400_v62 }
 0x184   :  { %4542 = vmatmul.msk.bf16.gmra.mxu3 %vm255_vm1, %v6400_v62 }
 0x186   :  { %v715_v2 = vpop.f32.mrf.mxu2  ;;  %v418_v22 = vpop.f32.mrf.mxu0 }
 0x187   :  { %v6446_v42 = vadd.f32 %v715_v2, %v416_v17  ;;  %v858_v45 = vpop.f32.mrf.mxu3  ;;  %v566_v14 = vpop.f32.mrf.mxu1 }
 0x188   :  { %v6448_v58 = vadd.f32 %v858_v45, %v564_v52 }
 0x18a   :  { %8123 = vst [vmem:[#allocation40_spill] sm:$0xff] %v6448_v58 }
 0x18e   :  { %v717_v13 = vpop.f32.mrf.mxu2  ;;  %v421_v7 = vpop.f32.mrf.mxu0 }
 0x18f   :  { %v6450_v23 = vadd.f32 %v717_v13, %v418_v22  ;;  %v860_v38 = vpop.f32.mrf.mxu3  ;;  %v569_v9 = vpop.f32.mrf.mxu1 }
 0x190   :  { %v6452_v29 = vadd.f32 %v860_v38, %v566_v14 }
 0x191   :  { %8124 = vst [vmem:[#allocation41_spill] sm:$0xff] %v6450_v23  ;;  %4559 = vmatmul.msk.bf16.vlgmr.msrb.gmra.mxu0 %vm255_vm1, %v6010_v30 }
 0x192   :  { %8125 = vst [vmem:[#allocation42_spill] sm:$0xff] %v6452_v29  ;;  %4591 = vmatmul.msk.bf16.vlgmr.msrb.gmra.mxu1 %vm255_vm1, %v6010_v30 }
 0x193   :  { %4631 = vmatmul.msk.bf16.vlgmr.msrb.gmra.mxu2 %vm255_vm1, %v6021_v31 }
 0x194   :  { %4663 = vmatmul.msk.bf16.vlgmr.msrb.gmra.mxu3 %vm255_vm1, %v6021_v31 }
 0x196   :  { %v720_v17 = vpop.f32.mrf.mxu2  ;;  %v423_v45 = vpop.f32.mrf.mxu0 }
 0x197   :  { %v6462_v52 = vadd.f32 %v720_v17, %v421_v7  ;;  %v863_v2 = vpop.f32.mrf.mxu3  ;;  %v571_v14 = vpop.f32.mrf.mxu1 }
 0x198   :  { %v6464_v22 = vadd.f32 %v863_v2, %v569_v9 }
 0x19a   :  { %8126 = vst [vmem:[#allocation43_spill] sm:$0xff] %v6464_v22 }
 0x19e   :  { %v722_v13 = vpop.f32.mrf.mxu2  ;;  %v426_v23 = vpop.f32.mrf.mxu0 }
 0x19f   :  { %v6466_v38 = vadd.f32 %v722_v13, %v423_v45  ;;  %v865_v29 = vpop.f32.mrf.mxu3  ;;  %v574_v58 = vpop.f32.mrf.mxu1 }
 0x1a0   :  { %v6468_v30 = vadd.f32 %v865_v29, %v571_v14 }
 0x1a1   :  { %8127 = vst [vmem:[#allocation44_spill] sm:$0xff] %v6466_v38  ;;  %4560 = vmatmul.msk.bf16.gmra.mxu0 %vm255_vm1, %v6021_v31 }
 0x1a2   :  { %8128 = vst [vmem:[#allocation45_spill] sm:$0xff] %v6468_v30  ;;  %4592 = vmatmul.msk.bf16.gmra.mxu1 %vm255_vm1, %v6021_v31 }
 0x1a3   :  { %4632 = vmatmul.msk.bf16.gmra.mxu2 %vm255_vm1, %v6034_v32 }
 0x1a4   :  { %4664 = vmatmul.msk.bf16.gmra.mxu3 %vm255_vm1, %v6034_v32 }
 0x1a6   :  { %v725_v9 = vpop.f32.mrf.mxu2  ;;  %v428_v2 = vpop.f32.mrf.mxu0 }
 0x1a7   :  { %v6478_v7 = vadd.f32 %v725_v9, %v426_v23  ;;  %v868_v17 = vpop.f32.mrf.mxu3  ;;  %v576_v45 = vpop.f32.mrf.mxu1 }
 0x1a8   :  { %v6480_v29 = vadd.f32 %v868_v17, %v574_v58 }
 0x1aa   :  { %8129 = vst [vmem:[#allocation46_spill] sm:$0xff] %v6480_v29 }
 0x1ae   :  { %v727_v14 = vpop.f32.mrf.mxu2  ;;  %v431_v38 = vpop.f32.mrf.mxu0 }
 0x1af   :  { %v6482_v13 = vadd.f32 %v727_v14, %v428_v2  ;;  %v870_v30 = vpop.f32.mrf.mxu3  ;;  %v579_v22 = vpop.f32.mrf.mxu1 }
 0x1b0   :  { %v6484_v31 = vadd.f32 %v870_v30, %v576_v45 }
 0x1b1   :  { %8130 = vst [vmem:[#allocation47_spill] sm:$0xff] %v6482_v13  ;;  %4561 = vmatmul.msk.bf16.gmra.mxu0 %vm255_vm1, %v6034_v32 }
 0x1b2   :  { %8131 = vst [vmem:[#allocation48_spill] sm:$0xff] %v6484_v31  ;;  %4593 = vmatmul.msk.bf16.gmra.mxu1 %vm255_vm1, %v6034_v32 }
 0x1b3   :  { %4633 = vmatmul.msk.bf16.gmra.mxu2 %vm255_vm1, %v6047_v33 }
 0x1b4   :  { %4665 = vmatmul.msk.bf16.gmra.mxu3 %vm255_vm1, %v6047_v33 }
 0x1b6   :  { %v730_v58 = vpop.f32.mrf.mxu2  ;;  %v433_v17 = vpop.f32.mrf.mxu0 }
 0x1b7   :  { %v6494_v23 = vadd.f32 %v730_v58, %v431_v38  ;;  %v873_v9 = vpop.f32.mrf.mxu3  ;;  %v581_v2 = vpop.f32.mrf.mxu1 }
 0x1b8   :  { %v6496_v30 = vadd.f32 %v873_v9, %v579_v22 }
 0x1ba   :  { %8132 = vst [vmem:[#allocation49_spill] sm:$0xff] %v6496_v30 }
 0x1be   :  { %v732_v45 = vpop.f32.mrf.mxu2  ;;  %v436_v13 = vpop.f32.mrf.mxu0 }
 0x1bf   :  { %v6498_v14 = vadd.f32 %v732_v45, %v433_v17  ;;  %v875_v31 = vpop.f32.mrf.mxu3  ;;  %v584_v29 = vpop.f32.mrf.mxu1 }
 0x1c0   :  { %v6500_v32 = vadd.f32 %v875_v31, %v581_v2 }
 0x1c1   :  { %8133 = vst [vmem:[#allocation50_spill] sm:$0xff] %v6498_v14  ;;  %4562 = vmatmul.msk.bf16.gmra.mxu0 %vm255_vm1, %v6047_v33 }
 0x1c2   :  { %8134 = vst [vmem:[#allocation51_spill] sm:$0xff] %v6500_v32  ;;  %4594 = vmatmul.msk.bf16.gmra.mxu1 %vm255_vm1, %v6047_v33 }
 0x1c3   :  { %4634 = vmatmul.msk.bf16.gmra.mxu2 %vm255_vm1, %v6060_v34 }
 0x1c4   :  { %4666 = vmatmul.msk.bf16.gmra.mxu3 %vm255_vm1, %v6060_v34 }
 0x1c6   :  { %v735_v22 = vpop.f32.mrf.mxu2  ;;  %v438_v9 = vpop.f32.mrf.mxu0 }
 0x1c7   :  { %v6510_v38 = vadd.f32 %v735_v22, %v436_v13  ;;  %v878_v58 = vpop.f32.mrf.mxu3  ;;  %v586_v17 = vpop.f32.mrf.mxu1 }
 0x1c8   :  { %v6512_v31 = vadd.f32 %v878_v58, %v584_v29 }
 0x1ca   :  { %8135 = vst [vmem:[#allocation52_spill] sm:$0xff] %v6512_v31 }
 0x1ce   :  { %v737_v2 = vpop.f32.mrf.mxu2  ;;  %v441_v14 = vpop.f32.mrf.mxu0 }
 0x1cf   :  { %v6514_v45 = vadd.f32 %v737_v2, %v438_v9  ;;  %v880_v32 = vpop.f32.mrf.mxu3  ;;  %v589_v30 = vpop.f32.mrf.mxu1 }
 0x1d0   :  { %v6516_v33 = vadd.f32 %v880_v32, %v586_v17 }
 0x1d1   :  { %8136 = vst [vmem:[#allocation53_spill] sm:$0xff] %v6514_v45  ;;  %4563 = vmatmul.msk.bf16.gmra.mxu0 %vm255_vm1, %v6060_v34 }
 0x1d2   :  { %8137 = vst [vmem:[#allocation54_spill] sm:$0xff] %v6516_v33  ;;  %4595 = vmatmul.msk.bf16.gmra.mxu1 %vm255_vm1, %v6060_v34 }
 0x1d3   :  { %4635 = vmatmul.msk.bf16.gmra.mxu2 %vm255_vm1, %v6073_v35 }
 0x1d4   :  { %4667 = vmatmul.msk.bf16.gmra.mxu3 %vm255_vm1, %v6073_v35 }
 0x1d6   :  { %v740_v29 = vpop.f32.mrf.mxu2  ;;  %v443_v58 = vpop.f32.mrf.mxu0 }
 0x1d7   :  { %v6526_v13 = vadd.f32 %v740_v29, %v441_v14  ;;  %v883_v22 = vpop.f32.mrf.mxu3  ;;  %v591_v9 = vpop.f32.mrf.mxu1 }
 0x1d8   :  { %v6528_v32 = vadd.f32 %v883_v22, %v589_v30 }
 0x1da   :  { %8138 = vst [vmem:[#allocation55_spill] sm:$0xff] %v6528_v32 }
 0x1de   :  { %v742_v17 = vpop.f32.mrf.mxu2  ;;  %v446_v45 = vpop.f32.mrf.mxu0 }
 0x1df   :  { %v6530_v2 = vadd.f32 %v742_v17, %v443_v58  ;;  %v885_v33 = vpop.f32.mrf.mxu3  ;;  %v594_v31 = vpop.f32.mrf.mxu1 }
 0x1e0   :  { %v6532_v34 = vadd.f32 %v885_v33, %v591_v9 }
 0x1e1   :  { %8139 = vst [vmem:[#allocation56_spill] sm:$0xff] %v6530_v2  ;;  %4564 = vmatmul.msk.bf16.gmra.mxu0 %vm255_vm1, %v6073_v35 }
 0x1e2   :  { %8140 = vst [vmem:[#allocation57_spill] sm:$0xff] %v6532_v34  ;;  %4596 = vmatmul.msk.bf16.gmra.mxu1 %vm255_vm1, %v6073_v35 }
 0x1e3   :  { %4636 = vmatmul.msk.bf16.gmra.mxu2 %vm255_vm1, %v6086_v36 }
 0x1e4   :  { %4668 = vmatmul.msk.bf16.gmra.mxu3 %vm255_vm1, %v6086_v36 }
 0x1e6   :  { %v745_v30 = vpop.f32.mrf.mxu2  ;;  %v448_v22 = vpop.f32.mrf.mxu0 }
 0x1e7   :  { %v6542_v14 = vadd.f32 %v745_v30, %v446_v45  ;;  %v888_v29 = vpop.f32.mrf.mxu3  ;;  %v596_v58 = vpop.f32.mrf.mxu1 }
 0x1e8   :  { %v6544_v33 = vadd.f32 %v888_v29, %v594_v31 }
 0x1e9   :  { %8141 = vst [vmem:[#allocation58_spill] sm:$0xff] %v6542_v14 }
 0x1ea   :  { %8142 = vst [vmem:[#allocation59_spill] sm:$0xff] %v6544_v33 }
 0x1ee   :  { %v747_v9 = vpop.f32.mrf.mxu2  ;;  %v451_v2 = vpop.f32.mrf.mxu0 }
 0x1ef   :  { %v6546_v17 = vadd.f32 %v747_v9, %v448_v22  ;;  %v890_v34 = vpop.f32.mrf.mxu3  ;;  %v599_v32 = vpop.f32.mrf.mxu1 }
 0x1f0   :  { %v6548_v35 = vadd.f32 %v890_v34, %v596_v58 }
 0x1f1   :  { %8143 = vst [vmem:[#allocation60_spill] sm:$0xff] %v6546_v17  ;;  %4565 = vmatmul.msk.bf16.gmra.mxu0 %vm255_vm1, %v6086_v36 }
 0x1f2   :  { %8144 = vst [vmem:[#allocation61_spill] sm:$0xff] %v6548_v35  ;;  %4597 = vmatmul.msk.bf16.gmra.mxu1 %vm255_vm1, %v6086_v36 }
 0x1f3   :  { %4637 = vmatmul.msk.bf16.gmra.mxu2 %vm255_vm1, %v6099_v37 }
 0x1f4   :  { %4669 = vmatmul.msk.bf16.gmra.mxu3 %vm255_vm1, %v6099_v37 }
 0x1f6   :  { %v750_v31 = vpop.f32.mrf.mxu2  ;;  %v453_v29 = vpop.f32.mrf.mxu0 }
 0x1f7   :  { %v6558_v45 = vadd.f32 %v750_v31, %v451_v2  ;;  %v893_v30 = vpop.f32.mrf.mxu3  ;;  %v601_v22 = vpop.f32.mrf.mxu1 }
 0x1f8   :  { %v6560_v34 = vadd.f32 %v893_v30, %v599_v32 }
 0x1f9   :  { %8145 = vst [vmem:[#allocation62_spill] sm:$0xff] %v6558_v45 }
 0x1fa   :  { %8146 = vst [vmem:[#allocation63_spill] sm:$0xff] %v6560_v34 }
 0x1fe   :  { %v752_v58 = vpop.f32.mrf.mxu2  ;;  %v456_v17 = vpop.f32.mrf.mxu0 }
 0x1ff   :  { %v6562_v9 = vadd.f32 %v752_v58, %v453_v29  ;;  %v895_v35 = vpop.f32.mrf.mxu3  ;;  %v604_v33 = vpop.f32.mrf.mxu1 }
 0x200   :  { %v6564_v36 = vadd.f32 %v895_v35, %v601_v22 }
 0x201   :  { %8147 = vst [vmem:[#allocation64_spill] sm:$0xff] %v6562_v9  ;;  %4566 = vmatmul.msk.bf16.gmra.mxu0 %vm255_vm1, %v6099_v37 }
 0x202   :  { %8148 = vst [vmem:[#allocation65_spill] sm:$0xff] %v6564_v36  ;;  %4598 = vmatmul.msk.bf16.gmra.mxu1 %vm255_vm1, %v6099_v37 }
 0x203   :  { %4638 = vmatmul.msk.bf16.gmra.mxu2 %vm255_vm1, %v6116_v47 }
 0x204   :  { %4670 = vmatmul.msk.bf16.gmra.mxu3 %vm255_vm1, %v6116_v47 }
 0x206   :  { %v755_v32 = vpop.f32.mrf.mxu2  ;;  %v458_v30 = vpop.f32.mrf.mxu0 }
 0x207   :  { %v6574_v2 = vadd.f32 %v755_v32, %v456_v17  ;;  %v898_v31 = vpop.f32.mrf.mxu3  ;;  %v606_v29 = vpop.f32.mrf.mxu1 }
 0x208   :  { %v6576_v35 = vadd.f32 %v898_v31, %v604_v33 }
 0x20e   :  { %v757_v22 = vpop.f32.mrf.mxu2  ;;  %v939_v9 = vpop.f32.mrf.mxu0 }
 0x20f   :  { %v6578_v58 = vadd.f32 %v757_v22, %v458_v30  ;;  %v900_v36 = vpop.f32.mrf.mxu3  ;;  %v1207_v34 = vadd.f32 %v939_v9, %v6109_v41  ;;  %v1087_v45 = vpop.f32.mrf.mxu1 }
 0x210   :  { %v6580_v37 = vadd.f32 %v900_v36, %v606_v29  ;;  %v1255_v14 = vadd.f32 %v1087_v45, %v6111_v44 }
 0x211   :  { %4567 = vmatmul.msk.bf16.gmra.mxu0 %vm255_vm1, %v6116_v47 }
 0x212   :  { %8149 = vst [vmem:[#allocation66_spill] sm:$0xff] %v6580_v37  ;;  %4599 = vmatmul.msk.bf16.gmra.mxu1 %vm255_vm1, %v6116_v47 }
 0x213   :  { %4639 = vmatmul.msk.bf16.gmra.mxu2 %vm255_vm1, %v6137_v60 }
 0x214   :  { %4671 = vmatmul.msk.bf16.gmra.mxu3 %vm255_vm1, %v6137_v60 }
 0x216   :  { %v1339_v33 = vpop.f32.mrf.mxu2  ;;  %v941_v41 = vpop.f32.mrf.mxu0 }
 0x217   :  { %v6592_v17 = vadd.f32 %v1339_v33, %v1207_v34  ;;  %v1487_v36 = vpop.f32.mrf.mxu3  ;;  %v1208_v44 = vadd.f32 %v941_v41, %v6118_v48  ;;  %v1089_v45 = vpop.f32.mrf.mxu1 }
 0x218   :  { %v6594_v9 = vadd.f32 %v1487_v36, %v1255_v14  ;;  %v1256_v32 = vadd.f32 %v1089_v45, %v6120_v51 }
 0x21e   :  { %v1341_v31 = vpop.f32.mrf.mxu2  ;;  %v944_v29 = vpop.f32.mrf.mxu0 }
 0x21f   :  { %v6598_v47 = vadd.f32 %v1341_v31, %v1208_v44  ;;  %v1489_v30 = vpop.f32.mrf.mxu3  ;;  %v1209_v37 = vadd.f32 %v944_v29, %v6130_v54  ;;  %v1092_v34 = vpop.f32.mrf.mxu1 }
 0x220   :  { %v6600_v22 = vadd.f32 %v1489_v30, %v1256_v32  ;;  %v1257_v33 = vadd.f32 %v1092_v34, %v6132_v57 }
 0x221   :  { %4568 = vmatmul.msk.bf16.gmra.mxu0 %vm255_vm1, %v6137_v60 }
 0x222   :  { %4600 = vmatmul.msk.bf16.gmra.mxu1 %vm255_vm1, %v6137_v60 }
 0x223   :  { %4640 = vmatmul.msk.bf16.gmra.mxu2 %vm255_vm1, %v6161_v11 }
 0x224   :  { %4672 = vmatmul.msk.bf16.gmra.mxu3 %vm255_vm1, %v6161_v11 }
 0x226   :  { %v1344_v48 = vpop.f32.mrf.mxu2  ;;  %v946_v54 = vpop.f32.mrf.mxu0 }
 0x227   :  { %v6612_v51 = vadd.f32 %v1344_v48, %v1209_v37  ;;  %v1492_v14 = vpop.f32.mrf.mxu3  ;;  %v1210_v57 = vadd.f32 %v946_v54, %v6139_v61  ;;  %v1094_v41 = vpop.f32.mrf.mxu1  ;;  %v5588_v61 = vld [vmem:[%s8067_s1 + $0x40] sm:$0xff] }
 0x228   :  { %v6614_v36 = vadd.f32 %v1492_v14, %v1257_v33  ;;  %v1258_v44 = vadd.f32 %v1094_v41, %v6141_v0  ;;  %v5590_v0 = vld [vmem:[#allocation4 + $0x40] sm:$0xff]  ;;  %1737 = vmatpush.bf16.msra.mxu0 %v5588_v61 }
 0x229   :  { %1885 = vmatpush.bf16.msra.mxu1 %v5590_v0 }
 0x22e   :  { %v1346_v45 = vpop.f32.mrf.mxu2  ;;  %v949_v31 = vpop.f32.mrf.mxu0 }
 0x22f   :  { %v6618_v60 = vadd.f32 %v1346_v45, %v1210_v57  ;;  %v1494_v32 = vpop.f32.mrf.mxu3  ;;  %v1211_v29 = vadd.f32 %v949_v31, %v6154_v5  ;;  %v1097_v37 = vpop.f32.mrf.mxu1 }
 0x230   :  { %v6620_v30 = vadd.f32 %v1494_v32, %v1258_v44  ;;  %v1259_v34 = vadd.f32 %v1097_v37, %v6156_v8 }
 0x231   :  { %4569 = vmatmul.msk.bf16.gmra.mxu0 %vm255_vm1, %v6161_v11 }
 0x232   :  { %4601 = vmatmul.msk.bf16.gmra.mxu1 %vm255_vm1, %v6161_v11 }
 0x233   :  { %4641 = vmatmul.msk.bf16.gmra.mxu2 %vm255_vm1, %v6182_v24 }
 0x234   :  { %4673 = vmatmul.msk.bf16.gmra.mxu3 %vm255_vm1, %v6182_v24 }
 0x236   :  { %v1349_v5 = vpop.f32.mrf.mxu2  ;;  %v951_v48 = vpop.f32.mrf.mxu0 }
 0x237   :  { %v6635_v8 = vadd.f32 %v1349_v5, %v1211_v29  ;;  %v1497_v33 = vpop.f32.mrf.mxu3  ;;  %v1212_v11 = vadd.f32 %v951_v48, %v6163_v12  ;;  %v1099_v54 = vpop.f32.mrf.mxu1 }
 0x238   :  { %v6637_v14 = vadd.f32 %v1497_v33, %v1259_v34  ;;  %v1260_v57 = vadd.f32 %v1099_v54, %v6165_v15 }
 0x23e   :  { %v1351_v41 = vpop.f32.mrf.mxu2  ;;  %v954_v32 = vpop.f32.mrf.mxu0 }
 0x23f   :  { %v6641_v44 = vadd.f32 %v1351_v41, %v1212_v11  ;;  %v1499_v45 = vpop.f32.mrf.mxu3  ;;  %v1213_v37 = vadd.f32 %v954_v32, %v6175_v18  ;;  %v1102_v29 = vpop.f32.mrf.mxu1 }
 0x240   :  { %v6643_v31 = vadd.f32 %v1499_v45, %v1260_v57  ;;  %v1261_v61 = vadd.f32 %v1102_v29, %v6177_v21 }
 0x241   :  { %4570 = vmatmul.msk.bf16.gmra.mxu0 %vm255_vm1, %v6182_v24 }
 0x242   :  { %4602 = vmatmul.msk.bf16.gmra.mxu1 %vm255_vm1, %v6182_v24 }
 0x243   :  { %4642 = vmatmul.msk.bf16.gmra.mxu2 %vm255_vm1, %v6203_v49 }
 0x244   :  { %4674 = vmatmul.msk.bf16.gmra.mxu3 %vm255_vm1, %v6203_v49 }
 0x246   :  { %v1354_v12 = vpop.f32.mrf.mxu2  ;;  %v956_v18 = vpop.f32.mrf.mxu0 }
 0x247   :  { %v6655_v15 = vadd.f32 %v1354_v12, %v1213_v37  ;;  %v1502_v34 = vpop.f32.mrf.mxu3  ;;  %v1214_v21 = vadd.f32 %v956_v18, %v6184_v25  ;;  %v1104_v5 = vpop.f32.mrf.mxu1 }
 0x248   :  { %v6657_v0 = vadd.f32 %v1502_v34, %v1261_v61  ;;  %v1262_v33 = vadd.f32 %v1104_v5, %v6186_v28 }
 0x24e   :  { %v1356_v48 = vpop.f32.mrf.mxu2  ;;  %v959_v54 = vpop.f32.mrf.mxu0 }
 0x24f   :  { %v6661_v24 = vadd.f32 %v1356_v48, %v1214_v21  ;;  %v1504_v11 = vpop.f32.mrf.mxu3  ;;  %v1215_v41 = vadd.f32 %v959_v54, %v6196_v39  ;;  %v1107_v45 = vpop.f32.mrf.mxu1 }
 0x250   :  { %v6663_v57 = vadd.f32 %v1504_v11, %v1262_v33  ;;  %v1263_v32 = vadd.f32 %v1107_v45, %v6198_v43 }
 0x251   :  { %4571 = vmatmul.msk.bf16.gmra.mxu0 %vm255_vm1, %v6203_v49 }
 0x252   :  { %4603 = vmatmul.msk.bf16.gmra.mxu1 %vm255_vm1, %v6203_v49 }
 0x253   :  { %4643 = vmatmul.msk.bf16.gmra.mxu2 %vm255_vm1, %v6224_v4 }
 0x254   :  { %4675 = vmatmul.msk.bf16.gmra.mxu3 %vm255_vm1, %v6224_v4 }
 0x256   :  { %v1359_v25 = vpop.f32.mrf.mxu2  ;;  %v961_v39 = vpop.f32.mrf.mxu0 }
 0x257   :  { %v6675_v28 = vadd.f32 %v1359_v25, %v1215_v41  ;;  %v1507_v37 = vpop.f32.mrf.mxu3  ;;  %v1216_v43 = vadd.f32 %v961_v39, %v6205_v50  ;;  %v1109_v61 = vpop.f32.mrf.mxu1 }
 0x258   :  { %v6677_v29 = vadd.f32 %v1507_v37, %v1263_v32  ;;  %v1264_v12 = vadd.f32 %v1109_v61, %v6207_v55 }
 0x25e   :  { %v1361_v34 = vpop.f32.mrf.mxu2  ;;  %v964_v21 = vpop.f32.mrf.mxu0 }
 0x25f   :  { %v6681_v49 = vadd.f32 %v1361_v34, %v1216_v43  ;;  %v1509_v18 = vpop.f32.mrf.mxu3  ;;  %v1217_v33 = vadd.f32 %v964_v21, %v6217_v59  ;;  %v1112_v48 = vpop.f32.mrf.mxu1 }
 0x260   :  { %v6683_v5 = vadd.f32 %v1509_v18, %v1264_v12  ;;  %v1265_v11 = vadd.f32 %v1112_v48, %v6219_v1 }
 0x261   :  { %4572 = vmatmul.msk.bf16.gmra.mxu0 %vm255_vm1, %v6224_v4 }
 0x262   :  { %4604 = vmatmul.msk.bf16.gmra.mxu1 %vm255_vm1, %v6224_v4 }
 0x263   :  { %4644 = vmatmul.msk.bf16.gmra.mxu2 %vm255_vm1, %v6245_v26 }
 0x264   :  { %4676 = vmatmul.msk.bf16.gmra.mxu3 %vm255_vm1, %v6245_v26 }
 0x266   :  { %v1364_v50 = vpop.f32.mrf.mxu2  ;;  %v966_v59 = vpop.f32.mrf.mxu0 }
 0x267   :  { %v6695_v55 = vadd.f32 %v1364_v50, %v1217_v33  ;;  %v1512_v54 = vpop.f32.mrf.mxu3  ;;  %v1218_v1 = vadd.f32 %v966_v59, %v6226_v6  ;;  %v1114_v45 = vpop.f32.mrf.mxu1 }
 0x268   :  { %v6697_v41 = vadd.f32 %v1512_v54, %v1265_v11  ;;  %v1266_v32 = vadd.f32 %v1114_v45, %v6228_v10 }
 0x26e   :  { %v1366_v25 = vpop.f32.mrf.mxu2  ;;  %v969_v39 = vpop.f32.mrf.mxu0 }
 0x26f   :  { %v6701_v4 = vadd.f32 %v1366_v25, %v1218_v1  ;;  %v1514_v37 = vpop.f32.mrf.mxu3  ;;  %v1219_v61 = vadd.f32 %v969_v39, %v6238_v16  ;;  %v1117_v12 = vpop.f32.mrf.mxu1 }
 0x270   :  { %v6703_v43 = vadd.f32 %v1514_v37, %v1266_v32  ;;  %v1267_v34 = vadd.f32 %v1117_v12, %v6240_v20 }
 0x271   :  { %4573 = vmatmul.msk.bf16.gmra.mxu0 %vm255_vm1, %v6245_v26 }
 0x272   :  { %4605 = vmatmul.msk.bf16.gmra.mxu1 %vm255_vm1, %v6245_v26 }
 0x273   :  { %4645 = vmatmul.msk.bf16.gmra.mxu2 %vm255_vm1, %v6266_v63 }
 0x274   :  { %4677 = vmatmul.msk.bf16.gmra.mxu3 %vm255_vm1, %v6266_v63 }
 0x276   :  { %v1369_v6 = vpop.f32.mrf.mxu2  ;;  %v971_v16 = vpop.f32.mrf.mxu0 }
 0x277   :  { %v6715_v10 = vadd.f32 %v1369_v6, %v1219_v61  ;;  %v1517_v18 = vpop.f32.mrf.mxu3  ;;  %v1220_v20 = vadd.f32 %v971_v16, %v6247_v27  ;;  %v1119_v33 = vpop.f32.mrf.mxu1  ;;  %v8150_v27 = vld [vmem:[#allocation11_spill] sm:$0xff] }
 0x278   :  { %v6717_v21 = vadd.f32 %v1517_v18, %v1267_v34  ;;  %v1268_v48 = vadd.f32 %v1119_v33, %v6249_v40  ;;  %v8152_v34 = vld [vmem:[#allocation8_spill] sm:$0xff] }
 0x27e   :  { %v1371_v11 = vpop.f32.mrf.mxu2  ;;  %v974_v54 = vpop.f32.mrf.mxu0 }
 0x27f   :  { %v6721_v26 = vadd.f32 %v1371_v11, %v1220_v20  ;;  %v1519_v50 = vpop.f32.mrf.mxu3  ;;  %v1221_v1 = vadd.f32 %v974_v54, %v6259_v46  ;;  %v1122_v45 = vpop.f32.mrf.mxu1  ;;  %v8155_v54 = vld [vmem:[#allocation10_spill] sm:$0xff] }
 0x280   :  { %v6723_v59 = vadd.f32 %v1519_v50, %v1268_v48  ;;  %v1269_v32 = vadd.f32 %v1122_v45, %v6261_v56  ;;  %v8151_v56 = vld [vmem:[#allocation7_spill] sm:$0xff]  ;;  %v8154_v48 = vld [vmem:[#allocation9_spill] sm:$0xff]  ;;  %v8156_v45 = vld [vmem:[#allocation16_spill] sm:$0xff] }
 0x281   :  { %4574 = vmatmul.msk.bf16.gmra.mxu0 %vm255_vm1, %v6266_v63 }
 0x282   :  { %4606 = vmatmul.msk.bf16.gmra.mxu1 %vm255_vm1, %v6266_v63 }
 0x283   :  { %4646 = vmatmul.msk.bf16.gmra.mxu2 %vm255_vm1, %v8150_v27 }
 0x284   :  { %4678 = vmatmul.msk.bf16.gmra.mxu3 %vm255_vm1, %v8150_v27 }
 0x286   :  { %v1374_v40 = vpop.f32.mrf.mxu2  ;;  %v976_v46 = vpop.f32.mrf.mxu0 }
 0x287   :  { %v6735_v25 = vadd.f32 %v1374_v40, %v1221_v1  ;;  %v1522_v37 = vpop.f32.mrf.mxu3  ;;  %v1222_v61 = vadd.f32 %v976_v46, %v8151_v56  ;;  %v1124_v12 = vpop.f32.mrf.mxu1 }
 0x288   :  { %v6737_v39 = vadd.f32 %v1522_v37, %v1269_v32  ;;  %v1270_v6 = vadd.f32 %v1124_v12, %v8152_v34 }
 0x28e   :  { %v1376_v18 = vpop.f32.mrf.mxu2  ;;  %v979_v20 = vpop.f32.mrf.mxu0 }
 0x28f   :  { %v6741_v63 = vadd.f32 %v1376_v18, %v1222_v61  ;;  %v1524_v16 = vpop.f32.mrf.mxu3  ;;  %v1223_v11 = vadd.f32 %v979_v20, %v8154_v48  ;;  %v1127_v50 = vpop.f32.mrf.mxu1  ;;  %v8159_v61 = vld [vmem:[#allocation12_spill] sm:$0xff] }
 0x290   :  { %v6743_v33 = vadd.f32 %v1524_v16, %v1270_v6  ;;  %v1271_v1 = vadd.f32 %v1127_v50, %v8155_v54  ;;  %v8160_v6 = vld [vmem:[#allocation13_spill] sm:$0xff]  ;;  %v8163_v54 = vld [vmem:[#allocation14_spill] sm:$0xff] }
 0x291   :  { %4575 = vmatmul.msk.bf16.gmra.mxu0 %vm255_vm1, %v8150_v27 }
 0x292   :  { %8153 = vst [vmem:[#allocation11_spill] sm:$0xff] %v6743_v33  ;;  %4607 = vmatmul.msk.bf16.gmra.mxu1 %vm255_vm1, %v8150_v27 }
 0x293   :  { %4647 = vmatmul.msk.bf16.gmra.mxu2 %vm255_vm1, %v8156_v45 }
 0x294   :  { %4679 = vmatmul.msk.bf16.gmra.mxu3 %vm255_vm1, %v8156_v45 }
 0x296   :  { %v1379_v32 = vpop.f32.mrf.mxu2  ;;  %v981_v46 = vpop.f32.mrf.mxu0 }
 0x297   :  { %v6755_v40 = vadd.f32 %v1379_v32, %v1223_v11  ;;  %v1527_v37 = vpop.f32.mrf.mxu3  ;;  %v1224_v12 = vadd.f32 %v981_v46, %v8159_v61  ;;  %v1129_v34 = vpop.f32.mrf.mxu1  ;;  %v8164_v32 = vld [vmem:[#allocation15_spill] sm:$0xff] }
 0x298   :  { %v6757_v56 = vadd.f32 %v1527_v37, %v1271_v1  ;;  %v1272_v18 = vadd.f32 %v1129_v34, %v8160_v6  ;;  %v8165_v1 = vld [vmem:[#allocation21_spill] sm:$0xff] }
 0x299   :  { %8157 = vst [vmem:[#allocation7_spill] sm:$0xff] %v6755_v40  ;;  %v8168_v6 = vld [vmem:[#allocation17_spill] sm:$0xff] }
 0x29a   :  { %8158 = vst [vmem:[#allocation8_spill] sm:$0xff] %v6757_v56 }
 0x29e   :  { %v1381_v16 = vpop.f32.mrf.mxu2  ;;  %v984_v48 = vpop.f32.mrf.mxu0 }
 0x29f   :  { %v6761_v27 = vadd.f32 %v1381_v16, %v1224_v12  ;;  %v1529_v20 = vpop.f32.mrf.mxu3  ;;  %v1225_v33 = vadd.f32 %v984_v48, %v8163_v54  ;;  %v1132_v11 = vpop.f32.mrf.mxu1 }
 0x2a0   :  { %v6763_v50 = vadd.f32 %v1529_v20, %v1272_v18  ;;  %v1273_v40 = vadd.f32 %v1132_v11, %v8164_v32  ;;  %v8169_v20 = vld [vmem:[#allocation18_spill] sm:$0xff] }
 0x2a1   :  { %8161 = vst [vmem:[#allocation9_spill] sm:$0xff] %v6761_v27  ;;  %4576 = vmatmul.msk.bf16.gmra.mxu0 %vm255_vm1, %v8156_v45  ;;  %v8172_v27 = vld [vmem:[#allocation19_spill] sm:$0xff] }
 0x2a2   :  { %8162 = vst [vmem:[#allocation10_spill] sm:$0xff] %v6763_v50  ;;  %4608 = vmatmul.msk.bf16.gmra.mxu1 %vm255_vm1, %v8156_v45 }
 0x2a3   :  { %4648 = vmatmul.msk.bf16.gmra.mxu2 %vm255_vm1, %v8165_v1 }
 0x2a4   :  { %4680 = vmatmul.msk.bf16.gmra.mxu3 %vm255_vm1, %v8165_v1 }
 0x2a6   :  { %v1384_v37 = vpop.f32.mrf.mxu2  ;;  %v986_v12 = vpop.f32.mrf.mxu0 }
 0x2a7   :  { %v6775_v46 = vadd.f32 %v1384_v37, %v1225_v33  ;;  %v1532_v61 = vpop.f32.mrf.mxu3  ;;  %v1226_v18 = vadd.f32 %v986_v12, %v8168_v6  ;;  %v1134_v16 = vpop.f32.mrf.mxu1  ;;  %v8173_v37 = vld [vmem:[#allocation20_spill] sm:$0xff]  ;;  %v8174_v6 = vld [vmem:[#allocation26_spill] sm:$0xff] }
 0x2a8   :  { %v6777_v34 = vadd.f32 %v1532_v61, %v1273_v40  ;;  %v1274_v48 = vadd.f32 %v1134_v16, %v8169_v20  ;;  %v5624_v40 = vld [vmem:[%s8070_s4 + $0x78] sm:$0xff] }
 0x2a9   :  { %8166 = vst [vmem:[#allocation16_spill] sm:$0xff] %v6775_v46  ;;  %v5632_v12 = vld [vmem:[%s8071_s5 + $0x78] sm:$0xff]  ;;  %2462 = vmatpush.bf16.msra.mxu2 %v5624_v40 }
 0x2aa   :  { %8167 = vst [vmem:[#allocation12_spill] sm:$0xff] %v6777_v34  ;;  %2576 = vmatpush.bf16.msra.mxu3 %v5632_v12  ;;  %v8181_v12 = vld [vmem:[#allocation24_spill] sm:$0xff] }
 0x2ae   :  { %v1386_v54 = vpop.f32.mrf.mxu2  ;;  %v989_v32 = vpop.f32.mrf.mxu0 }
 0x2af   :  { %v6781_v45 = vadd.f32 %v1386_v54, %v1226_v18  ;;  %v1534_v11 = vpop.f32.mrf.mxu3  ;;  %v1227_v56 = vadd.f32 %v989_v32, %v8172_v27  ;;  %v1137_v33 = vpop.f32.mrf.mxu1  ;;  %v8177_v54 = vld [vmem:[#allocation22_spill] sm:$0xff] }
 0x2b0   :  { %v6783_v50 = vadd.f32 %v1534_v11, %v1274_v48  ;;  %v1275_v61 = vadd.f32 %v1137_v33, %v8173_v37  ;;  %v8178_v33 = vld [vmem:[#allocation23_spill] sm:$0xff] }
 0x2b1   :  { %8170 = vst [vmem:[#allocation13_spill] sm:$0xff] %v6781_v45  ;;  %4577 = vmatmul.msk.bf16.gmra.mxu0 %vm255_vm1, %v8165_v1 }
 0x2b2   :  { %8171 = vst [vmem:[#allocation14_spill] sm:$0xff] %v6783_v50  ;;  %4609 = vmatmul.msk.bf16.gmra.mxu1 %vm255_vm1, %v8165_v1 }
 0x2b3   :  { %4649 = vmatmul.msk.bf16.gmra.mxu2 %vm255_vm1, %v8174_v6 }
 0x2b4   :  { %4681 = vmatmul.msk.bf16.gmra.mxu3 %vm255_vm1, %v8174_v6 }
 0x2b6   :  { %v1389_v27 = vpop.f32.mrf.mxu2  ;;  %v991_v20 = vpop.f32.mrf.mxu0 }
 0x2b7   :  { %v6801_v18 = vadd.f32 %v1389_v27, %v1227_v56  ;;  %v1537_v16 = vpop.f32.mrf.mxu3  ;;  %v1228_v11 = vadd.f32 %v991_v20, %v8177_v54  ;;  %v1139_v32 = vpop.f32.mrf.mxu1  ;;  %v8182_v27 = vld [vmem:[#allocation25_spill] sm:$0xff] }
 0x2b8   :  { %v6803_v48 = vadd.f32 %v1537_v16, %v1275_v61  ;;  %v1276_v40 = vadd.f32 %v1139_v32, %v8178_v33  ;;  %v8183_v61 = vld [vmem:[#allocation31_spill] sm:$0xff] }
 0x2b9   :  { %8175 = vst [vmem:[#allocation15_spill] sm:$0xff] %v6801_v18 }
 0x2ba   :  { %8176 = vst [vmem:[#allocation21_spill] sm:$0xff] %v6803_v48 }
 0x2be   :  { %v1391_v1 = vpop.f32.mrf.mxu2  ;;  %v994_v45 = vpop.f32.mrf.mxu0 }
 0x2bf   :  { %v6807_v37 = vadd.f32 %v1391_v1, %v1228_v11  ;;  %v1539_v50 = vpop.f32.mrf.mxu3  ;;  %v1229_v46 = vadd.f32 %v994_v45, %v8181_v12  ;;  %v1142_v56 = vpop.f32.mrf.mxu1  ;;  %v8185_v11 = vld [vmem:[#allocation27_spill] sm:$0xff] }
 0x2c0   :  { %v6809_v34 = vadd.f32 %v1539_v50, %v1276_v40  ;;  %v1277_v18 = vadd.f32 %v1142_v56, %v8182_v27  ;;  %v8186_v40 = vld [vmem:[#allocation28_spill] sm:$0xff] }
 0x2c1   :  { %8179 = vst [vmem:[#allocation17_spill] sm:$0xff] %v6807_v37  ;;  %4578 = vmatmul.msk.bf16.gmra.mxu0 %vm255_vm1, %v8174_v6  ;;  %v8187_v37 = vld [vmem:[#allocation29_spill] sm:$0xff] }
 0x2c2   :  { %8180 = vst [vmem:[#allocation18_spill] sm:$0xff] %v6809_v34  ;;  %4610 = vmatmul.msk.bf16.gmra.mxu1 %vm255_vm1, %v8174_v6 }
 0x2c3   :  { %4650 = vmatmul.msk.bf16.gmra.mxu2 %vm255_vm1, %v8183_v61 }
 0x2c4   :  { %4682 = vmatmul.msk.bf16.gmra.mxu3 %vm255_vm1, %v8183_v61 }
 0x2c6   :  { %v1394_v16 = vpop.f32.mrf.mxu2  ;;  %v996_v45 = vpop.f32.mrf.mxu0 }
 0x2c7   :  { %v6821_v50 = vadd.f32 %v1394_v16, %v1229_v46  ;;  %v1542_v20 = vpop.f32.mrf.mxu3  ;;  %v1230_v32 = vadd.f32 %v996_v45, %v8185_v11  ;;  %v1144_v33 = vpop.f32.mrf.mxu1  ;;  %v8188_v16 = vld [vmem:[#allocation30_spill] sm:$0xff] }
 0x2c8   :  { %v6823_v54 = vadd.f32 %v1542_v20, %v1277_v18  ;;  %v1278_v1 = vadd.f32 %v1144_v33, %v8186_v40 }
 0x2c9   :  { %8184 = vst [vmem:[#allocation19_spill] sm:$0xff] %v6821_v50 }
 0x2ce   :  { %v1396_v12 = vpop.f32.mrf.mxu2  ;;  %v999_v27 = vpop.f32.mrf.mxu0 }
 0x2cf   :  { %v6827_v6 = vadd.f32 %v1396_v12, %v1230_v32  ;;  %v1544_v56 = vpop.f32.mrf.mxu3  ;;  %v1231_v48 = vadd.f32 %v999_v27, %v8187_v37  ;;  %v1147_v46 = vpop.f32.mrf.mxu1  ;;  %v8189_v32 = vld [vmem:[#allocation32_spill] sm:$0xff] }
 0x2d0   :  { %v6829_v34 = vadd.f32 %v1544_v56, %v1278_v1  ;;  %v1279_v50 = vadd.f32 %v1147_v46, %v8188_v16  ;;  %v8191_v1 = vld [vmem:[#allocation33_spill] sm:$0xff]  ;;  %v8195_v46 = vld [vmem:[#allocation34_spill] sm:$0xff] }
 0x2d1   :  { %4579 = vmatmul.msk.bf16.gmra.mxu0 %vm255_vm1, %v8183_v61 }
 0x2d2   :  { %4611 = vmatmul.msk.bf16.gmra.mxu1 %vm255_vm1, %v8183_v61 }
 0x2d3   :  { %4651 = vmatmul.msk.bf16.gmra.mxu2 %vm255_vm1, %v6400_v62 }
 0x2d4   :  { %4683 = vmatmul.msk.bf16.gmra.mxu3 %vm255_vm1, %v6400_v62 }
 0x2d6   :  { %v1399_v18 = vpop.f32.mrf.mxu2  ;;  %v1001_v37 = vpop.f32.mrf.mxu0 }
 0x2d7   :  { %v6841_v20 = vadd.f32 %v1399_v18, %v1231_v48  ;;  %v1547_v45 = vpop.f32.mrf.mxu3  ;;  %v6846_v33 = vadd.f32 %v1001_v37, %v8189_v32  ;;  %v1149_v40 = vpop.f32.mrf.mxu1  ;;  %v8196_v18 = vld [vmem:[#allocation35_spill] sm:$0xff] }
 0x2d8   :  { %v6843_v11 = vadd.f32 %v1547_v45, %v1279_v50  ;;  %v6849_v12 = vadd.f32 %v1149_v40, %v8191_v1  ;;  %v5623_v50 = vld [vmem:[%s8070_s4 + $0x70] sm:$0xff] }
 0x2d9   :  { %8190 = vst [vmem:[#allocation20_spill] sm:$0xff] %v6846_v33  ;;  %v5631_v37 = vld [vmem:[%s8071_s5 + $0x70] sm:$0xff]  ;;  %2463 = vmatpush.bf16.msra.mxu2 %v5623_v50 }
 0x2da   :  { %8192 = vst [vmem:[#allocation26_spill] sm:$0xff] %v6849_v12  ;;  %2577 = vmatpush.bf16.msra.mxu3 %v5631_v37 }
 0x2de   :  { %v6851_v61 = vpop.f32.mrf.mxu2  ;;  %v1004_v27 = vpop.f32.mrf.mxu0 }
 0x2df   :  { %8193 = vst [vmem:[#allocation22_spill] sm:$0xff] %v6851_v61  ;;  %v6853_v56 = vpop.f32.mrf.mxu3  ;;  %v1233_v16 = vadd.f32 %v1004_v27, %v8195_v46  ;;  %v1152_v48 = vpop.f32.mrf.mxu1 }
 0x2e0   :  { %8194 = vst [vmem:[#allocation23_spill] sm:$0xff] %v6853_v56  ;;  %v1281_v45 = vadd.f32 %v1152_v48, %v8196_v18  ;;  %v8197_v48 = vld [vmem:[#allocation36_spill] sm:$0xff]  ;;  %v8198_v56 = vld [vmem:[#allocation37_spill] sm:$0xff] }
 0x2e1   :  { %4580 = vmatmul.msk.bf16.gmra.mxu0 %vm255_vm1, %v6400_v62 }
 0x2e2   :  { %4612 = vmatmul.msk.bf16.gmra.mxu1 %vm255_vm1, %v6400_v62 }
 0x2e3   :  { %4652 = vmatmul.msk.bf16.gmra.mxu2 %vm255_vm1, %v6432_v53 }
 0x2e4   :  { %4684 = vmatmul.msk.bf16.gmra.mxu3 %vm255_vm1, %v6432_v53 }
 0x2e6   :  { %v1404_v32 = vpop.f32.mrf.mxu2  ;;  %v1006_v27 = vpop.f32.mrf.mxu0 }
 0x2e7   :  { %v6871_v40 = vadd.f32 %v1404_v32, %v1233_v16  ;;  %v1552_v1 = vpop.f32.mrf.mxu3  ;;  %v6876_v18 = vadd.f32 %v1006_v27, %v8197_v48  ;;  %v1154_v50 = vpop.f32.mrf.mxu1  ;;  %v6888_v16 = vld [vmem:[%s8066_s0 + $0xc8] sm:$0xff] }
 0x2e8   :  { %v6873_v46 = vadd.f32 %v1552_v1, %v1281_v45  ;;  %v6879_v62 = vadd.f32 %v1154_v50, %v8198_v56 }
 0x2ea   :  { %8199 = vst [vmem:[#allocation24_spill] sm:$0xff] %v6879_v62 }
 0x2ee   :  { %v6881_v12 = vpop.f32.mrf.mxu2  ;;  %v1009_v33 = vpop.f32.mrf.mxu0 }
 0x2ef   :  { %8200 = vst [vmem:[#allocation25_spill] sm:$0xff] %v6881_v12  ;;  %v6883_v61 = vpop.f32.mrf.mxu3  ;;  %v1235_v45 = vadd.f32 %v1009_v33, %v6423_v3  ;;  %v1157_v37 = vpop.f32.mrf.mxu1 }
 0x2f0   :  { %8201 = vst [vmem:[#allocation31_spill] sm:$0xff] %v6883_v61  ;;  %v1283_v32 = vadd.f32 %v1157_v37, %v6426_v19  ;;  %v8204_v19 = vld [vmem:[#allocation38_spill] sm:$0xff]  ;;  %v8206_v37 = vld [vmem:[#allocation39_spill] sm:$0xff] }
 0x2f1   :  { %4581 = vmatmul.msk.bf16.gmra.mxu0 %vm255_vm1, %v6432_v53 }
 0x2f2   :  { %4613 = vmatmul.msk.bf16.gmra.mxu1 %vm255_vm1, %v6432_v53 }
 0x2f3   :  { %4653 = vmatmul.msk.bf16.gmra.mxu2 %vm255_vm1, %v6888_v16 }
 0x2f4   :  { %4685 = vmatmul.msk.bf16.gmra.mxu3 %vm255_vm1, %v6888_v16 }
 0x2f6   :  { %v1409_v56 = vpop.f32.mrf.mxu2  ;;  %v1011_v3 = vpop.f32.mrf.mxu0 }
 0x2f7   :  { %v6900_v1 = vadd.f32 %v1409_v56, %v1235_v45  ;;  %v1557_v27 = vpop.f32.mrf.mxu3  ;;  %v6905_v48 = vadd.f32 %v1011_v3, %v8204_v19  ;;  %v1159_v50 = vpop.f32.mrf.mxu1  ;;  %v6917_v45 = vld [vmem:[%s8066_s0 + $0xd0] sm:$0xff] }
 0x2f8   :  { %v6902_v33 = vadd.f32 %v1557_v27, %v1283_v32  ;;  %v6908_v61 = vadd.f32 %v1159_v50, %v8206_v37  ;;  %8210 = vst [vmem:[#allocation34_spill] sm:$0xff] %v6917_v45  ;;  %v8211_v27 = vld [vmem:[#allocation40_spill] sm:$0xff] }
 0x2f9   :  { %8202 = vst [vmem:[#allocation27_spill] sm:$0xff] %v6900_v1 }
 0x2fa   :  { %8203 = vst [vmem:[#allocation28_spill] sm:$0xff] %v6902_v33 }
 0x2fb   :  { %8205 = vst [vmem:[#allocation29_spill] sm:$0xff] %v6905_v48 }
 0x2fc   :  { %8207 = vst [vmem:[#allocation30_spill] sm:$0xff] %v6908_v61  ;;  %v8215_v61 = vld [vmem:[#allocation42_spill] sm:$0xff] }
 0x2fe   :  { %v6910_v53 = vpop.f32.mrf.mxu2  ;;  %v1014_v12 = vpop.f32.mrf.mxu0 }
 0x2ff   :  { %8208 = vst [vmem:[#allocation32_spill] sm:$0xff] %v6910_v53  ;;  %v6912_v62 = vpop.f32.mrf.mxu3  ;;  %v1237_v32 = vadd.f32 %v1014_v12, %v6446_v42  ;;  %v1162_v56 = vpop.f32.mrf.mxu1 }
 0x300   :  { %8209 = vst [vmem:[#allocation33_spill] sm:$0xff] %v6912_v62  ;;  %v1285_v3 = vadd.f32 %v1162_v56, %v8211_v27  ;;  %v8213_v56 = vld [vmem:[#allocation41_spill] sm:$0xff] }
 0x301   :  { %4582 = vmatmul.msk.bf16.gmra.mxu0 %vm255_vm1, %v6888_v16 }
 0x302   :  { %4614 = vmatmul.msk.bf16.gmra.mxu1 %vm255_vm1, %v6888_v16 }
 0x303   :  { %4654 = vmatmul.msk.bf16.gmra.mxu2 %vm255_vm1, %v6917_v45 }
 0x304   :  { %4686 = vmatmul.msk.bf16.gmra.mxu3 %vm255_vm1, %v6917_v45 }
 0x306   :  { %v1414_v19 = vpop.f32.mrf.mxu2  ;;  %v1016_v42 = vpop.f32.mrf.mxu0 }
 0x307   :  { %v6929_v50 = vadd.f32 %v1414_v19, %v1237_v32  ;;  %v1562_v37 = vpop.f32.mrf.mxu3  ;;  %v6934_v27 = vadd.f32 %v1016_v42, %v8213_v56  ;;  %v1164_v62 = vpop.f32.mrf.mxu1  ;;  %v5630_v19 = vld [vmem:[%s8071_s5 + $0x68] sm:$0xff] }
 0x308   :  { %v6931_v12 = vadd.f32 %v1562_v37, %v1285_v3  ;;  %v6937_v53 = vadd.f32 %v1164_v62, %v8215_v61  ;;  %v5622_v3 = vld [vmem:[%s8070_s4 + $0x68] sm:$0xff]  ;;  %v8219_v37 = vld [vmem:[#allocation43_spill] sm:$0xff]  ;;  %v5853_v61 = vld [vmem:[%s8066_s0 + $0x20] sm:$0xff]  ;;  %2578 = vmatpush.bf16.msra.mxu3 %v5630_v19 }
 0x309   :  { %8214 = vst [vmem:[#allocation36_spill] sm:$0xff] %v6934_v27  ;;  %2464 = vmatpush.bf16.msra.mxu2 %v5622_v3 }
 0x30a   :  { %8212 = vst [vmem:[#allocation35_spill] sm:$0xff] %v6931_v12 }
 0x30b   :  { %8216 = vst [vmem:[#allocation37_spill] sm:$0xff] %v6937_v53  ;;  %v8221_v53 = vld [vmem:[#allocation44_spill] sm:$0xff] }
 0x30e   :  { %v6939_v48 = vpop.f32.mrf.mxu2  ;;  %v1019_v1 = vpop.f32.mrf.mxu0 }
 0x30f   :  { %8217 = vst [vmem:[#allocation38_spill] sm:$0xff] %v6939_v48  ;;  %v6941_v33 = vpop.f32.mrf.mxu3  ;;  %v1239_v45 = vadd.f32 %v1019_v1, %v6462_v52  ;;  %v1167_v32 = vpop.f32.mrf.mxu1 }
 0x310   :  { %8218 = vst [vmem:[#allocation39_spill] sm:$0xff] %v6941_v33  ;;  %v1287_v42 = vadd.f32 %v1167_v32, %v8219_v37  ;;  %v8223_v37 = vld [vmem:[#allocation45_spill] sm:$0xff] }
 0x311   :  { %4703 = vmatmul.msk.bf16.vlgmr.msra.gmra.mxu0 %vm255_vm1, %v5853_v61 }
 0x312   :  { %4735 = vmatmul.msk.bf16.vlgmr.msra.gmra.mxu1 %vm255_vm1, %v5853_v61 }
 0x316   :  { %v1419_v52 = vpop.f32.mrf.mxu2  ;;  %v1021_v56 = vpop.f32.mrf.mxu0 }
 0x317   :  { %v6956_v62 = vadd.f32 %v1419_v52, %v1239_v45  ;;  %v1567_v1 = vpop.f32.mrf.mxu3  ;;  %v6961_v48 = vadd.f32 %v1021_v56, %v8221_v53  ;;  %v1169_v32 = vpop.f32.mrf.mxu1  ;;  %v8227_v52 = vld [vmem:[#allocation46_spill] sm:$0xff] }
 0x318   :  { %v6958_v33 = vadd.f32 %v1567_v1, %v1287_v42  ;;  %v6964_v27 = vadd.f32 %v1169_v32, %v8223_v37  ;;  %v5854_v42 = vld [vmem:[%s8066_s0 + $0x28] sm:$0xff] }
 0x319   :  { %8220 = vst [vmem:[#allocation40_spill] sm:$0xff] %v6956_v62 }
 0x31a   :  { %8222 = vst [vmem:[#allocation41_spill] sm:$0xff] %v6961_v48 }
 0x31b   :  { %8224 = vst [vmem:[#allocation42_spill] sm:$0xff] %v6964_v27 }
 0x31e   :  { %v6966_v12 = vpop.f32.mrf.mxu2  ;;  %v1024_v61 = vpop.f32.mrf.mxu0 }
 0x31f   :  { %8225 = vst [vmem:[#allocation43_spill] sm:$0xff] %v6966_v12  ;;  %v6968_v3 = vpop.f32.mrf.mxu3  ;;  %v1241_v19 = vadd.f32 %v1024_v61, %v6478_v7  ;;  %v1172_v45 = vpop.f32.mrf.mxu1 }
 0x320   :  { %8226 = vst [vmem:[#allocation44_spill] sm:$0xff] %v6968_v3  ;;  %v1289_v62 = vadd.f32 %v1172_v45, %v8227_v52  ;;  %v8229_v3 = vld [vmem:[#allocation47_spill] sm:$0xff]  ;;  %v8231_v45 = vld [vmem:[#allocation48_spill] sm:$0xff] }
 0x321   :  { %4704 = vmatmul.msk.bf16.gmra.mxu0 %vm255_vm1, %v5854_v42 }
 0x322   :  { %4736 = vmatmul.msk.bf16.gmra.mxu1 %vm255_vm1, %v5854_v42 }
 0x326   :  { %v1424_v53 = vpop.f32.mrf.mxu2  ;;  %v1026_v32 = vpop.f32.mrf.mxu0 }
 0x327   :  { %v6977_v1 = vadd.f32 %v1424_v53, %v1241_v19  ;;  %v1572_v56 = vpop.f32.mrf.mxu3  ;;  %v6982_v7 = vadd.f32 %v1026_v32, %v8229_v3  ;;  %v1174_v61 = vpop.f32.mrf.mxu1  ;;  %v8235_v53 = vld [vmem:[#allocation49_spill] sm:$0xff] }
 0x328   :  { %v6979_v37 = vadd.f32 %v1572_v56, %v1289_v62  ;;  %v6985_v52 = vadd.f32 %v1174_v61, %v8231_v45  ;;  %v5855_v62 = vld [vmem:[%s8066_s0 + $0x30] sm:$0xff] }
 0x329   :  { %8228 = vst [vmem:[#allocation45_spill] sm:$0xff] %v6977_v1 }
 0x32a   :  { %8230 = vst [vmem:[#allocation46_spill] sm:$0xff] %v6982_v7 }
 0x32b   :  { %8232 = vst [vmem:[#allocation47_spill] sm:$0xff] %v6985_v52 }
 0x32e   :  { %v6987_v27 = vpop.f32.mrf.mxu2  ;;  %v1029_v48 = vpop.f32.mrf.mxu0 }
 0x32f   :  { %8233 = vst [vmem:[#allocation48_spill] sm:$0xff] %v6987_v27  ;;  %v6989_v12 = vpop.f32.mrf.mxu3  ;;  %v1243_v42 = vadd.f32 %v1029_v48, %v6494_v23  ;;  %v1177_v19 = vpop.f32.mrf.mxu1 }
 0x330   :  { %8234 = vst [vmem:[#allocation67_spill] sm:$0xff] %v6989_v12  ;;  %v1291_v1 = vadd.f32 %v1177_v19, %v8235_v53  ;;  %v8237_v12 = vld [vmem:[#allocation50_spill] sm:$0xff]  ;;  %v8239_v19 = vld [vmem:[#allocation51_spill] sm:$0xff] }
 0x331   :  { %4705 = vmatmul.msk.bf16.gmra.mxu0 %vm255_vm1, %v5855_v62 }
 0x332   :  { %4737 = vmatmul.msk.bf16.gmra.mxu1 %vm255_vm1, %v5855_v62 }
 0x336   :  { %v1429_v3 = vpop.f32.mrf.mxu2  ;;  %v1031_v61 = vpop.f32.mrf.mxu0 }
 0x337   :  { %v6998_v56 = vadd.f32 %v1429_v3, %v1243_v42  ;;  %v1577_v32 = vpop.f32.mrf.mxu3  ;;  %v7003_v23 = vadd.f32 %v1031_v61, %v8237_v12  ;;  %v1179_v48 = vpop.f32.mrf.mxu1  ;;  %v5629_v12 = vld [vmem:[%s8071_s5 + $0x60] sm:$0xff]  ;;  %v8243_v3 = vld [vmem:[#allocation52_spill] sm:$0xff] }
 0x338   :  { %v7000_v45 = vadd.f32 %v1577_v32, %v1291_v1  ;;  %v7006_v53 = vadd.f32 %v1179_v48, %v8239_v19  ;;  %v5621_v1 = vld [vmem:[%s8070_s4 + $0x60] sm:$0xff]  ;;  %v5856_v61 = vld [vmem:[%s8066_s0 + $0x38] sm:$0xff]  ;;  %2579 = vmatpush.bf16.msra.mxu3 %v5629_v12 }
 0x339   :  { %8238 = vst [vmem:[#allocation50_spill] sm:$0xff] %v7003_v23  ;;  %2465 = vmatpush.bf16.msra.mxu2 %v5621_v1 }
 0x33a   :  { %8236 = vst [vmem:[#allocation49_spill] sm:$0xff] %v7000_v45 }
 0x33b   :  { %8240 = vst [vmem:[#allocation51_spill] sm:$0xff] %v7006_v53  ;;  %v8246_v53 = vld [vmem:[#allocation53_spill] sm:$0xff] }
 0x33e   :  { %v7008_v52 = vpop.f32.mrf.mxu2  ;;  %v1034_v7 = vpop.f32.mrf.mxu0 }
 0x33f   :  { %8241 = vst [vmem:[#allocation68_spill] sm:$0xff] %v7008_v52  ;;  %v7010_v27 = vpop.f32.mrf.mxu3  ;;  %v1245_v62 = vadd.f32 %v1034_v7, %v6510_v38  ;;  %v1182_v42 = vpop.f32.mrf.mxu1 }
 0x340   :  { %8242 = vst [vmem:[#allocation69_spill] sm:$0xff] %v7010_v27  ;;  %v1293_v32 = vadd.f32 %v1182_v42, %v8243_v3  ;;  %v8248_v3 = vld [vmem:[#allocation54_spill] sm:$0xff] }
 0x341   :  { %4706 = vmatmul.msk.bf16.gmra.mxu0 %vm255_vm1, %v5856_v61 }
 0x342   :  { %4738 = vmatmul.msk.bf16.gmra.mxu1 %vm255_vm1, %v5856_v61 }
 0x346   :  { %v1434_v38 = vpop.f32.mrf.mxu2  ;;  %v1036_v19 = vpop.f32.mrf.mxu0 }
 0x347   :  { %v7025_v7 = vadd.f32 %v1434_v38, %v1245_v62  ;;  %v1582_v48 = vpop.f32.mrf.mxu3  ;;  %v7030_v52 = vadd.f32 %v1036_v19, %v8246_v53  ;;  %v1184_v42 = vpop.f32.mrf.mxu1  ;;  %v8252_v38 = vld [vmem:[#allocation55_spill] sm:$0xff] }
 0x348   :  { %v7027_v27 = vadd.f32 %v1582_v48, %v1293_v32  ;;  %v7033_v23 = vadd.f32 %v1184_v42, %v8248_v3  ;;  %v5857_v32 = vld [vmem:[%s8066_s0 + $0x40] sm:$0xff] }
 0x349   :  { %8244 = vst [vmem:[#allocation52_spill] sm:$0xff] %v7025_v7 }
 0x34a   :  { %8245 = vst [vmem:[#allocation70_spill] sm:$0xff] %v7027_v27 }
 0x34b   :  { %8247 = vst [vmem:[#allocation53_spill] sm:$0xff] %v7030_v52 }
 0x34c   :  { %8249 = vst [vmem:[#allocation54_spill] sm:$0xff] %v7033_v23 }
 0x34e   :  { %v7035_v45 = vpop.f32.mrf.mxu2  ;;  %v1039_v61 = vpop.f32.mrf.mxu0 }
 0x34f   :  { %8250 = vst [vmem:[#allocation71_spill] sm:$0xff] %v7035_v45  ;;  %v7037_v1 = vpop.f32.mrf.mxu3  ;;  %v1247_v12 = vadd.f32 %v1039_v61, %v6526_v13  ;;  %v1187_v62 = vpop.f32.mrf.mxu1 }
 0x350   :  { %8251 = vst [vmem:[#allocation72_spill] sm:$0xff] %v7037_v1  ;;  %v1295_v7 = vadd.f32 %v1187_v62, %v8252_v38  ;;  %v8255_v1 = vld [vmem:[#allocation56_spill] sm:$0xff]  ;;  %v8257_v62 = vld [vmem:[#allocation57_spill] sm:$0xff] }
 0x351   :  { %4707 = vmatmul.msk.bf16.gmra.mxu0 %vm255_vm1, %v5857_v32 }
 0x352   :  { %4739 = vmatmul.msk.bf16.gmra.mxu1 %vm255_vm1, %v5857_v32  ;;  %v8261_v32 = vld [vmem:[#allocation58_spill] sm:$0xff] }
 0x356   :  { %v1439_v53 = vpop.f32.mrf.mxu2  ;;  %v1041_v42 = vpop.f32.mrf.mxu0 }
 0x357   :  { %v7046_v48 = vadd.f32 %v1439_v53, %v1247_v12  ;;  %v1587_v19 = vpop.f32.mrf.mxu3  ;;  %v7051_v13 = vadd.f32 %v1041_v42, %v8255_v1  ;;  %v1189_v61 = vpop.f32.mrf.mxu1  ;;  %v8262_v53 = vld [vmem:[#allocation59_spill] sm:$0xff] }
 0x358   :  { %v7048_v3 = vadd.f32 %v1587_v19, %v1295_v7  ;;  %v7054_v38 = vadd.f32 %v1189_v61, %v8257_v62  ;;  %v5858_v7 = vld [vmem:[%s8066_s0 + $0x48] sm:$0xff] }
 0x359   :  { %8253 = vst [vmem:[#allocation55_spill] sm:$0xff] %v7046_v48 }
 0x35a   :  { %8254 = vst [vmem:[#allocation73_spill] sm:$0xff] %v7048_v3 }
 0x35b   :  { %8256 = vst [vmem:[#allocation56_spill] sm:$0xff] %v7051_v13 }
 0x35c   :  { %8258 = vst [vmem:[#allocation57_spill] sm:$0xff] %v7054_v38 }
 0x35e   :  { %v7056_v23 = vpop.f32.mrf.mxu2  ;;  %v1044_v52 = vpop.f32.mrf.mxu0 }
 0x35f   :  { %8259 = vst [vmem:[#allocation74_spill] sm:$0xff] %v7056_v23  ;;  %v7058_v45 = vpop.f32.mrf.mxu3  ;;  %v1249_v27 = vadd.f32 %v1044_v52, %v8261_v32  ;;  %v1192_v12 = vpop.f32.mrf.mxu1 }
 0x360   :  { %8260 = vst [vmem:[#allocation75_spill] sm:$0xff] %v7058_v45  ;;  %v1297_v48 = vadd.f32 %v1192_v12, %v8262_v53  ;;  %v8264_v45 = vld [vmem:[#allocation60_spill] sm:$0xff]  ;;  %v8266_v12 = vld [vmem:[#allocation61_spill] sm:$0xff] }
 0x361   :  { %4708 = vmatmul.msk.bf16.gmra.mxu0 %vm255_vm1, %v5858_v7 }
 0x362   :  { %4740 = vmatmul.msk.bf16.gmra.mxu1 %vm255_vm1, %v5858_v7  ;;  %v8270_v7 = vld [vmem:[#allocation62_spill] sm:$0xff] }
 0x366   :  { %v1444_v1 = vpop.f32.mrf.mxu2  ;;  %v1046_v61 = vpop.f32.mrf.mxu0 }
 0x367   :  { %v7067_v19 = vadd.f32 %v1444_v1, %v1249_v27  ;;  %v1592_v42 = vpop.f32.mrf.mxu3  ;;  %v7072_v52 = vadd.f32 %v1046_v61, %v8264_v45  ;;  %v1194_v32 = vpop.f32.mrf.mxu1  ;;  %v5628_v45 = vld [vmem:[%s8071_s5 + $0x58] sm:$0xff]  ;;  %v8271_v1 = vld [vmem:[#allocation63_spill] sm:$0xff] }
 0x368   :  { %v7069_v62 = vadd.f32 %v1592_v42, %v1297_v48  ;;  %v7075_v53 = vadd.f32 %v1194_v32, %v8266_v12  ;;  %v5620_v48 = vld [vmem:[%s8070_s4 + $0x58] sm:$0xff]  ;;  %v5859_v61 = vld [vmem:[%s8066_s0 + $0x50] sm:$0xff]  ;;  %2580 = vmatpush.bf16.msra.mxu3 %v5628_v45 }
 0x369   :  { %8265 = vst [vmem:[#allocation59_spill] sm:$0xff] %v7072_v52  ;;  %2466 = vmatpush.bf16.msra.mxu2 %v5620_v48 }
 0x36a   :  { %8263 = vst [vmem:[#allocation58_spill] sm:$0xff] %v7069_v62 }
 0x36b   :  { %8267 = vst [vmem:[#allocation60_spill] sm:$0xff] %v7075_v53  ;;  %v8272_v53 = vld [vmem:[#allocation64_spill] sm:$0xff] }
 0x36e   :  { %v7077_v38 = vpop.f32.mrf.mxu2  ;;  %v1049_v13 = vpop.f32.mrf.mxu0 }
 0x36f   :  { %8268 = vst [vmem:[#allocation61_spill] sm:$0xff] %v7077_v38  ;;  %v7079_v23 = vpop.f32.mrf.mxu3  ;;  %v1251_v3 = vadd.f32 %v1049_v13, %v8270_v7  ;;  %v1197_v27 = vpop.f32.mrf.mxu1 }
 0x370   :  { %8269 = vst [vmem:[#allocation76_spill] sm:$0xff] %v7079_v23  ;;  %v1299_v42 = vadd.f32 %v1197_v27, %v8271_v1  ;;  %v8273_v1 = vld [vmem:[#allocation65_spill] sm:$0xff] }
 0x371   :  { %4709 = vmatmul.msk.bf16.gmra.mxu0 %vm255_vm1, %v5859_v61 }
 0x372   :  { %4741 = vmatmul.msk.bf16.gmra.mxu1 %vm255_vm1, %v5859_v61 }
 0x376   :  { %v1449_v13 = vpop.f32.mrf.mxu2  ;;  %v1051_v7 = vpop.f32.mrf.mxu0 }
 0x377   :  { %v7094_v32 = vadd.f32 %v1449_v13, %v1251_v3  ;;  %v1597_v12 = vpop.f32.mrf.mxu3  ;;  %v7099_v38 = vadd.f32 %v1051_v7, %v8272_v53  ;;  %v1199_v27 = vpop.f32.mrf.mxu1 }
 0x378   :  { %v7096_v23 = vadd.f32 %v1597_v12, %v1299_v42  ;;  %v7102_v52 = vadd.f32 %v1199_v27, %v8273_v1  ;;  %v5860_v42 = vld [vmem:[%s8066_s0 + $0x58] sm:$0xff] }
 0x37a   :  { %8274 = vst [vmem:[#allocation62_spill] sm:$0xff] %v7102_v52 }
 0x37e   :  { %v7104_v62 = vpop.f32.mrf.mxu2  ;;  %v1054_v61 = vpop.f32.mrf.mxu0 }
 0x37f   :  { %8275 = vst [vmem:[#allocation63_spill] sm:$0xff] %v7104_v62  ;;  %v7106_v48 = vpop.f32.mrf.mxu3  ;;  %v1253_v45 = vadd.f32 %v1054_v61, %v6574_v2  ;;  %v1202_v3 = vpop.f32.mrf.mxu1 }
 0x380   :  { %8276 = vst [vmem:[#allocation64_spill] sm:$0xff] %v7106_v48  ;;  %v1301_v13 = vadd.f32 %v1202_v3, %v6576_v35  ;;  %v8277_v35 = vld [vmem:[#allocation66_spill] sm:$0xff] }
 0x381   :  { %4710 = vmatmul.msk.bf16.gmra.mxu0 %vm255_vm1, %v5860_v42 }
 0x382   :  { %4742 = vmatmul.msk.bf16.gmra.mxu1 %vm255_vm1, %v5860_v42 }
 0x386   :  { %v1454_v53 = vpop.f32.mrf.mxu2  ;;  %v1056_v27 = vpop.f32.mrf.mxu0 }
 0x387   :  { %v7115_v12 = vadd.f32 %v1454_v53, %v1253_v45  ;;  %v1602_v7 = vpop.f32.mrf.mxu3  ;;  %v7120_v2 = vadd.f32 %v1056_v27, %v6578_v58  ;;  %v1204_v61 = vpop.f32.mrf.mxu1  ;;  %v5861_v45 = vld [vmem:[%s8066_s0 + $0x60] sm:$0xff] }
 0x388   :  { %v7117_v1 = vadd.f32 %v1602_v7, %v1301_v13  ;;  %v7123_v3 = vadd.f32 %v1204_v61, %v8277_v35  ;;  %v5862_v35 = vld [vmem:[%s8066_s0 + $0x68] sm:$0xff] }
 0x38a   :  { %8278 = vst [vmem:[#allocation65_spill] sm:$0xff] %v7123_v3 }
 0x38e   :  { %v1739_v48 = vpop.f32.mrf.mxu0 }
 0x38f   :  { %v2007_v52 = vadd.f32 %v1739_v48, %v6592_v17  ;;  %v1887_v62 = vpop.f32.mrf.mxu1  ;;  %v5619_v17 = vld [vmem:[%s8070_s4 + $0x50] sm:$0xff] }
 0x390   :  { %v2055_v42 = vadd.f32 %v1887_v62, %v6594_v9  ;;  %v5627_v9 = vld [vmem:[%s8071_s5 + $0x50] sm:$0xff]  ;;  %2467 = vmatpush.bf16.msra.mxu2 %v5619_v17 }
 0x391   :  { %4711 = vmatmul.msk.bf16.gmra.mxu0 %vm255_vm1, %v5861_v45  ;;  %2581 = vmatpush.bf16.msra.mxu3 %v5627_v9 }
 0x392   :  { %v2103_v13 = vmax.f32 %v2007_v52, %v2055_v42  ;;  %4743 = vmatmul.msk.bf16.gmra.mxu1 %vm255_vm1, %v5861_v45 }
 0x396   :  { %v1741_v58 = vpop.f32.mrf.mxu0 }
 0x397   :  { %v2008_v53 = vadd.f32 %v1741_v58, %v6598_v47  ;;  %v1889_v7 = vpop.f32.mrf.mxu1  ;;  %v7144_v47 = vld [vmem:[%s8069_s3] ss:$0 sm:$0xff] }
 0x398   :  { %v2056_v27 = vadd.f32 %v1889_v7, %v6600_v22  ;;  %v2155_v45 = vadd.f32 %v7144_v47, %v2103_v13 }
 0x39a   :  { %v2104_v61 = vmax.f32 %v2008_v53, %v2056_v27 }
 0x39c   :  { %v2156_v9 = vadd.f32 %v7144_v47, %v2104_v61  ;;  %v5626_v61 = vld [vmem:[%s8071_s5 + $0x48] sm:$0xff] }
 0x39d   :  { %2582 = vmatpush.bf16.msra.mxu3 %v5626_v61 }
 0x39e   :  { %v1744_v62 = vpop.f32.mrf.mxu0 }
 0x39f   :  { %v2009_v52 = vadd.f32 %v1744_v62, %v6612_v51  ;;  %v1892_v48 = vpop.f32.mrf.mxu1 }
 0x3a0   :  { %v2057_v22 = vadd.f32 %v1892_v48, %v6614_v36 }
 0x3a1   :  { %4712 = vmatmul.msk.bf16.gmra.mxu0 %vm255_vm1, %v5862_v35 }
 0x3a2   :  { %v2105_v42 = vmax.f32 %v2009_v52, %v2057_v22  ;;  %4744 = vmatmul.msk.bf16.gmra.mxu1 %vm255_vm1, %v5862_v35 }
 0x3a4   :  { %v2157_v51 = vadd.f32 %v7144_v47, %v2105_v42 }
 0x3a6   :  { %v2203_v58 = vmax.f32 %v2155_v45, %v2157_v51  ;;  %v1746_v53 = vpop.f32.mrf.mxu0 }
 0x3a7   :  { %v2010_v7 = vadd.f32 %v1746_v53, %v6618_v60  ;;  %v1894_v27 = vpop.f32.mrf.mxu1  ;;  %v5863_v60 = vld [vmem:[%s8066_s0 + $0x70] sm:$0xff]  ;;  %v5617_v53 = vld [vmem:[%s8070_s4 + $0x40] sm:$0xff] }
 0x3a8   :  { %v2058_v36 = vadd.f32 %v1894_v27, %v6620_v30  ;;  %v2205_v13 = vmax.f32 %v2203_v58, 0.0 }
 0x3aa   :  { %v2106_v17 = vmax.f32 %v2010_v7, %v2058_v36  ;;  %v5625_v7 = vld [vmem:[%s8071_s5 + $0x40] sm:$0xff] }
 0x3ab   :  { %2583 = vmatpush.bf16.msra.mxu3 %v5625_v7 }
 0x3ac   :  { %v2158_v62 = vadd.f32 %v7144_v47, %v2106_v17 }
 0x3ae   :  { %v2204_v48 = vmax.f32 %v2156_v9, %v2158_v62  ;;  %v1749_v52 = vpop.f32.mrf.mxu0 }
 0x3af   :  { %v2011_v22 = vadd.f32 %v1749_v52, %v6635_v8  ;;  %v1897_v35 = vpop.f32.mrf.mxu1  ;;  %v5618_v8 = vld [vmem:[%s8070_s4 + $0x48] sm:$0xff] }
 0x3b0   :  { %v2206_v3 = vmax.f32 %v2204_v48, 0.0  ;;  %v2059_v42 = vadd.f32 %v1897_v35, %v6637_v14  ;;  %2468 = vmatpush.bf16.msra.mxu2 %v5618_v8 }
 0x3b1   :  { %4713 = vmatmul.msk.bf16.gmra.mxu0 %vm255_vm1, %v5863_v60 }
 0x3b2   :  { %v5747_v30 = vpack.c.bf16 %v2206_v3, %v2205_v13  ;;  %v2107_v45 = vmax.f32 %v2011_v22, %v2059_v42  ;;  %4745 = vmatmul.msk.bf16.gmra.mxu1 %vm255_vm1, %v5863_v60 }
 0x3b4   :  { %5748 = vst [vmem:[#allocation2 + $0x30] sm:$0xff] %v5747_v30   ;;  %2469 = vmatpush.bf16.msra.mxu2 %v5617_v53  ;;  %v2159_v48 = vadd.f32 %v7144_v47, %v2107_v45 }
 0x3b6   :  { %v1751_v14 = vpop.f32.mrf.mxu0 }
 0x3b7   :  { %v2012_v51 = vadd.f32 %v1751_v14, %v6641_v44  ;;  %v1899_v58 = vpop.f32.mrf.mxu1 }
 0x3b8   :  { %v2060_v3 = vadd.f32 %v1899_v58, %v6643_v31  ;;  %v5864_v31 = vld [vmem:[%s8066_s0 + $0x78] sm:$0xff] }
 0x3ba   :  { %v2108_v27 = vmax.f32 %v2012_v51, %v2060_v3 }
 0x3bc   :  { %v2160_v60 = vadd.f32 %v7144_v47, %v2108_v27 }
 0x3be   :  { %v1754_v36 = vpop.f32.mrf.mxu0 }
 0x3bf   :  { %v2013_v17 = vadd.f32 %v1754_v36, %v6655_v15  ;;  %v1902_v44 = vpop.f32.mrf.mxu1 }
 0x3c0   :  { %v2061_v9 = vadd.f32 %v1902_v44, %v6657_v0 }
 0x3c1   :  { %4714 = vmatmul.msk.bf16.gmra.mxu0 %vm255_vm1, %v5864_v31 }
 0x3c2   :  { %v2109_v62 = vmax.f32 %v2013_v17, %v2061_v9  ;;  %4746 = vmatmul.msk.bf16.gmra.mxu1 %vm255_vm1, %v5864_v31 }
 0x3c4   :  { %v2161_v52 = vadd.f32 %v7144_v47, %v2109_v62 }
 0x3c6   :  { %v2211_v22 = vmax.f32 %v2159_v48, %v2161_v52  ;;  %v1756_v35 = vpop.f32.mrf.mxu0 }
 0x3c7   :  { %v2014_v15 = vadd.f32 %v1756_v35, %v6661_v24  ;;  %v1904_v13 = vpop.f32.mrf.mxu1  ;;  %v5865_v24 = vld [vmem:[%s8066_s0 + $0x80] sm:$0xff] }
 0x3c8   :  { %v2062_v0 = vadd.f32 %v1904_v13, %v6663_v57  ;;  %v2213_v45 = vmax.f32 %v2211_v22, 0.0 }
 0x3ca   :  { %v2110_v42 = vmax.f32 %v2014_v15, %v2062_v0 }
 0x3cc   :  { %v2162_v30 = vadd.f32 %v7144_v47, %v2110_v42 }
 0x3ce   :  { %v2212_v8 = vmax.f32 %v2160_v60, %v2162_v30  ;;  %v1759_v61 = vpop.f32.mrf.mxu0 }
 0x3cf   :  { %v2015_v14 = vadd.f32 %v1759_v61, %v6675_v28  ;;  %v1907_v51 = vpop.f32.mrf.mxu1 }
 0x3d0   :  { %v2214_v58 = vmax.f32 %v2212_v8, 0.0  ;;  %v2063_v3 = vadd.f32 %v1907_v51, %v6677_v29 }
 0x3d1   :  { %4715 = vmatmul.msk.bf16.gmra.mxu0 %vm255_vm1, %v5865_v24 }
 0x3d2   :  { %v5752_v57 = vpack.c.bf16 %v2214_v58, %v2213_v45  ;;  %v2111_v53 = vmax.f32 %v2015_v14, %v2063_v3  ;;  %4747 = vmatmul.msk.bf16.gmra.mxu1 %vm255_vm1, %v5865_v24 }
 0x3d4   :  { %5824 = vst [vmem:[#allocation2] sm:$0xff] %v5752_v57   ;;  %v2163_v48 = vadd.f32 %v7144_v47, %v2111_v53 }
 0x3d6   :  { %v1761_v7 = vpop.f32.mrf.mxu0 }
 0x3d7   :  { %v2016_v27 = vadd.f32 %v1761_v7, %v6681_v49  ;;  %v1909_v28 = vpop.f32.mrf.mxu1  ;;  %v5866_v49 = vld [vmem:[%s8066_s0 + $0x88] sm:$0xff] }
 0x3d8   :  { %v2064_v36 = vadd.f32 %v1909_v28, %v6683_v5 }
 0x3da   :  { %v2112_v17 = vmax.f32 %v2016_v27, %v2064_v36 }
 0x3db   :  { %v7201_v44 = vld [vmem:[#allocation2] sm:$0xff] }
 0x3dc   :  { %2470 = vmatmul.bf16.vlgmr.msra.gmra.mxu2 %v7201_v44  ;;  %2584 = vmatmul.bf16.vlgmr.msra.gmra.mxu3 %v7201_v44  ;;  %v2164_v0 = vadd.f32 %v7144_v47, %v2112_v17 }
 0x3de   :  { %v1764_v29 = vpop.f32.mrf.mxu0 }
 0x3df   :  { %v2017_v9 = vadd.f32 %v1764_v29, %v6695_v55  ;;  %v1912_v31 = vpop.f32.mrf.mxu1 }
 0x3e0   :  { %v2065_v62 = vadd.f32 %v1912_v31, %v6697_v41 }
 0x3e1   :  { %4716 = vmatmul.msk.bf16.gmra.mxu0 %vm255_vm1, %v5866_v49 }
 0x3e2   :  { %v2113_v5 = vmax.f32 %v2017_v9, %v2065_v62  ;;  %4748 = vmatmul.msk.bf16.gmra.mxu1 %vm255_vm1, %v5866_v49  ;;  %v8279_v49 = vld [vmem:[#allocation11_spill] sm:$0xff] }
 0x3e4   :  { %v2165_v52 = vadd.f32 %v7144_v47, %v2113_v5 }
 0x3e6   :  { %v2219_v22 = vmax.f32 %v2163_v48, %v2165_v52  ;;  %v1766_v35 = vpop.f32.mrf.mxu0 }
 0x3e7   :  { %v2018_v55 = vadd.f32 %v1766_v35, %v6701_v4  ;;  %v1914_v15 = vpop.f32.mrf.mxu1  ;;  %v5867_v4 = vld [vmem:[%s8066_s0 + $0x90] sm:$0xff] }
 0x3e8   :  { %v2066_v41 = vadd.f32 %v1914_v15, %v6703_v43  ;;  %v2221_v14 = vmax.f32 %v2219_v22, 0.0 }
 0x3ea   :  { %v2114_v13 = vmax.f32 %v2018_v55, %v2066_v41  ;;  %v8280_v55 = vld [vmem:[#allocation7_spill] sm:$0xff] }
 0x3ec   :  { %v2166_v42 = vadd.f32 %v7144_v47, %v2114_v13 }
 0x3ee   :  { %v2220_v60 = vmax.f32 %v2164_v0, %v2166_v42  ;;  %v1769_v30 = vpop.f32.mrf.mxu0  ;;  %v8281_v42 = vld [vmem:[#allocation8_spill] sm:$0xff] }
 0x3ef   :  { %v2019_v8 = vadd.f32 %v1769_v30, %v6715_v10  ;;  %v1917_v61 = vpop.f32.mrf.mxu1 }
 0x3f0   :  { %v2222_v51 = vmax.f32 %v2220_v60, 0.0  ;;  %v2067_v45 = vadd.f32 %v1917_v61, %v6717_v21 }
 0x3f1   :  { %4717 = vmatmul.msk.bf16.gmra.mxu0 %vm255_vm1, %v5867_v4 }
 0x3f2   :  { %v5757_v43 = vpack.c.bf16 %v2222_v51, %v2221_v14  ;;  %v2115_v58 = vmax.f32 %v2019_v8, %v2067_v45  ;;  %4749 = vmatmul.msk.bf16.gmra.mxu1 %vm255_vm1, %v5867_v4  ;;  %v8282_v14 = vld [vmem:[#allocation9_spill] sm:$0xff]  ;;  %v8283_v4 = vld [vmem:[#allocation10_spill] sm:$0xff] }
 0x3f4   :  { %5825 = vst [vmem:[#allocation2 + $0x58] sm:$0xff] %v5757_v43   ;;  %v2167_v17 = vadd.f32 %v7144_v47, %v2115_v58 }
 0x3f6   :  { %v1771_v3 = vpop.f32.mrf.mxu0 }
 0x3f7   :  { %v2020_v24 = vadd.f32 %v1771_v3, %v6721_v26  ;;  %v1919_v10 = vpop.f32.mrf.mxu1  ;;  %v5868_v26 = vld [vmem:[%s8066_s0 + $0x98] sm:$0xff] }
 0x3f8   :  { %v2068_v57 = vadd.f32 %v1919_v10, %v6723_v59  ;;  %v8284_v10 = vld [vmem:[#allocation16_spill] sm:$0xff] }
 0x3fa   :  { %v2116_v53 = vmax.f32 %v2020_v24, %v2068_v57 }
 0x3fb   :  { %v7227_v7 = vld [vmem:[#allocation2 + $0x58] sm:$0xff] }
 0x3fc   :  { %2475 = vmatmul.bf16.gmra.mxu2 %v7227_v7  ;;  %2589 = vmatmul.bf16.gmra.mxu3 %v7227_v7  ;;  %v2168_v48 = vadd.f32 %v7144_v47, %v2116_v53 }
 0x3fe   :  { %v1774_v21 = vpop.f32.mrf.mxu0 }
 0x3ff   :  { %v2021_v27 = vadd.f32 %v1774_v21, %v6735_v25  ;;  %v1922_v28 = vpop.f32.mrf.mxu1  ;;  %v8285_v21 = vld [vmem:[#allocation12_spill] sm:$0xff] }
 0x400   :  { %v2069_v36 = vadd.f32 %v1922_v28, %v6737_v39  ;;  %v5870_v28 = vld [vmem:[%s8066_s0 + $0xa8] sm:$0xff] }
 0x401   :  { %4718 = vmatmul.msk.bf16.gmra.mxu0 %vm255_vm1, %v5868_v26 }
 0x402   :  { %v2117_v59 = vmax.f32 %v2021_v27, %v2069_v36  ;;  %4750 = vmatmul.msk.bf16.gmra.mxu1 %vm255_vm1, %v5868_v26 }
 0x404   :  { %v2169_v29 = vadd.f32 %v7144_v47, %v2117_v59 }
 0x406   :  { %v2227_v9 = vmax.f32 %v2167_v17, %v2169_v29  ;;  %v1776_v31 = vpop.f32.mrf.mxu0 }
 0x407   :  { %v2022_v25 = vadd.f32 %v1776_v31, %v6741_v63  ;;  %v1924_v62 = vpop.f32.mrf.mxu1  ;;  %v5869_v63 = vld [vmem:[%s8066_s0 + $0xa0] sm:$0xff] }
 0x408   :  { %v2070_v39 = vadd.f32 %v1924_v62, %v8279_v49  ;;  %v2229_v13 = vmax.f32 %v2227_v9, 0.0  ;;  %v8286_v9 = vld [vmem:[#allocation13_spill] sm:$0xff]  ;;  %v8287_v62 = vld [vmem:[#allocation14_spill] sm:$0xff] }
 0x40a   :  { %v2118_v5 = vmax.f32 %v2022_v25, %v2070_v39 }
 0x40c   :  { %v2170_v52 = vadd.f32 %v7144_v47, %v2118_v5 }
 0x40e   :  { %v2228_v22 = vmax.f32 %v2168_v48, %v2170_v52  ;;  %v1779_v35 = vpop.f32.mrf.mxu0 }
 0x40f   :  { %v2023_v15 = vadd.f32 %v1779_v35, %v8280_v55  ;;  %v1927_v41 = vpop.f32.mrf.mxu1  ;;  %v8288_v35 = vld [vmem:[#allocation15_spill] sm:$0xff] }
 0x410   :  { %v2230_v0 = vmax.f32 %v2228_v22, 0.0  ;;  %v2071_v60 = vadd.f32 %v1927_v41, %v8281_v42 }
 0x411   :  { %4719 = vmatmul.msk.bf16.gmra.mxu0 %vm255_vm1, %v5869_v63 }
 0x412   :  { %v5762_v30 = vpack.c.bf16 %v2230_v0, %v2229_v13  ;;  %v2119_v8 = vmax.f32 %v2023_v15, %v2071_v60  ;;  %4751 = vmatmul.msk.bf16.gmra.mxu1 %vm255_vm1, %v5869_v63  ;;  %v8289_v0 = vld [vmem:[#allocation21_spill] sm:$0xff]  ;;  %v5871_v60 = vld [vmem:[%s8066_s0 + $0xb0] sm:$0xff] }
 0x414   :  { %5826 = vst [vmem:[#allocation2 + $0x18] sm:$0xff] %v5762_v30   ;;  %v2171_v26 = vadd.f32 %v7144_v47, %v2119_v8  ;;  %v5607_v8 = vld [vmem:[%s8070_s4 + $0x38] sm:$0xff] }
 0x415   :  { %2679 = vmatpush.bf16.msrb.mxu2 %v5607_v8 }
 0x416   :  { %v1781_v61 = vpop.f32.mrf.mxu0 }
 0x417   :  { %v2024_v51 = vadd.f32 %v1781_v61, %v8282_v14  ;;  %v1929_v45 = vpop.f32.mrf.mxu1  ;;  %v5615_v61 = vld [vmem:[%s8071_s5 + $0x38] sm:$0xff] }
 0x418   :  { %v2072_v43 = vadd.f32 %v1929_v45, %v8283_v4  ;;  %v5672_v14 = vld [vmem:[%s8070_s4 + $0xf8] sm:$0xff]  ;;  %2776 = vmatpush.bf16.msrb.mxu3 %v5615_v61  ;;  %v8290_v4 = vld [vmem:[#allocation17_spill] sm:$0xff]  ;;  %v8295_v61 = vld [vmem:[#allocation26_spill] sm:$0xff] }
 0x419   :  { %3278 = vmatpush.bf16.msrb.mxu0 %v5672_v14  ;;  %v8296_v14 = vld [vmem:[#allocation23_spill] sm:$0xff] }
 0x41a   :  { %v2120_v58 = vmax.f32 %v2024_v51, %v2072_v43  ;;  %v5680_v51 = vld [vmem:[%s8071_s5 + $0xf8] sm:$0xff] }
 0x41b   :  { %v7253_v3 = vld [vmem:[#allocation2 + $0x18] sm:$0xff]  ;;  %3392 = vmatpush.bf16.msrb.mxu1 %v5680_v51  ;;  %v1680_v51 = vadd.f32 %v8296_v14, %v8295_v61 }
 0x41c   :  { %2480 = vmatmul.bf16.gmra.mxu2 %v7253_v3  ;;  %2594 = vmatmul.bf16.gmra.mxu3 %v7253_v3  ;;  %v2172_v5 = vadd.f32 %v7144_v47, %v2120_v58 }
 0x41e   :  { %v1784_v24 = vpop.f32.mrf.mxu0 }
 0x41f   :  { %v2025_v57 = vadd.f32 %v1784_v24, %v8284_v10  ;;  %v1932_v53 = vpop.f32.mrf.mxu1  ;;  %v8291_v24 = vld [vmem:[#allocation18_spill] sm:$0xff] }
 0x420   :  { %v2073_v27 = vadd.f32 %v1932_v53, %v8285_v21  ;;  %v5606_v21 = vld [vmem:[%s8070_s4 + $0x30] sm:$0xff] }
 0x421   :  { %4720 = vmatmul.msk.bf16.gmra.mxu0 %vm255_vm1, %v5870_v28  ;;  %2680 = vmatpush.bf16.msrb.mxu2 %v5606_v21  ;;  %v5670_v21 = vld [vmem:[%s8070_s4 + $0xe8] sm:$0xff] }
 0x422   :  { %v2121_v36 = vmax.f32 %v2025_v57, %v2073_v27  ;;  %4752 = vmatmul.msk.bf16.gmra.mxu1 %vm255_vm1, %v5870_v28  ;;  %v5614_v27 = vld [vmem:[%s8071_s5 + $0x30] sm:$0xff] }
 0x423   :  { %2777 = vmatpush.bf16.msrb.mxu3 %v5614_v27  ;;  %v5678_v27 = vld [vmem:[%s8071_s5 + $0xe8] sm:$0xff] }
 0x424   :  { %v2173_v59 = vadd.f32 %v7144_v47, %v2121_v36  ;;  %v8292_v36 = vld [vmem:[#allocation19_spill] sm:$0xff] }
 0x426   :  { %v2235_v17 = vmax.f32 %v2171_v26, %v2173_v59  ;;  %v1786_v29 = vpop.f32.mrf.mxu0 }
 0x427   :  { %v2026_v31 = vadd.f32 %v1786_v29, %v8286_v9  ;;  %v1934_v25 = vpop.f32.mrf.mxu1  ;;  %v5872_v29 = vld [vmem:[%s8066_s0 + $0xb8] sm:$0xff] }
 0x428   :  { %v2074_v49 = vadd.f32 %v1934_v25, %v8287_v62  ;;  %v2237_v41 = vmax.f32 %v2235_v17, 0.0 }
 0x42a   :  { %v2122_v39 = vmax.f32 %v2026_v31, %v2074_v49 }
 0x42c   :  { %v2174_v48 = vadd.f32 %v7144_v47, %v2122_v39 }
 0x42e   :  { %v2236_v52 = vmax.f32 %v2172_v5, %v2174_v48  ;;  %v1789_v22 = vpop.f32.mrf.mxu0 }
 0x42f   :  { %v2027_v55 = vadd.f32 %v1789_v22, %v8288_v35  ;;  %v1937_v15 = vpop.f32.mrf.mxu1 }
 0x430   :  { %v2238_v13 = vmax.f32 %v2236_v52, 0.0  ;;  %v2075_v42 = vadd.f32 %v1937_v15, %v8289_v0 }
 0x431   :  { %4721 = vmatmul.msk.bf16.gmra.mxu0 %vm255_vm1, %v5871_v60 }
 0x432   :  { %v5767_v63 = vpack.c.bf16 %v2238_v13, %v2237_v41  ;;  %v2123_v30 = vmax.f32 %v2027_v55, %v2075_v42  ;;  %4753 = vmatmul.msk.bf16.gmra.mxu1 %vm255_vm1, %v5871_v60 }
 0x434   :  { %5827 = vst [vmem:[#allocation2 + $0x50] sm:$0xff] %v5767_v63   ;;  %v2175_v31 = vadd.f32 %v7144_v47, %v2123_v30  ;;  %v5613_v63 = vld [vmem:[%s8071_s5 + $0x28] sm:$0xff] }
 0x435   :  { %v8294_v30 = vld [vmem:[#allocation22_spill] sm:$0xff]  ;;  %2778 = vmatpush.bf16.msrb.mxu3 %v5613_v63 }
 0x436   :  { %v1791_v45 = vpop.f32.mrf.mxu0 }
 0x437   :  { %v2028_v43 = vadd.f32 %v1791_v45, %v8290_v4  ;;  %v1939_v58 = vpop.f32.mrf.mxu1  ;;  %v5671_v4 = vld [vmem:[%s8070_s4 + $0xf0] sm:$0xff] }
 0x438   :  { %v2076_v10 = vadd.f32 %v1939_v58, %v8291_v24  ;;  %3279 = vmatpush.bf16.msrb.mxu0 %v5671_v4  ;;  %v8301_v4 = vld [vmem:[#allocation28_spill] sm:$0xff] }
 0x43a   :  { %v2124_v57 = vmax.f32 %v2028_v43, %v2076_v10  ;;  %v5679_v43 = vld [vmem:[%s8071_s5 + $0xf0] sm:$0xff] }
 0x43b   :  { %v7291_v53 = vld [vmem:[#allocation2 + $0x50] sm:$0xff]  ;;  %3393 = vmatpush.bf16.msrb.mxu1 %v5679_v43 }
 0x43c   :  { %2485 = vmatmul.bf16.gmra.mxu2 %v7291_v53  ;;  %2599 = vmatmul.bf16.gmra.mxu3 %v7291_v53  ;;  %v2176_v52 = vadd.f32 %v7144_v47, %v2124_v57 }
 0x43d   :  { %3280 = vmatpush.bf16.msrb.mxu0 %v5670_v21  ;;  %v5611_v21 = vld [vmem:[%s8071_s5 + $0x18] sm:$0xff] }
 0x43e   :  { %v1794_v28 = vpop.f32.mrf.mxu0 }
 0x43f   :  { %v2029_v26 = vadd.f32 %v1794_v28, %v8292_v36  ;;  %v1942_v59 = vpop.f32.mrf.mxu1  ;;  %3394 = vmatpush.bf16.msrb.mxu1 %v5678_v27  ;;  %v5604_v36 = vld [vmem:[%s8070_s4 + $0x20] sm:$0xff] }
 0x440   :  { %v2077_v17 = vadd.f32 %v1942_v59, %v6823_v54  ;;  %v8303_v27 = vld [vmem:[#allocation29_spill] sm:$0xff] }
 0x441   :  { %4722 = vmatmul.msk.bf16.gmra.mxu0 %vm255_vm1, %v5872_v29 }
 0x442   :  { %v2125_v9 = vmax.f32 %v2029_v26, %v2077_v17  ;;  %4754 = vmatmul.msk.bf16.gmra.mxu1 %vm255_vm1, %v5872_v29  ;;  %v5612_v26 = vld [vmem:[%s8071_s5 + $0x20] sm:$0xff] }
 0x443   :  { %v5669_v17 = vld [vmem:[%s8070_s4 + $0xe0] sm:$0xff]  ;;  %2779 = vmatpush.bf16.msrb.mxu3 %v5612_v26 }
 0x444   :  { %v2177_v25 = vadd.f32 %v7144_v47, %v2125_v9  ;;  %v5677_v29 = vld [vmem:[%s8071_s5 + $0xe0] sm:$0xff]  ;;  %3281 = vmatpush.bf16.msrb.mxu0 %v5669_v17 }
 0x445   :  { %3395 = vmatpush.bf16.msrb.mxu1 %v5677_v29  ;;  %v8306_v17 = vld [vmem:[#allocation33_spill] sm:$0xff] }
 0x446   :  { %v2243_v62 = vmax.f32 %v2175_v31, %v2177_v25  ;;  %v1796_v49 = vpop.f32.mrf.mxu0 }
 0x447   :  { %v2030_v39 = vadd.f32 %v1796_v49, %v6827_v6  ;;  %v1944_v5 = vpop.f32.mrf.mxu1  ;;  %v5873_v6 = vld [vmem:[%s8066_s0 + $0xc0] sm:$0xff]  ;;  %v5668_v49 = vld [vmem:[%s8070_s4 + $0xd8] sm:$0xff]  ;;  %2780 = vmatpush.bf16.msrb.mxu3 %v5611_v21 }
 0x448   :  { %v2078_v54 = vadd.f32 %v1944_v5, %v6829_v34  ;;  %v2245_v13 = vmax.f32 %v2243_v62, 0.0  ;;  %3282 = vmatpush.bf16.msrb.mxu0 %v5668_v49  ;;  %v8297_v5 = vld [vmem:[#allocation25_spill] sm:$0xff] }
 0x44a   :  { %v2126_v48 = vmax.f32 %v2030_v39, %v2078_v54  ;;  %v1634_v54 = vadd.f32 %v8297_v5, %v6876_v18  ;;  %v5666_v18 = vld [vmem:[%s8070_s4 + $0xc8] sm:$0xff]  ;;  %v5610_v5 = vld [vmem:[%s8071_s5 + $0x10] sm:$0xff] }
 0x44b   :  { %2781 = vmatpush.bf16.msrb.mxu3 %v5610_v5  ;;  %v5600_v5 = vld [vmem:[%s8070_s4] sm:$0xff] }
 0x44c   :  { %v2178_v22 = vadd.f32 %v7144_v47, %v2126_v48  ;;  %v8298_v48 = vld [vmem:[#allocation24_spill] sm:$0xff] }
 0x44e   :  { %v2244_v35 = vmax.f32 %v2176_v52, %v2178_v22  ;;  %v1799_v55 = vpop.f32.mrf.mxu0  ;;  %v8299_v52 = vld [vmem:[#allocation31_spill] sm:$0xff] }
 0x44f   :  { %v2031_v15 = vadd.f32 %v1799_v55, %v6841_v20  ;;  %v1947_v41 = vpop.f32.mrf.mxu1  ;;  %v5605_v20 = vld [vmem:[%s8070_s4 + $0x28] sm:$0xff]  ;;  %v5667_v55 = vld [vmem:[%s8070_s4 + $0xd0] sm:$0xff] }
 0x450   :  { %v2246_v0 = vmax.f32 %v2244_v35, 0.0  ;;  %v2079_v42 = vadd.f32 %v1947_v41, %v6843_v11  ;;  %v8293_v11 = vld [vmem:[#allocation20_spill] sm:$0xff]  ;;  %2681 = vmatpush.bf16.msrb.mxu2 %v5605_v20  ;;  %3283 = vmatpush.bf16.msrb.mxu0 %v5667_v55 }
 0x451   :  { %4723 = vmatmul.msk.bf16.gmra.mxu0 %vm255_vm1, %v5873_v6  ;;  %v1632_v8 = vadd.f32 %v8294_v30, %v8293_v11  ;;  %v5665_v11 = vld [vmem:[%s8070_s4 + $0xc0] sm:$0xff] }
 0x452   :  { %v5772_v34 = vpack.c.bf16 %v2246_v0, %v2245_v13  ;;  %v2127_v60 = vmax.f32 %v2031_v15, %v2079_v42  ;;  %4755 = vmatmul.msk.bf16.gmra.mxu1 %vm255_vm1, %v5873_v6  ;;  %v5675_v15 = vld [vmem:[%s8071_s5 + $0xd0] sm:$0xff]  ;;  %v5674_v6 = vld [vmem:[%s8071_s5 + $0xc8] sm:$0xff]  ;;  %v5673_v30 = vld [vmem:[%s8071_s5 + $0xc0] sm:$0xff] }
 0x454   :  { %5828 = vst [vmem:[#allocation2 + $0x20] sm:$0xff] %v5772_v34   ;;  %2682 = vmatpush.bf16.msrb.mxu2 %v5604_v36  ;;  %v2179_v39 = vadd.f32 %v7144_v47, %v2127_v60  ;;  %3284 = vmatpush.bf16.msrb.mxu0 %v5666_v18  ;;  %v8304_v36 = vld [vmem:[#allocation32_spill] sm:$0xff]  ;;  %v8311_v18 = vld [vmem:[#allocation39_spill] sm:$0xff] }
 0x455   :  { %v1636_v26 = vadd.f32 %v8304_v36, %v8303_v27  ;;  %v5601_v27 = vld [vmem:[%s8070_s4 + $0x8] sm:$0xff] }
 0x456   :  { %v1801_v45 = vpop.f32.mrf.mxu0  ;;  %v5609_v36 = vld [vmem:[%s8071_s5 + $0x8] sm:$0xff] }
 0x457   :  { %v2032_v58 = vadd.f32 %v1801_v45, %v1632_v8  ;;  %v1949_v24 = vpop.f32.mrf.mxu1  ;;  %v8300_v8 = vld [vmem:[#allocation27_spill] sm:$0xff]  ;;  %2782 = vmatpush.bf16.msrb.mxu3 %v5609_v36  ;;  %v5648_v36 = vld [vmem:[%s8070_s4 + $0xb8] sm:$0xff] }
 0x458   :  { %v2080_v10 = vadd.f32 %v1949_v24, %v1680_v51  ;;  %3285 = vmatpush.bf16.msrb.mxu0 %v5665_v11 }
 0x45a   :  { %v2128_v57 = vmax.f32 %v2032_v58, %v2080_v10  ;;  %v8302_v58 = vld [vmem:[#allocation34_spill] sm:$0xff] }
 0x45b   :  { %v7343_v28 = vld [vmem:[#allocation2 + $0x20] sm:$0xff] }
 0x45c   :  { %2490 = vmatmul.bf16.gmra.mxu2 %v7343_v28  ;;  %2604 = vmatmul.bf16.gmra.mxu3 %v7343_v28  ;;  %v2180_v34 = vadd.f32 %v7144_v47, %v2128_v57  ;;  %v5603_v57 = vld [vmem:[%s8070_s4 + $0x18] sm:$0xff] }
 0x45d   :  { %2683 = vmatpush.bf16.msrb.mxu2 %v5603_v57 }
 0x45e   :  { %v1804_v59 = vpop.f32.mrf.mxu0 }
 0x45f   :  { %v2033_v9 = vadd.f32 %v1804_v59, %v6871_v40  ;;  %v1952_v31 = vpop.f32.mrf.mxu1  ;;  %v5676_v40 = vld [vmem:[%s8071_s5 + $0xd8] sm:$0xff]  ;;  %v8305_v59 = vld [vmem:[#allocation30_spill] sm:$0xff] }
 0x460   :  { %v2081_v25 = vadd.f32 %v1952_v31, %v6873_v46  ;;  %3396 = vmatpush.bf16.msrb.mxu1 %v5676_v40  ;;  %v1684_v29 = vadd.f32 %v8306_v17, %v8305_v59  ;;  %v8314_v59 = vld [vmem:[#allocation43_spill] sm:$0xff] }
 0x461   :  { %4724 = vmatmul.msk.bf16.gmra.mxu0 %vm255_vm1, %v6888_v16 }
 0x462   :  { %v2129_v62 = vmax.f32 %v2033_v9, %v2081_v25  ;;  %4756 = vmatmul.msk.bf16.gmra.mxu1 %vm255_vm1, %v6888_v16  ;;  %v1682_v16 = vadd.f32 %v8299_v52, %v8298_v48 }
 0x464   :  { %v2181_v46 = vadd.f32 %v7144_v47, %v2129_v62  ;;  %3397 = vmatpush.bf16.msrb.mxu1 %v5675_v15 }
 0x466   :  { %v2251_v22 = vmax.f32 %v2179_v39, %v2181_v46  ;;  %v1806_v35 = vpop.f32.mrf.mxu0  ;;  %v5571_v39 = vld [vmem:[%s8066_s0 + $0xd8] sm:$0xff]  ;;  %v5602_v46 = vld [vmem:[%s8070_s4 + $0x10] sm:$0xff] }
 0x467   :  { %v2034_v41 = vadd.f32 %v1806_v35, %v1634_v54  ;;  %v1954_v13 = vpop.f32.mrf.mxu1  ;;  %2684 = vmatpush.bf16.msrb.mxu2 %v5602_v46 }
 0x468   :  { %v2082_v0 = vadd.f32 %v1954_v13, %v1682_v16  ;;  %3398 = vmatpush.bf16.msrb.mxu1 %v5674_v6  ;;  %v2253_v51 = vmax.f32 %v2251_v22, 0.0  ;;  %v8307_v16 = vld [vmem:[#allocation35_spill] sm:$0xff]  ;;  %v8309_v13 = vld [vmem:[#allocation38_spill] sm:$0xff] }
 0x46a   :  { %v2130_v42 = vmax.f32 %v2034_v41, %v2082_v0  ;;  %v8308_v41 = vld [vmem:[#allocation36_spill] sm:$0xff] }
 0x46b   :  { %v1638_v0 = vadd.f32 %v8309_v13, %v8308_v41  ;;  %2685 = vmatpush.bf16.msrb.mxu2 %v5601_v27 }
 0x46c   :  { %v2182_v60 = vadd.f32 %v7144_v47, %v2130_v42  ;;  %3399 = vmatpush.bf16.msrb.mxu1 %v5673_v30  ;;  %v8310_v42 = vld [vmem:[#allocation37_spill] sm:$0xff] }
 0x46e   :  { %v2252_v20 = vmax.f32 %v2180_v34, %v2182_v60  ;;  %v1809_v63 = vpop.f32.mrf.mxu0 }
 0x46f   :  { %v2035_v61 = vadd.f32 %v1809_v63, %v8300_v8  ;;  %v1957_v14 = vpop.f32.mrf.mxu1  ;;  %2686 = vmatpush.bf16.msrb.mxu2 %v5600_v5  ;;  %v7484_v5 = vpop.f32.mrf.mxu3 }
 0x470   :  { %v2254_v45 = vmax.f32 %v2252_v20, 0.0  ;;  %v2083_v43 = vadd.f32 %v1957_v14, %v8301_v4 }
 0x471   :  { %4725 = vmatmul.msk.bf16.gmra.mxu0 %vm255_vm1, %v8302_v58 }
 0x472   :  { %v5777_v24 = vpack.c.bf16 %v2254_v45, %v2253_v51  ;;  %v2131_v10 = vmax.f32 %v2035_v61, %v2083_v43  ;;  %4757 = vmatmul.msk.bf16.gmra.mxu1 %vm255_vm1, %v8302_v58  ;;  %v8312_v51 = vld [vmem:[#allocation40_spill] sm:$0xff] }
 0x473   :  { %v5657_v43 = vld [vmem:[#allocation2 + $0x18] sm:$0xff]  ;;  %2954 = vmatpush.bf16.msra.mxu2 %v5648_v36  ;;  %v8333_v36 = vld [vmem:[#allocation55_spill] sm:$0xff] }
 0x474   :  { %5829 = vst [vmem:[#allocation2 + $0x8] sm:$0xff] %v5777_v24   ;;  %v2183_v55 = vadd.f32 %v7144_v47, %v2131_v10 }
 0x476   :  { %v1811_v9 = vpop.f32.mrf.mxu0 }
 0x477   :  { %v2036_v31 = vadd.f32 %v1811_v9, %v1636_v26  ;;  %v1959_v25 = vpop.f32.mrf.mxu1  ;;  %v8313_v26 = vld [vmem:[#allocation41_spill] sm:$0xff]  ;;  %v8316_v9 = vld [vmem:[#allocation44_spill] sm:$0xff] }
 0x478   :  { %v2084_v62 = vadd.f32 %v1959_v25, %v1684_v29  ;;  %v1640_v17 = vadd.f32 %v8314_v59, %v8313_v26  ;;  %v8315_v29 = vld [vmem:[#allocation42_spill] sm:$0xff]  ;;  %v5656_v26 = vld [vmem:[%s8071_s5 + $0xb8] sm:$0xff] }
 0x479   :  { %v8324_v59 = vld [vmem:[#allocation68_spill] sm:$0xff] }
 0x47a   :  { %v2132_v49 = vmax.f32 %v2036_v31, %v2084_v62  ;;  %v1688_v31 = vadd.f32 %v8316_v9, %v8315_v29  ;;  %v8325_v29 = vld [vmem:[#allocation51_spill] sm:$0xff]  ;;  %v8326_v9 = vld [vmem:[#allocation69_spill] sm:$0xff] }
 0x47b   :  { %v7413_v40 = vld [vmem:[#allocation2 + $0x8] sm:$0xff] }
 0x47c   :  { %2495 = vmatmul.bf16.gmra.mxu2 %v7413_v40  ;;  %2609 = vmatmul.bf16.gmra.mxu3 %v7413_v40  ;;  %v2184_v30 = vadd.f32 %v7144_v47, %v2132_v49 }
 0x47e   :  { %v1814_v54 = vpop.f32.mrf.mxu0 }
 0x47f   :  { %v2037_v48 = vadd.f32 %v1814_v54, %v6929_v50  ;;  %v1962_v52 = vpop.f32.mrf.mxu1  ;;  %v1686_v50 = vadd.f32 %v8311_v18, %v8310_v42  ;;  %v5608_v54 = vld [vmem:[%s8071_s5] sm:$0xff]  ;;  %v8319_v42 = vld [vmem:[#allocation48_spill] sm:$0xff] }
 0x480   :  { %v2085_v22 = vadd.f32 %v1962_v52, %v8307_v16  ;;  %v8317_v52 = vld [vmem:[#allocation45_spill] sm:$0xff]  ;;  %2783 = vmatpush.bf16.msrb.mxu3 %v5608_v54 }
 0x481   :  { %4726 = vmatmul.msk.bf16.gmra.mxu0 %vm255_vm1, %v5571_v39 }
 0x482   :  { %v2133_v35 = vmax.f32 %v2037_v48, %v2085_v22  ;;  %4758 = vmatmul.msk.bf16.gmra.mxu1 %vm255_vm1, %v5571_v39 }
 0x484   :  { %v2185_v15 = vadd.f32 %v7144_v47, %v2133_v35  ;;  %v5658_v35 = vld [vmem:[#allocation2 + $0x50] sm:$0xff]  ;;  %3068 = vmatpush.bf16.msra.mxu3 %v5656_v26 }
 0x486   :  { %v2259_v6 = vmax.f32 %v2183_v55, %v2185_v15  ;;  %v1816_v34 = vpop.f32.mrf.mxu0 }
 0x487   :  { %v2038_v60 = vadd.f32 %v1816_v34, %v1638_v0  ;;  %v1964_v20 = vpop.f32.mrf.mxu1  ;;  %v8318_v0 = vld [vmem:[#allocation46_spill] sm:$0xff] }
 0x488   :  { %v2086_v63 = vadd.f32 %v1964_v20, %v1686_v50  ;;  %v2261_v58 = vmax.f32 %v2259_v6, 0.0  ;;  %v1642_v18 = vadd.f32 %v8319_v42, %v8318_v0  ;;  %v8320_v50 = vld [vmem:[#allocation47_spill] sm:$0xff] }
 0x489   :  { %v8321_v6 = vld [vmem:[#allocation67_spill] sm:$0xff] }
 0x48a   :  { %v2134_v11 = vmax.f32 %v2038_v60, %v2086_v63  ;;  %v1690_v34 = vadd.f32 %v8321_v6, %v8320_v50 }
 0x48c   :  { %v2186_v8 = vadd.f32 %v7144_v47, %v2134_v11 }
 0x48e   :  { %v2260_v61 = vmax.f32 %v2184_v30, %v2186_v8  ;;  %v1819_v14 = vpop.f32.mrf.mxu0 }
 0x48f   :  { %v2039_v45 = vadd.f32 %v1819_v14, %v8312_v51  ;;  %v1967_v4 = vpop.f32.mrf.mxu1 }
 0x490   :  { %v2262_v24 = vmax.f32 %v2260_v61, 0.0  ;;  %v2087_v10 = vadd.f32 %v1967_v4, %v6958_v33 }
 0x491   :  { %3286 = vmatmul.bf16.vlgmr.msrb.gmra.mxu0 %v5657_v43 }
 0x492   :  { %v5782_v57 = vpack.c.bf16 %v2262_v24, %v2261_v58  ;;  %v2135_v21 = vmax.f32 %v2039_v45, %v2087_v10  ;;  %3400 = vmatmul.bf16.vlgmr.msrb.gmra.mxu1 %v5657_v43  ;;  %v5659_v43 = vld [vmem:[#allocation2 + $0x20] sm:$0xff] }
 0x493   :  { %v8322_v10 = vld [vmem:[#allocation49_spill] sm:$0xff] }
 0x494   :  { %5830 = vst [vmem:[#allocation2 + $0x38] sm:$0xff] %v5782_v57   ;;  %v2187_v41 = vadd.f32 %v7144_v47, %v2135_v21 }
 0x496   :  { %v1821_v33 = vpop.f32.mrf.mxu0 }
 0x497   :  { %v2040_v25 = vadd.f32 %v1821_v33, %v1640_v17  ;;  %v1969_v62 = vpop.f32.mrf.mxu1 }
 0x498   :  { %v2088_v49 = vadd.f32 %v1969_v62, %v1688_v31  ;;  %v1692_v31 = vadd.f32 %v8326_v9, %v8325_v29  ;;  %v8334_v9 = vld [vmem:[#allocation73_spill] sm:$0xff] }
 0x49a   :  { %v2136_v39 = vmax.f32 %v2040_v25, %v2088_v49 }
 0x49b   :  { %v7450_v46 = vld [vmem:[#allocation2 + $0x38] sm:$0xff] }
 0x49c   :  { %2500 = vmatmul.bf16.gmra.mxu2 %v7450_v46  ;;  %2614 = vmatmul.bf16.gmra.mxu3 %v7450_v46 }
 0x49e   :  { %v1824_v48 = vpop.f32.mrf.mxu0 }
 0x49f   :  { %v2041_v16 = vadd.f32 %v1824_v48, %v8317_v52  ;;  %v1972_v22 = vpop.f32.mrf.mxu1  ;;  %v5647_v52 = vld [vmem:[%s8070_s4 + $0xb0] sm:$0xff] }
 0x4a0   :  { %v2089_v55 = vadd.f32 %v1972_v22, %v6979_v37  ;;  %v2188_v37 = vadd.f32 %v7144_v47, %v2136_v39  ;;  %v7482_v39 = vpop.f32.mrf.mxu2  ;;  %2955 = vmatpush.bf16.msra.mxu2 %v5647_v52  ;;  %v8335_v52 = vld [vmem:[#allocation56_spill] sm:$0xff] }
 0x4a1   :  { %3291 = vmatmul.bf16.gmra.mxu0 %v5658_v35 }
 0x4a2   :  { %v2137_v15 = vmax.f32 %v2041_v16, %v2089_v55  ;;  %3405 = vmatmul.bf16.gmra.mxu1 %v5658_v35  ;;  %v5655_v16 = vld [vmem:[%s8071_s5 + $0xb0] sm:$0xff]  ;;  %v8327_v35 = vld [vmem:[#allocation52_spill] sm:$0xff] }
 0x4a3   :  { %3069 = vmatpush.bf16.msra.mxu3 %v5655_v16  ;;  %v8336_v16 = vld [vmem:[#allocation74_spill] sm:$0xff] }
 0x4a4   :  { %v2189_v13 = vadd.f32 %v7144_v47, %v2137_v15 }
 0x4a6   :  { %v2267_v60 = vmax.f32 %v2187_v41, %v2189_v13  ;;  %v1826_v20 = vpop.f32.mrf.mxu0  ;;  %v5660_v41 = vld [vmem:[#allocation2 + $0x8] sm:$0xff] }
 0x4a7   :  { %v2042_v63 = vadd.f32 %v1826_v20, %v1642_v18  ;;  %v1974_v11 = vpop.f32.mrf.mxu1  ;;  %v8328_v13 = vld [vmem:[#allocation70_spill] sm:$0xff]  ;;  %v7496_v18 = vpop.f32.mrf.mxu3  ;;  %v8330_v20 = vld [vmem:[#allocation71_spill] sm:$0xff] }
 0x4a8   :  { %v2090_v30 = vadd.f32 %v1974_v11, %v1690_v34  ;;  %v2269_v58 = vmax.f32 %v2267_v60, 0.0  ;;  %v7494_v42 = vpop.f32.mrf.mxu2  ;;  %v8329_v60 = vld [vmem:[#allocation53_spill] sm:$0xff]  ;;  %v8331_v11 = vld [vmem:[#allocation54_spill] sm:$0xff] }
 0x4aa   :  { %v2138_v8 = vmax.f32 %v2042_v63, %v2090_v30  ;;  %v1646_v63 = vadd.f32 %v8330_v20, %v8329_v60  ;;  %v8332_v30 = vld [vmem:[#allocation72_spill] sm:$0xff]  ;;  %v5645_v60 = vld [vmem:[%s8070_s4 + $0xa0] sm:$0xff] }
 0x4ab   :  { %v5653_v20 = vld [vmem:[%s8071_s5 + $0xa0] sm:$0xff] }
 0x4ac   :  { %v2190_v61 = vadd.f32 %v7144_v47, %v2138_v8  ;;  %v1694_v8 = vadd.f32 %v8332_v30, %v8331_v11 }
 0x4ae   :  { %v2268_v14 = vmax.f32 %v2188_v37, %v2190_v61  ;;  %v1829_v51 = vpop.f32.mrf.mxu0 }
 0x4af   :  { %v2043_v45 = vadd.f32 %v1829_v51, %v6998_v56  ;;  %v1977_v4 = vpop.f32.mrf.mxu1  ;;  %v8323_v56 = vld [vmem:[#allocation50_spill] sm:$0xff] }
 0x4b0   :  { %v2270_v24 = vmax.f32 %v2268_v14, 0.0  ;;  %v2091_v57 = vadd.f32 %v1977_v4, %v8322_v10  ;;  %v1644_v17 = vadd.f32 %v8324_v59, %v8323_v56  ;;  %v5661_v59 = vld [vmem:[#allocation2 + $0x38] sm:$0xff] }
 0x4b1   :  { %3296 = vmatmul.bf16.gmra.mxu0 %v5659_v43 }
 0x4b2   :  { %v5787_v21 = vpack.c.bf16 %v2270_v24, %v2269_v58  ;;  %v2139_v27 = vmax.f32 %v2043_v45, %v2091_v57  ;;  %3410 = vmatmul.bf16.gmra.mxu1 %v5659_v43  ;;  %v7504_v43 = vpop.f32.mrf.mxu2  ;;  %v5592_v58 = vld [vmem:[#allocation2 + $0x30] sm:$0xff]  ;;  %v7506_v24 = vpop.f32.mrf.mxu3 }
 0x4b4   :  { %5831 = vst [vmem:[#allocation2 + $0x28] sm:$0xff] %v5787_v21   ;;  %v2191_v6 = vadd.f32 %v7144_v47, %v2139_v27 }
 0x4b6   :  { %v1831_v33 = vpop.f32.mrf.mxu0 }
 0x4b7   :  { %v2044_v25 = vadd.f32 %v1831_v33, %v1644_v17  ;;  %v1979_v62 = vpop.f32.mrf.mxu1 }
 0x4b8   :  { %v2092_v49 = vadd.f32 %v1979_v62, %v1692_v31 }
 0x4ba   :  { %v2140_v54 = vmax.f32 %v2044_v25, %v2092_v49  ;;  %v7512_v62 = vpop.f32.mrf.mxu2  ;;  %v7514_v49 = vpop.f32.mrf.mxu3 }
 0x4bb   :  { %v5616_v48 = vld [vmem:[#allocation2 + $0x28] sm:$0xff] }
 0x4bc   :  { %2505 = vmatmul.bf16.gmra.mxu2 %v5616_v48  ;;  %2619 = vmatmul.bf16.gmra.mxu3 %v5616_v48  ;;  %v2192_v10 = vadd.f32 %v7144_v47, %v2140_v54  ;;  %v5646_v54 = vld [vmem:[%s8070_s4 + $0xa8] sm:$0xff] }
 0x4bd   :  { %v5654_v48 = vld [vmem:[%s8071_s5 + $0xa8] sm:$0xff]  ;;  %2956 = vmatpush.bf16.msra.mxu2 %v5646_v54 }
 0x4be   :  { %v1834_v22 = vpop.f32.mrf.mxu0  ;;  %3070 = vmatpush.bf16.msra.mxu3 %v5654_v48 }
 0x4bf   :  { %v2045_v55 = vadd.f32 %v1834_v22, %v8327_v35  ;;  %v1982_v15 = vpop.f32.mrf.mxu1  ;;  %v1648_v22 = vadd.f32 %v8336_v16, %v8335_v52  ;;  %v8337_v35 = vld [vmem:[#allocation57_spill] sm:$0xff] }
 0x4c0   :  { %v2093_v0 = vadd.f32 %v1982_v15, %v8328_v13 }
 0x4c1   :  { %3301 = vmatmul.bf16.gmra.mxu0 %v5660_v41  ;;  %2957 = vmatpush.bf16.msra.mxu2 %v5645_v60  ;;  %v8346_v60 = vld [vmem:[#allocation64_spill] sm:$0xff] }
 0x4c2   :  { %v2141_v50 = vmax.f32 %v2045_v55, %v2093_v0  ;;  %3415 = vmatmul.bf16.gmra.mxu1 %v5660_v41  ;;  %v8338_v55 = vld [vmem:[#allocation75_spill] sm:$0xff]  ;;  %3071 = vmatpush.bf16.msra.mxu3 %v5653_v20 }
 0x4c3   :  { %v1696_v15 = vadd.f32 %v8338_v55, %v8337_v35 }
 0x4c4   :  { %v2193_v34 = vadd.f32 %v7144_v47, %v2141_v50 }
 0x4c6   :  { %v2275_v37 = vmax.f32 %v2191_v6, %v2193_v34  ;;  %v1836_v61 = vpop.f32.mrf.mxu0  ;;  %v7526_v34 = vpop.f32.mrf.mxu2 }
 0x4c7   :  { %v2046_v14 = vadd.f32 %v1836_v61, %v1646_v63  ;;  %v1984_v51 = vpop.f32.mrf.mxu1  ;;  %v7536_v63 = vpop.f32.mrf.mxu3  ;;  %v8339_v61 = vld [vmem:[#allocation58_spill] sm:$0xff] }
 0x4c8   :  { %v2094_v45 = vadd.f32 %v1984_v51, %v1694_v8  ;;  %v2277_v17 = vmax.f32 %v2275_v37, 0.0  ;;  %v5662_v37 = vld [vmem:[#allocation2 + $0x28] sm:$0xff] }
 0x4ca   :  { %v2142_v4 = vmax.f32 %v2046_v14, %v2094_v45 }
 0x4cc   :  { %v2194_v57 = vadd.f32 %v7144_v47, %v2142_v4  ;;  %2687 = vmatmul.bf16.vlgmr.msrb.gmra.mxu2 %v5592_v58  ;;  %2784 = vmatmul.bf16.vlgmr.msrb.gmra.mxu3 %v5592_v58  ;;  %v8340_v4 = vld [vmem:[#allocation59_spill] sm:$0xff]  ;;  %v8341_v58 = vld [vmem:[#allocation61_spill] sm:$0xff] }
 0x4ce   :  { %v2276_v21 = vmax.f32 %v2192_v10, %v2194_v57  ;;  %v1839_v27 = vpop.f32.mrf.mxu0  ;;  %v1650_v10 = vadd.f32 %v8341_v58, %v8340_v4  ;;  %v7544_v57 = vpop.f32.mrf.mxu2 }
 0x4cf   :  { %v2047_v26 = vadd.f32 %v1839_v27, %v8333_v36  ;;  %v1987_v56 = vpop.f32.mrf.mxu1  ;;  %v7548_v36 = vpop.f32.mrf.mxu3 }
 0x4d0   :  { %v2278_v29 = vmax.f32 %v2276_v21, 0.0  ;;  %v2095_v31 = vadd.f32 %v1987_v56, %v8334_v9  ;;  %v8342_v21 = vld [vmem:[#allocation60_spill] sm:$0xff] }
 0x4d1   :  { %3306 = vmatmul.bf16.gmra.mxu0 %v5661_v59 }
 0x4d2   :  { %v5792_v33 = vpack.c.bf16 %v2278_v29, %v2277_v17  ;;  %v2143_v25 = vmax.f32 %v2047_v26, %v2095_v31  ;;  %3420 = vmatmul.bf16.gmra.mxu1 %v5661_v59 }
 0x4d4   :  { %5832 = vst [vmem:[#allocation2 + $0x48] sm:$0xff] %v5792_v33   ;;  %v2195_v51 = vadd.f32 %v7144_v47, %v2143_v25 }
 0x4d6   :  { %v1841_v41 = vpop.f32.mrf.mxu0 }
 0x4d7   :  { %v2048_v13 = vadd.f32 %v1841_v41, %v1648_v22  ;;  %v1989_v0 = vpop.f32.mrf.mxu1  ;;  %v7555_v22 = vpop.f32.mrf.mxu2 }
 0x4d8   :  { %v2096_v50 = vadd.f32 %v1989_v0, %v1696_v15  ;;  %v7557_v35 = vpop.f32.mrf.mxu3  ;;  %v8344_v0 = vld [vmem:[#allocation63_spill] sm:$0xff] }
 0x4da   :  { %v2144_v6 = vmax.f32 %v2048_v13, %v2096_v50  ;;  %v1652_v50 = vadd.f32 %v8344_v0, %v7099_v38  ;;  %v5643_v38 = vld [vmem:[%s8070_s4 + $0x90] sm:$0xff]  ;;  %v5649_v0 = vld [vmem:[%s8071_s5 + $0x80] sm:$0xff] }
 0x4db   :  { %v5663_v16 = vld [vmem:[#allocation2 + $0x48] sm:$0xff] }
 0x4dc   :  { %2692 = vmatmul.bf16.gmra.mxu2 %v7201_v44  ;;  %2789 = vmatmul.bf16.gmra.mxu3 %v7201_v44  ;;  %v2196_v31 = vadd.f32 %v7144_v47, %v2144_v6  ;;  %v8345_v6 = vld [vmem:[#allocation62_spill] sm:$0xff] }
 0x4dd   :  { %v1700_v20 = vadd.f32 %v8346_v60, %v8345_v6  ;;  %v5704_v60 = vld [vmem:[%s8071_s5 + $0x138] sm:$0xff] }
 0x4de   :  { %v1844_v11 = vpop.f32.mrf.mxu0 }
 0x4df   :  { %v2049_v30 = vadd.f32 %v1844_v11, %v7067_v19  ;;  %v1992_v8 = vpop.f32.mrf.mxu1  ;;  %v8343_v19 = vld [vmem:[#allocation76_spill] sm:$0xff] }
 0x4e0   :  { %v2097_v14 = vadd.f32 %v1992_v8, %v8339_v61  ;;  %v1698_v27 = vadd.f32 %v8343_v19, %v8342_v21  ;;  %v7570_v8 = vpop.f32.mrf.mxu2 }
 0x4e1   :  { %3311 = vmatmul.bf16.gmra.mxu0 %v5662_v37 }
 0x4e2   :  { %v2145_v44 = vmax.f32 %v2049_v30, %v2097_v14  ;;  %3425 = vmatmul.bf16.gmra.mxu1 %v5662_v37  ;;  %v7572_v37 = vpop.f32.mrf.mxu3 }
 0x4e4   :  { %v2197_v45 = vadd.f32 %v7144_v47, %v2145_v44  ;;  %v5651_v44 = vld [vmem:[%s8071_s5 + $0x90] sm:$0xff] }
 0x4e6   :  { %v2283_v26 = vmax.f32 %v2195_v51, %v2197_v45  ;;  %v1846_v56 = vpop.f32.mrf.mxu0 }
 0x4e7   :  { %v2050_v59 = vadd.f32 %v1846_v56, %v1650_v10  ;;  %v1994_v17 = vpop.f32.mrf.mxu1 }
 0x4e8   :  { %v2098_v29 = vadd.f32 %v1994_v17, %v1698_v27  ;;  %v2285_v55 = vmax.f32 %v2283_v26, 0.0  ;;  %v7584_v21 = vpop.f32.mrf.mxu2  ;;  %v5874_v27 = vld [vmem:[%s8069_s3] ss:$0 sm:$0xff] }
 0x4ea   :  { %v2146_v9 = vmax.f32 %v2050_v59, %v2098_v29  ;;  %v8347_v59 = vld [vmem:[#allocation65_spill] sm:$0xff] }
 0x4eb   :  { %v1702_v17 = vadd.f32 %v7484_v5, %v8347_v59 }
 0x4ec   :  { %v2198_v33 = vadd.f32 %v7144_v47, %v2146_v9  ;;  %2697 = vmatmul.bf16.gmra.mxu2 %v7227_v7  ;;  %2794 = vmatmul.bf16.gmra.mxu3 %v7227_v7  ;;  %v5644_v7 = vld [vmem:[%s8070_s4 + $0x98] sm:$0xff] }
 0x4ed   :  { %2958 = vmatpush.bf16.msra.mxu2 %v5644_v7 }
 0x4ee   :  { %v2284_v25 = vmax.f32 %v2196_v31, %v2198_v33  ;;  %v1849_v54 = vpop.f32.mrf.mxu0 }
 0x4ef   :  { %v2051_v48 = vadd.f32 %v1849_v54, %v7094_v32  ;;  %v1997_v52 = vpop.f32.mrf.mxu1  ;;  %v5652_v32 = vld [vmem:[%s8071_s5 + $0x98] sm:$0xff] }
 0x4f0   :  { %v2286_v15 = vmax.f32 %v2284_v25, 0.0  ;;  %v2099_v41 = vadd.f32 %v1997_v52, %v7096_v23  ;;  %3072 = vmatpush.bf16.msra.mxu3 %v5652_v32  ;;  %v7595_v25 = vpop.f32.mrf.mxu2  ;;  %v5641_v32 = vld [vmem:[%s8070_s4 + $0x80] sm:$0xff] }
 0x4f1   :  { %3316 = vmatmul.bf16.gmra.mxu0 %v5663_v16  ;;  %2959 = vmatpush.bf16.msra.mxu2 %v5643_v38 }
 0x4f2   :  { %v5797_v47 = vpack.c.bf16 %v2286_v15, %v2285_v55  ;;  %v2147_v13 = vmax.f32 %v2051_v48, %v2099_v41  ;;  %3430 = vmatmul.bf16.gmra.mxu1 %v5663_v16 }
 0x4f4   :  { %5833 = vst [vmem:[#allocation2 + $0x10] sm:$0xff] %v5797_v47   ;;  %3073 = vmatpush.bf16.msra.mxu3 %v5651_v44  ;;  %v2199_v26 = vadd.f32 %v5874_v27, %v2147_v13 }
 0x4f6   :  { %v1851_v23 = vpop.f32.mrf.mxu0 }
 0x4f7   :  { %v2052_v11 = vadd.f32 %v1851_v23, %v1652_v50  ;;  %v1999_v30 = vpop.f32.mrf.mxu1 }
 0x4f8   :  { %v2100_v61 = vadd.f32 %v1999_v30, %v1700_v20  ;;  %v7607_v47 = vpop.f32.mrf.mxu2 }
 0x4f9   :  { %8348 = vst [vmem:[#allocation66_spill] sm:$0xff] %v7607_v47 }
 0x4fa   :  { %v2148_v14 = vmax.f32 %v2052_v11, %v2100_v61  ;;  %v5703_v61 = vld [vmem:[%s8071_s5 + $0x130] sm:$0xff] }
 0x4fb   :  { %v5664_v58 = vld [vmem:[#allocation2 + $0x10] sm:$0xff] }
 0x4fc   :  { %2702 = vmatmul.bf16.gmra.mxu2 %v7253_v3  ;;  %2799 = vmatmul.bf16.gmra.mxu3 %v7253_v3  ;;  %v7586_v3 = vpop.f32.mrf.mxu3  ;;  %v2200_v52 = vadd.f32 %v5874_v27, %v2148_v14 }
 0x4fe   :  { %v1854_v51 = vpop.f32.mrf.mxu0 }
 0x4ff   :  { %v2053_v45 = vadd.f32 %v1854_v51, %v7115_v12  ;;  %v2002_v4 = vpop.f32.mrf.mxu1  ;;  %v1654_v12 = vadd.f32 %v7482_v39, %v7120_v2  ;;  %v5642_v2 = vld [vmem:[%s8070_s4 + $0x88] sm:$0xff] }
 0x500   :  { %v2101_v10 = vadd.f32 %v2002_v4, %v7117_v1  ;;  %v5650_v39 = vld [vmem:[%s8071_s5 + $0x88] sm:$0xff]  ;;  %2960 = vmatpush.bf16.msra.mxu2 %v5642_v2 }
 0x501   :  { %3321 = vmatmul.bf16.gmra.mxu0 %v5664_v58  ;;  %3074 = vmatpush.bf16.msra.mxu3 %v5650_v39  ;;  %v5702_v4 = vld [vmem:[%s8071_s5 + $0x128] sm:$0xff]  ;;  %v5636_v39 = vld [vmem:[#allocation2 + $0x20] sm:$0xff] }
 0x502   :  { %v2149_v19 = vmax.f32 %v2053_v45, %v2101_v10  ;;  %3435 = vmatmul.bf16.gmra.mxu1 %v5664_v58  ;;  %v5633_v45 = vld [vmem:[#allocation2 + $0x58] sm:$0xff] }
 0x504   :  { %v2201_v56 = vadd.f32 %v5874_v27, %v2149_v19  ;;  %v7597_v54 = vpop.f32.mrf.mxu3  ;;  %2961 = vmatpush.bf16.msra.mxu2 %v5641_v32 }
 0x505   :  { %3075 = vmatpush.bf16.msra.mxu3 %v5649_v0 }
 0x506   :  { %v2291_v1 = vmax.f32 %v2199_v26, %v2201_v56  ;;  %v1856_v29 = vpop.f32.mrf.mxu0  ;;  %v5634_v26 = vld [vmem:[#allocation2 + $0x18] sm:$0xff]  ;;  %v5693_v56 = vld [vmem:[%s8070_s4 + $0x120] sm:$0xff] }
 0x507   :  { %v2054_v9 = vadd.f32 %v1856_v29, %v1654_v12  ;;  %v2004_v31 = vpop.f32.mrf.mxu1  ;;  %v5701_v12 = vld [vmem:[%s8071_s5 + $0x120] sm:$0xff] }
 0x508   :  { %v2102_v33 = vadd.f32 %v2004_v31, %v1702_v17  ;;  %v2293_v55 = vmax.f32 %v2291_v1, 0.0  ;;  %v5692_v31 = vld [vmem:[%s8070_s4 + $0x118] sm:$0xff] }
 0x509   :  { %3716 = vmatpush.bf16.msrb.mxu3 %v5704_v60  ;;  %v5690_v60 = vld [vmem:[%s8070_s4 + $0x108] sm:$0xff] }
 0x50a   :  { %v2150_v48 = vmax.f32 %v2054_v9, %v2102_v33  ;;  %v5635_v9 = vld [vmem:[#allocation2 + $0x50] sm:$0xff]  ;;  %v5700_v33 = vld [vmem:[%s8071_s5 + $0x118] sm:$0xff] }
 0x50c   :  { %v2202_v16 = vadd.f32 %v5874_v27, %v2150_v48  ;;  %2707 = vmatmul.bf16.gmra.mxu2 %v7291_v53  ;;  %2804 = vmatmul.bf16.gmra.mxu3 %v7291_v53  ;;  %v7609_v13 = vpop.f32.mrf.mxu3  ;;  %v7611_v53 = vpop.f32.mrf.mxu2 }
 0x50d   :  { %8349 = vst [vmem:[#allocation11_spill] sm:$0xff] %v7609_v13  ;;  %3717 = vmatpush.bf16.msrb.mxu3 %v5703_v61 }
 0x50e   :  { %v2292_v5 = vmax.f32 %v2200_v52, %v2202_v16 }
 0x510   :  { %v2294_v15 = vmax.f32 %v2292_v5, 0.0  ;;  %v5691_v5 = vld [vmem:[%s8070_s4 + $0x110] sm:$0xff] }
 0x511   :  { %3718 = vmatpush.bf16.msrb.mxu3 %v5702_v4 }
 0x512   :  { %v5802_v41 = vpack.c.bf16 %v2294_v15, %v2293_v55  ;;  %v5699_v55 = vld [vmem:[%s8071_s5 + $0x110] sm:$0xff] }
 0x514   :  { %5834 = vst [vmem:[#allocation2 + $0x40] sm:$0xff] %v5802_v41   ;;  %v7613_v7 = vpop.f32.mrf.mxu3  ;;  %v7623_v50 = vpop.f32.mrf.mxu2 }
 0x515   :  { %3719 = vmatpush.bf16.msrb.mxu3 %v5701_v12  ;;  %v5697_v12 = vld [vmem:[%s8071_s5 + $0x100] sm:$0xff] }
 0x519   :  { %3720 = vmatpush.bf16.msrb.mxu3 %v5700_v33 }
 0x51c   :  { %2712 = vmatmul.bf16.gmra.mxu2 %v7343_v28  ;;  %2809 = vmatmul.bf16.gmra.mxu3 %v7343_v28  ;;  %v7625_v6 = vpop.f32.mrf.mxu3  ;;  %v5696_v28 = vld [vmem:[%s8070_s4 + $0x138] sm:$0xff] }
 0x51d   :  { %3602 = vmatpush.bf16.msrb.mxu2 %v5696_v28  ;;  %3721 = vmatpush.bf16.msrb.mxu3 %v5699_v55  ;;  %v5637_v28 = vld [vmem:[#allocation2 + $0x8] sm:$0xff] }
 0x51f   :  { %v7635_v20 = vpop.f32.mrf.mxu2 }
 0x524   :  { %v7637_v23 = vpop.f32.mrf.mxu3 }
 0x527   :  { %v7639_v11 = vpop.f32.mrf.mxu2 }
 0x52c   :  { %2717 = vmatmul.bf16.gmra.mxu2 %v7413_v40  ;;  %2814 = vmatmul.bf16.gmra.mxu3 %v7413_v40  ;;  %v7641_v30 = vpop.f32.mrf.mxu3  ;;  %v5695_v40 = vld [vmem:[%s8070_s4 + $0x130] sm:$0xff] }
 0x52d   :  { %3603 = vmatpush.bf16.msrb.mxu2 %v5695_v40  ;;  %v5698_v40 = vld [vmem:[%s8071_s5 + $0x108] sm:$0xff] }
 0x52e   :  { %3722 = vmatpush.bf16.msrb.mxu3 %v5698_v40 }
 0x532   :  { %3723 = vmatpush.bf16.msrb.mxu3 %v5697_v12 }
 0x53c   :  { %2722 = vmatmul.bf16.gmra.mxu2 %v7450_v46  ;;  %2819 = vmatmul.bf16.gmra.mxu3 %v7450_v46  ;;  %v5694_v46 = vld [vmem:[%s8070_s4 + $0x128] sm:$0xff] }
 0x53d   :  { %3604 = vmatpush.bf16.msrb.mxu2 %v5694_v46 }
 0x53f   :  { %v7651_v14 = vpop.f32.mrf.mxu2  ;;  %v7653_v38 = vpop.f32.mrf.mxu3 }
 0x540   :  { %8350 = vst [vmem:[#allocation7_spill] sm:$0xff] %v7653_v38 }
 0x541   :  { %3605 = vmatpush.bf16.msrb.mxu2 %v5693_v56  ;;  %v5689_v56 = vld [vmem:[%s8070_s4 + $0x100] sm:$0xff] }
 0x545   :  { %3606 = vmatpush.bf16.msrb.mxu2 %v5692_v31 }
 0x547   :  { %v7655_v44 = vpop.f32.mrf.mxu2  ;;  %v7657_v51 = vpop.f32.mrf.mxu3 }
 0x548   :  { %8351 = vst [vmem:[#allocation8_spill] sm:$0xff] %v7655_v44 }
 0x549   :  { %8352 = vst [vmem:[#allocation9_spill] sm:$0xff] %v7657_v51  ;;  %3607 = vmatpush.bf16.msrb.mxu2 %v5691_v5  ;;  %v5639_v5 = vld [vmem:[#allocation2 + $0x28] sm:$0xff] }
 0x54c   :  { %2962 = vmatmul.bf16.vlgmr.msra.gmra.mxu2 %v5633_v45  ;;  %3076 = vmatmul.bf16.vlgmr.msra.gmra.mxu3 %v5633_v45 }
 0x54d   :  { %3608 = vmatpush.bf16.msrb.mxu2 %v5690_v60 }
 0x54f   :  { %v7665_v58 = vpop.f32.mrf.mxu2  ;;  %v7667_v10 = vpop.f32.mrf.mxu3 }
 0x550   :  { %v2786_v47 = vadd.f32 %v7667_v10, %v7496_v18 }
 0x551   :  { %3609 = vmatpush.bf16.msrb.mxu2 %v5689_v56 }
 0x557   :  { %v7669_v19 = vpop.f32.mrf.mxu2  ;;  %v7671_v27 = vpop.f32.mrf.mxu3 }
 0x55c   :  { %2967 = vmatmul.bf16.gmra.mxu2 %v5634_v26  ;;  %3081 = vmatmul.bf16.gmra.mxu3 %v5634_v26  ;;  %v5638_v26 = vld [vmem:[#allocation2 + $0x38] sm:$0xff] }
 0x55f   :  { %v7679_v59 = vpop.f32.mrf.mxu2  ;;  %v7681_v17 = vpop.f32.mrf.mxu3 }
 0x560   :  { %v2694_v18 = vadd.f32 %v7679_v59, %v7512_v62  ;;  %v5683_v59 = vld [vmem:[#allocation2 + $0x8] sm:$0xff] }
 0x567   :  { %v7683_v1 = vpop.f32.mrf.mxu2  ;;  %v7685_v29 = vpop.f32.mrf.mxu3 }
 0x568   :  { %v2696_v10 = vadd.f32 %v7683_v1, %v7526_v34 }
 0x56c   :  { %2972 = vmatmul.bf16.gmra.mxu2 %v5635_v9  ;;  %3086 = vmatmul.bf16.gmra.mxu3 %v5635_v9 }
 0x56f   :  { %v7693_v48 = vpop.f32.mrf.mxu2  ;;  %v7695_v52 = vpop.f32.mrf.mxu3 }
 0x577   :  { %v7697_v16 = vpop.f32.mrf.mxu2  ;;  %v7699_v2 = vpop.f32.mrf.mxu3 }
 0x57c   :  { %2977 = vmatmul.bf16.gmra.mxu2 %v5636_v39  ;;  %3091 = vmatmul.bf16.gmra.mxu3 %v5636_v39 }
 0x57f   :  { %v7707_v15 = vpop.f32.mrf.mxu2  ;;  %v7709_v41 = vpop.f32.mrf.mxu3 }
 0x587   :  { %v7711_v32 = vpop.f32.mrf.mxu2  ;;  %v7713_v0 = vpop.f32.mrf.mxu3 }
 0x58c   :  { %2982 = vmatmul.bf16.gmra.mxu2 %v5637_v28  ;;  %3096 = vmatmul.bf16.gmra.mxu3 %v5637_v28 }
 0x58f   :  { %v7721_v61 = vpop.f32.mrf.mxu2  ;;  %v7723_v45 = vpop.f32.mrf.mxu3 }
 0x597   :  { %v7725_v46 = vpop.f32.mrf.mxu2  ;;  %v7727_v4 = vpop.f32.mrf.mxu3 }
 0x598   :  { %8353 = vst [vmem:[#allocation10_spill] sm:$0xff] %v7725_v46  ;;  %v2689_v46 = vadd.f32 %v7665_v58, %v7494_v42  ;;  %v5682_v58 = vld [vmem:[#allocation2 + $0x20] sm:$0xff] }
 0x599   :  { %8354 = vst [vmem:[#allocation16_spill] sm:$0xff] %v7727_v4 }
 0x59c   :  { %2987 = vmatmul.bf16.gmra.mxu2 %v5638_v26  ;;  %3101 = vmatmul.bf16.gmra.mxu3 %v5638_v26  ;;  %v5640_v26 = vld [vmem:[#allocation2 + $0x48] sm:$0xff] }
 0x59f   :  { %v7735_v9 = vpop.f32.mrf.mxu2  ;;  %v7737_v31 = vpop.f32.mrf.mxu3 }
 0x5a7   :  { %v7739_v33 = vpop.f32.mrf.mxu2  ;;  %v7741_v39 = vpop.f32.mrf.mxu3 }
 0x5ac   :  { %2992 = vmatmul.bf16.gmra.mxu2 %v5639_v5  ;;  %3106 = vmatmul.bf16.gmra.mxu3 %v5639_v5  ;;  %v5681_v5 = vld [vmem:[#allocation2 + $0x50] sm:$0xff] }
 0x5af   :  { %v7743_v55 = vpop.f32.mrf.mxu2  ;;  %v7745_v28 = vpop.f32.mrf.mxu3 }
 0x5b7   :  { %v7747_v60 = vpop.f32.mrf.mxu2  ;;  %v7749_v40 = vpop.f32.mrf.mxu3 }
 0x5bc   :  { %2997 = vmatmul.bf16.gmra.mxu2 %v5640_v26  ;;  %3111 = vmatmul.bf16.gmra.mxu3 %v5640_v26 }
 0x5bf   :  { %v7751_v56 = vpop.f32.mrf.mxu2  ;;  %v7753_v12 = vpop.f32.mrf.mxu3 }
 0x5c0   :  { %8355 = vst [vmem:[#allocation12_spill] sm:$0xff] %v7751_v56 }
 0x5c1   :  { %8356 = vst [vmem:[#allocation13_spill] sm:$0xff] %v7753_v12 }
 0x5c7   :  { %v7755_v4 = vpop.f32.mrf.mxu2  ;;  %v7757_v13 = vpop.f32.mrf.mxu3 }
 0x5c8   :  { %8357 = vst [vmem:[#allocation14_spill] sm:$0xff] %v7755_v4  ;;  %v2691_v4 = vadd.f32 %v7669_v19, %v7504_v43 }
 0x5c9   :  { %8358 = vst [vmem:[#allocation15_spill] sm:$0xff] %v7757_v13  ;;  %v2788_v13 = vadd.f32 %v7671_v27, %v7506_v24 }
 0x5cc   :  { %3610 = vmatmul.bf16.vlgmr.msrb.gmra.mxu2 %v5681_v5  ;;  %3724 = vmatmul.bf16.vlgmr.msrb.gmra.mxu3 %v5681_v5 }
 0x5cf   :  { %v2963_v51 = vpop.f32.mrf.mxu2  ;;  %v3077_v44 = vpop.f32.mrf.mxu3 }
 0x5d0   :  { %v7763_v26 = vadd.f32 %v2963_v51, %v2689_v46  ;;  %v7765_v38 = vadd.f32 %v3077_v44, %v2786_v47  ;;  %v2791_v47 = vadd.f32 %v7681_v17, %v7514_v49  ;;  %v2699_v49 = vadd.f32 %v7693_v48, %v7544_v57  ;;  %v5684_v48 = vld [vmem:[#allocation2 + $0x38] sm:$0xff] }
 0x5d1   :  { %v2796_v17 = vadd.f32 %v7695_v52, %v7548_v36  ;;  %v2704_v36 = vadd.f32 %v7707_v15, %v7570_v8  ;;  %v2801_v52 = vadd.f32 %v7709_v41, %v7572_v37  ;;  %v5685_v15 = vld [vmem:[#allocation2 + $0x28] sm:$0xff]  ;;  %v2709_v37 = vadd.f32 %v7721_v61, %v7595_v25 }
 0x5d2   :  { %v2806_v41 = vadd.f32 %v7723_v45, %v7597_v54  ;;  %v2811_v25 = vadd.f32 %v7737_v31, %v7613_v7  ;;  %v3287_v7 = vpop.f32.mrf.mxu0  ;;  %v3401_v31 = vpop.f32.mrf.mxu1 }
 0x5d7   :  { %v2965_v12 = vpop.f32.mrf.mxu2  ;;  %v3079_v5 = vpop.f32.mrf.mxu3 }
 0x5d8   :  { %v7771_v56 = vadd.f32 %v2965_v12, %v2691_v4  ;;  %v7773_v42 = vadd.f32 %v3079_v5, %v2788_v13  ;;  %v2793_v13 = vadd.f32 %v7685_v29, %v7536_v63  ;;  %v2701_v29 = vadd.f32 %v7697_v16, %v7555_v22 }
 0x5d9   :  { %v2798_v12 = vadd.f32 %v7699_v2, %v7557_v35  ;;  %v2706_v2 = vadd.f32 %v7711_v32, %v7584_v21 }
 0x5dc   :  { %3615 = vmatmul.bf16.gmra.mxu2 %v5682_v58  ;;  %3729 = vmatmul.bf16.gmra.mxu3 %v5682_v58 }
 0x5df   :  { %v2968_v44 = vpop.f32.mrf.mxu2  ;;  %v3082_v43 = vpop.f32.mrf.mxu3 }
 0x5e0   :  { %v7779_v51 = vadd.f32 %v2968_v44, %v2694_v18  ;;  %v7781_v24 = vadd.f32 %v3082_v43, %v2791_v47  ;;  %v2803_v44 = vadd.f32 %v7713_v0, %v7586_v3 }
 0x5e7   :  { %v2970_v19 = vpop.f32.mrf.mxu2  ;;  %v3084_v27 = vpop.f32.mrf.mxu3 }
 0x5e8   :  { %v7787_v46 = vadd.f32 %v2970_v19, %v2696_v10  ;;  %v7789_v62 = vadd.f32 %v3084_v27, %v2793_v13 }
 0x5ec   :  { %3620 = vmatmul.bf16.gmra.mxu2 %v5683_v59  ;;  %3734 = vmatmul.bf16.gmra.mxu3 %v5683_v59  ;;  %v5686_v59 = vld [vmem:[#allocation2 + $0x48] sm:$0xff] }
 0x5ef   :  { %v2973_v4 = vpop.f32.mrf.mxu2  ;;  %v3087_v34 = vpop.f32.mrf.mxu3 }
 0x5f0   :  { %v7795_v1 = vadd.f32 %v2973_v4, %v2699_v49  ;;  %v7797_v63 = vadd.f32 %v3087_v34, %v2796_v17  ;;  %v2714_v49 = vadd.f32 %v7735_v9, %v7611_v53  ;;  %v2716_v4 = vadd.f32 %v7739_v33, %v7623_v50  ;;  %v5687_v9 = vld [vmem:[#allocation2 + $0x10] sm:$0xff] }
 0x5f1   :  { %v2813_v34 = vadd.f32 %v7741_v39, %v7625_v6  ;;  %v2816_v50 = vadd.f32 %v7745_v28, %v7637_v23  ;;  %v5688_v23 = vld [vmem:[#allocation2 + $0x40] sm:$0xff]  ;;  %v5731_v28 = vld [vmem:[%s8073_s7 + $0xb8] sm:$0xff] }
 0x5f2   :  { %4111 = vmatpush.bf16.msra.mxu2 %v5731_v28  ;;  %v3457_v28 = vadd.f32 %v3401_v31, %v7765_v38  ;;  %v5721_v38 = vld [vmem:[%s8073_s7 + $0x70] sm:$0xff] }
 0x5f7   :  { %v2975_v5 = vpop.f32.mrf.mxu2  ;;  %v3089_v58 = vpop.f32.mrf.mxu3 }
 0x5f8   :  { %v7803_v18 = vadd.f32 %v2975_v5, %v2701_v29  ;;  %v7805_v57 = vadd.f32 %v3089_v58, %v2798_v12  ;;  %v2719_v58 = vadd.f32 %v7743_v55, %v7635_v20 }
 0x5fc   :  { %3625 = vmatmul.bf16.gmra.mxu2 %v5684_v48  ;;  %3739 = vmatmul.bf16.gmra.mxu3 %v5684_v48 }
 0x5ff   :  { %v2978_v47 = vpop.f32.mrf.mxu2  ;;  %v3092_v22 = vpop.f32.mrf.mxu3 }
 0x600   :  { %v7811_v16 = vadd.f32 %v2978_v47, %v2704_v36  ;;  %v7813_v35 = vadd.f32 %v3092_v22, %v2801_v52  ;;  %v2721_v36 = vadd.f32 %v7747_v60, %v7639_v11  ;;  %v2818_v52 = vadd.f32 %v7749_v40, %v7641_v30  ;;  %v5740_v11 = vld [vmem:[%s8073_s7 + $0xf8] sm:$0xff] }
 0x601   :  { %v5713_v30 = vld [vmem:[%s8073_s7 + $0x38] sm:$0xff]  ;;  %4200 = vmatpush.bf16.msra.mxu3 %v5740_v11 }
 0x602   :  { %v8359_v60 = vld [vmem:[#allocation12_spill] sm:$0xff]  ;;  %4024 = vmatpush.bf16.msra.mxu1 %v5713_v30 }
 0x603   :  { %v2724_v40 = vadd.f32 %v8359_v60, %v7651_v14  ;;  %v5711_v14 = vld [vmem:[%s8073_s7 + $0x28] sm:$0xff] }
 0x607   :  { %v2980_v43 = vpop.f32.mrf.mxu2  ;;  %v3094_v10 = vpop.f32.mrf.mxu3 }
 0x608   :  { %v7819_v13 = vadd.f32 %v2980_v43, %v2706_v2  ;;  %v7821_v8 = vadd.f32 %v3094_v10, %v2803_v44  ;;  %v3289_v2 = vpop.f32.mrf.mxu0  ;;  %v3403_v44 = vpop.f32.mrf.mxu1  ;;  %v8360_v43 = vld [vmem:[#allocation7_spill] sm:$0xff]  ;;  %v8361_v10 = vld [vmem:[#allocation13_spill] sm:$0xff] }
 0x60c   :  { %3630 = vmatmul.bf16.gmra.mxu2 %v5685_v15  ;;  %3744 = vmatmul.bf16.gmra.mxu3 %v5685_v15  ;;  %v2821_v15 = vadd.f32 %v8361_v10, %v8360_v43  ;;  %v5708_v43 = vld [vmem:[%s8073_s7 + $0x10] sm:$0xff] }
 0x60f   :  { %v2983_v19 = vpop.f32.mrf.mxu2  ;;  %v3097_v21 = vpop.f32.mrf.mxu3 }
 0x610   :  { %v7827_v32 = vadd.f32 %v2983_v19, %v2709_v37  ;;  %v7829_v3 = vadd.f32 %v3097_v21, %v2806_v41 }
 0x617   :  { %v7831_v0 = vpop.f32.mrf.mxu2  ;;  %v7833_v27 = vpop.f32.mrf.mxu3 }
 0x61c   :  { %3635 = vmatmul.bf16.gmra.mxu2 %v5686_v59  ;;  %3749 = vmatmul.bf16.gmra.mxu3 %v5686_v59  ;;  %v5712_v59 = vld [vmem:[%s8073_s7 + $0x30] sm:$0xff] }
 0x61d   :  { %4025 = vmatpush.bf16.msra.mxu1 %v5712_v59  ;;  %v3458_v59 = vadd.f32 %v3403_v44, %v7773_v42  ;;  %v5738_v42 = vld [vmem:[%s8073_s7 + $0xe8] sm:$0xff] }
 0x61f   :  { %v2988_v54 = vpop.f32.mrf.mxu2  ;;  %v3102_v61 = vpop.f32.mrf.mxu3 }
 0x620   :  { %v7839_v45 = vadd.f32 %v2988_v54, %v2714_v49  ;;  %v7841_v17 = vadd.f32 %v3102_v61, %v2811_v25  ;;  %v3292_v49 = vpop.f32.mrf.mxu0  ;;  %v3406_v25 = vpop.f32.mrf.mxu1  ;;  %v8362_v54 = vld [vmem:[#allocation8_spill] sm:$0xff]  ;;  %v8363_v61 = vld [vmem:[#allocation14_spill] sm:$0xff] }
 0x621   :  { %4026 = vmatpush.bf16.msra.mxu1 %v5711_v14  ;;  %v3459_v44 = vadd.f32 %v3406_v25, %v7781_v24  ;;  %v5720_v24 = vld [vmem:[%s8073_s7 + $0x68] sm:$0xff] }
 0x627   :  { %v2990_v29 = vpop.f32.mrf.mxu2  ;;  %v3104_v12 = vpop.f32.mrf.mxu3 }
 0x628   :  { %v7847_v5 = vadd.f32 %v2990_v29, %v2716_v4  ;;  %v7849_v53 = vadd.f32 %v3104_v12, %v2813_v34  ;;  %v2726_v4 = vadd.f32 %v8363_v61, %v8362_v54  ;;  %v8364_v34 = vld [vmem:[#allocation9_spill] sm:$0xff]  ;;  %v8365_v29 = vld [vmem:[#allocation15_spill] sm:$0xff] }
 0x629   :  { %v2823_v12 = vadd.f32 %v8365_v29, %v8364_v34  ;;  %v5706_v34 = vld [vmem:[%s8073_s7] sm:$0xff] }
 0x62c   :  { %3640 = vmatmul.bf16.gmra.mxu2 %v5687_v9  ;;  %3754 = vmatmul.bf16.gmra.mxu3 %v5687_v9 }
 0x62f   :  { %v2993_v33 = vpop.f32.mrf.mxu2  ;;  %v3107_v48 = vpop.f32.mrf.mxu3 }
 0x630   :  { %v7855_v6 = vadd.f32 %v2993_v33, %v2719_v58  ;;  %v7857_v39 = vadd.f32 %v3107_v48, %v2816_v50  ;;  %v5722_v48 = vld [vmem:[%s8073_s7 + $0x78] sm:$0xff] }
 0x631   :  { %3956 = vmatpush.bf16.msra.mxu0 %v5722_v48 }
 0x635   :  { %3957 = vmatpush.bf16.msra.mxu0 %v5721_v38 }
 0x637   :  { %v2995_v47 = vpop.f32.mrf.mxu2  ;;  %v3109_v22 = vpop.f32.mrf.mxu3 }
 0x638   :  { %v7863_v20 = vadd.f32 %v2995_v47, %v2721_v36  ;;  %v7865_v55 = vadd.f32 %v3109_v22, %v2818_v52  ;;  %v5710_v36 = vld [vmem:[%s8073_s7 + $0x20] sm:$0xff]  ;;  %v3294_v52 = vpop.f32.mrf.mxu0  ;;  %v3408_v47 = vpop.f32.mrf.mxu1  ;;  %v5709_v22 = vld [vmem:[%s8073_s7 + $0x18] sm:$0xff] }
 0x639   :  { %4027 = vmatpush.bf16.msra.mxu1 %v5710_v36  ;;  %v7940_v36 = vld [vmem:[%s8072_s6] ss:$0 sm:$0xff]  ;;  %v3444_v25 = vadd.f32 %v3294_v52, %v7787_v46  ;;  %3958 = vmatpush.bf16.msra.mxu0 %v5720_v24  ;;  %v5718_v46 = vld [vmem:[%s8073_s7 + $0x58] sm:$0xff] }
 0x63c   :  { %3645 = vmatmul.bf16.gmra.mxu2 %v5688_v23  ;;  %3759 = vmatmul.bf16.gmra.mxu3 %v5688_v23  ;;  %v3441_v23 = vadd.f32 %v3287_v7, %v7763_v26  ;;  %v5739_v26 = vld [vmem:[%s8073_s7 + $0xf0] sm:$0xff]  ;;  %v5707_v7 = vld [vmem:[%s8073_s7 + $0x8] sm:$0xff] }
 0x63d   :  { %4028 = vmatpush.bf16.msra.mxu1 %v5709_v22  ;;  %4201 = vmatpush.bf16.msra.mxu3 %v5739_v26 }
 0x63f   :  { %v2998_v37 = vpop.f32.mrf.mxu2  ;;  %v3112_v41 = vpop.f32.mrf.mxu3 }
 0x640   :  { %v7880_v19 = vadd.f32 %v2998_v37, %v2724_v40  ;;  %v7882_v21 = vadd.f32 %v3112_v41, %v2821_v15  ;;  %v5730_v15 = vld [vmem:[%s8073_s7 + $0xb0] sm:$0xff]  ;;  %v3297_v31 = vpop.f32.mrf.mxu0  ;;  %v3411_v37 = vpop.f32.mrf.mxu1  ;;  %v3442_v41 = vadd.f32 %v3289_v2, %v7771_v56  ;;  %v5729_v56 = vld [vmem:[%s8073_s7 + $0xa8] sm:$0xff]  ;;  %v3443_v2 = vadd.f32 %v3292_v49, %v7779_v51 }
 0x641   :  { %4029 = vmatpush.bf16.msra.mxu1 %v5708_v43  ;;  %4112 = vmatpush.bf16.msra.mxu2 %v5730_v15  ;;  %v3445_v52 = vadd.f32 %v3297_v31, %v7795_v1  ;;  %v5728_v1 = vld [vmem:[%s8073_s7 + $0xa0] sm:$0xff]  ;;  %v5716_v31 = vld [vmem:[%s8073_s7 + $0x48] sm:$0xff] }
 0x642   :  { %4202 = vmatpush.bf16.msra.mxu3 %v5738_v42 }
 0x645   :  { %4030 = vmatpush.bf16.msra.mxu1 %v5707_v7  ;;  %4113 = vmatpush.bf16.msra.mxu2 %v5729_v56 }
 0x647   :  { %v3000_v9 = vpop.f32.mrf.mxu2  ;;  %v3114_v58 = vpop.f32.mrf.mxu3 }
 0x648   :  { %v7894_v50 = vadd.f32 %v3000_v9, %v2726_v4  ;;  %v7896_v33 = vadd.f32 %v3114_v58, %v2823_v12  ;;  %v3299_v58 = vpop.f32.mrf.mxu0  ;;  %v3413_v48 = vpop.f32.mrf.mxu1 }
 0x649   :  { %4031 = vmatpush.bf16.msra.mxu1 %v5706_v34  ;;  %4114 = vmatpush.bf16.msra.mxu2 %v5728_v1 }
 0x64f   :  { %v3611_v11 = vpop.f32.mrf.mxu2  ;;  %v3725_v30 = vpop.f32.mrf.mxu3 }
 0x650   :  { %v3765_v60 = vadd.f32 %v3611_v11, %v3441_v23  ;;  %v3781_v40 = vadd.f32 %v3725_v30, %v3457_v28  ;;  %v3460_v30 = vadd.f32 %v3408_v47, %v7789_v62  ;;  %v3302_v26 = vpop.f32.mrf.mxu0  ;;  %v3416_v38 = vpop.f32.mrf.mxu1  ;;  %v3461_v47 = vadd.f32 %v3411_v37, %v7797_v63  ;;  %v5737_v63 = vld [vmem:[%s8073_s7 + $0xe0] sm:$0xff] }
 0x651   :  { %v3446_v37 = vadd.f32 %v3299_v58, %v7803_v18  ;;  %4203 = vmatpush.bf16.msra.mxu3 %v5737_v63  ;;  %v5727_v18 = vld [vmem:[%s8073_s7 + $0x98] sm:$0xff] }
 0x652   :  { %v3797_v10 = vmax.f32 %v3765_v60, %v3781_v40  ;;  %4115 = vmatpush.bf16.msra.mxu2 %v5727_v18 }
 0x654   :  { %v3817_v11 = vadd.f32 %v7940_v36, %v3797_v10  ;;  %v5719_v10 = vld [vmem:[%s8073_s7 + $0x60] sm:$0xff] }
 0x655   :  { %3959 = vmatpush.bf16.msra.mxu0 %v5719_v10 }
 0x657   :  { %v3613_v14 = vpop.f32.mrf.mxu2  ;;  %v3727_v54 = vpop.f32.mrf.mxu3 }
 0x658   :  { %v3766_v61 = vadd.f32 %v3613_v14, %v3442_v41  ;;  %v3782_v4 = vadd.f32 %v3727_v54, %v3458_v59 }
 0x659   :  { %3960 = vmatpush.bf16.msra.mxu0 %v5718_v46 }
 0x65a   :  { %v3798_v29 = vmax.f32 %v3766_v61, %v3782_v4 }
 0x65c   :  { %v3818_v41 = vadd.f32 %v7940_v36, %v3798_v29  ;;  %v5717_v29 = vld [vmem:[%s8073_s7 + $0x50] sm:$0xff] }
 0x65d   :  { %3961 = vmatpush.bf16.msra.mxu0 %v5717_v29  ;;  %v8366_v29 = vld [vmem:[#allocation66_spill] sm:$0xff] }
 0x65f   :  { %v3616_v12 = vpop.f32.mrf.mxu2  ;;  %v3730_v9 = vpop.f32.mrf.mxu3 }
 0x660   :  { %v3767_v22 = vadd.f32 %v3616_v12, %v3443_v2  ;;  %v3783_v23 = vadd.f32 %v3730_v9, %v3459_v44  ;;  %v3304_v44 = vpop.f32.mrf.mxu0  ;;  %v3418_v12 = vpop.f32.mrf.mxu1  ;;  %v3462_v9 = vadd.f32 %v3413_v48, %v7805_v57  ;;  %v5736_v57 = vld [vmem:[%s8073_s7 + $0xd8] sm:$0xff] }
 0x661   :  { %3962 = vmatpush.bf16.msra.mxu0 %v5716_v31  ;;  %4204 = vmatpush.bf16.msra.mxu3 %v5736_v57  ;;  %v3448_v46 = vadd.f32 %v3304_v44, %v7819_v13  ;;  %v8367_v13 = vld [vmem:[#allocation10_spill] sm:$0xff] }
 0x662   :  { %v3799_v28 = vmax.f32 %v3767_v22, %v3783_v23 }
 0x664   :  { %v3819_v51 = vadd.f32 %v7940_v36, %v3799_v28 }
 0x666   :  { %v3833_v49 = vmax.f32 %v3817_v11, %v3819_v51  ;;  %v5715_v51 = vld [vmem:[%s8073_s7 + $0x40] sm:$0xff] }
 0x667   :  { %v3618_v60 = vpop.f32.mrf.mxu2  ;;  %v3732_v40 = vpop.f32.mrf.mxu3  ;;  %3963 = vmatpush.bf16.msra.mxu0 %v5715_v51 }
 0x668   :  { %v3768_v43 = vadd.f32 %v3618_v60, %v3444_v25  ;;  %v3784_v15 = vadd.f32 %v3732_v40, %v3460_v30  ;;  %v3835_v61 = vmax.f32 %v3833_v49, 0.0  ;;  %v3307_v58 = vpop.f32.mrf.mxu0  ;;  %v3421_v48 = vpop.f32.mrf.mxu1  ;;  %v3447_v25 = vadd.f32 %v3302_v26, %v7811_v16 }
 0x669   :  { %v3463_v30 = vadd.f32 %v3416_v38, %v7813_v35 }
 0x66a   :  { %v3800_v7 = vmax.f32 %v3768_v43, %v3784_v15 }
 0x66c   :  { %v3820_v59 = vadd.f32 %v7940_v36, %v3800_v7 }
 0x66e   :  { %v3834_v62 = vmax.f32 %v3818_v41, %v3820_v59 }
 0x66f   :  { %v3621_v14 = vpop.f32.mrf.mxu2  ;;  %v3735_v54 = vpop.f32.mrf.mxu3 }
 0x670   :  { %v3836_v4 = vmax.f32 %v3834_v62, 0.0  ;;  %v3769_v34 = vadd.f32 %v3621_v14, %v3445_v52  ;;  %v3785_v56 = vadd.f32 %v3735_v54, %v3461_v47  ;;  %v3464_v62 = vadd.f32 %v3418_v12, %v7821_v8  ;;  %v3309_v26 = vpop.f32.mrf.mxu0  ;;  %v3423_v35 = vpop.f32.mrf.mxu1  ;;  %v8368_v8 = vld [vmem:[#allocation11_spill] sm:$0xff] }
 0x672   :  { %v5807_v42 = vpack.c.bf16 %v3836_v4, %v3835_v61  ;;  %v3801_v2 = vmax.f32 %v3769_v34, %v3785_v56  ;;  %v3449_v34 = vadd.f32 %v3307_v58, %v7827_v32  ;;  %v3465_v56 = vadd.f32 %v3421_v48, %v7829_v3 }
 0x674   :  { %5808 = vst [vmem:[#allocation3 + $0x8] sm:$0xff] %v5807_v42   ;;  %v3821_v7 = vadd.f32 %v7940_v36, %v3801_v2  ;;  %v2711_v42 = vadd.f32 %v8367_v13, %v8366_v29  ;;  %v8369_v2 = vld [vmem:[#allocation16_spill] sm:$0xff] }
 0x675   :  { %v2808_v44 = vadd.f32 %v8369_v2, %v8368_v8 }
 0x676   :  { %v3126_v3 = vadd.f32 %v7831_v0, %v2711_v42 }
 0x677   :  { %v3623_v22 = vpop.f32.mrf.mxu2  ;;  %v3737_v23 = vpop.f32.mrf.mxu3 }
 0x678   :  { %v3770_v28 = vadd.f32 %v3623_v22, %v3446_v37  ;;  %v3786_v11 = vadd.f32 %v3737_v23, %v3462_v9  ;;  %v5726_v22 = vld [vmem:[%s8073_s7 + $0x90] sm:$0xff]  ;;  %v3312_v23 = vpop.f32.mrf.mxu0  ;;  %v3426_v32 = vpop.f32.mrf.mxu1  ;;  %v3450_v18 = vadd.f32 %v3309_v26, %v3126_v3 }
 0x679   :  { %4116 = vmatpush.bf16.msra.mxu2 %v5726_v22  ;;  %v5733_v22 = vld [vmem:[%s8073_s7 + $0xc0] sm:$0xff] }
 0x67a   :  { %v3802_v24 = vmax.f32 %v3770_v28, %v3786_v11  ;;  %v3142_v28 = vadd.f32 %v7833_v27, %v2808_v44 }
 0x67b   :  { %v5705_v49 = vld [vmem:[#allocation3 + $0x8] sm:$0xff] }
 0x67c   :  { %4032 = vmatmul.bf16.vlgmr.msra.gmra.mxu1 %v5705_v49  ;;  %v3822_v54 = vadd.f32 %v7940_v36, %v3802_v24  ;;  %v5735_v24 = vld [vmem:[%s8073_s7 + $0xd0] sm:$0xff]  ;;  %v5725_v49 = vld [vmem:[%s8073_s7 + $0x88] sm:$0xff]  ;;  %v3466_v57 = vadd.f32 %v3423_v35, %v3142_v28 }
 0x67d   :  { %4205 = vmatpush.bf16.msra.mxu3 %v5735_v24  ;;  %4117 = vmatpush.bf16.msra.mxu2 %v5725_v49 }
 0x67f   :  { %v3626_v60 = vpop.f32.mrf.mxu2  ;;  %v3740_v40 = vpop.f32.mrf.mxu3 }
 0x680   :  { %v3771_v43 = vadd.f32 %v3626_v60, %v3447_v25  ;;  %v3787_v15 = vadd.f32 %v3740_v40, %v3463_v30  ;;  %v5724_v25 = vld [vmem:[%s8073_s7 + $0x80] sm:$0xff]  ;;  %v3314_v40 = vpop.f32.mrf.mxu0 }
 0x681   :  { %4118 = vmatpush.bf16.msra.mxu2 %v5724_v25 }
 0x682   :  { %v3803_v10 = vmax.f32 %v3771_v43, %v3787_v15  ;;  %v3428_v43 = vpop.f32.mrf.mxu1  ;;  %v5734_v15 = vld [vmem:[%s8073_s7 + $0xc8] sm:$0xff] }
 0x683   :  { %4206 = vmatpush.bf16.msra.mxu3 %v5734_v15 }
 0x684   :  { %v3823_v41 = vadd.f32 %v7940_v36, %v3803_v10  ;;  %v3451_v10 = vadd.f32 %v3312_v23, %v7839_v45 }
 0x686   :  { %v3841_v59 = vmax.f32 %v3821_v7, %v3823_v41  ;;  %v3467_v7 = vadd.f32 %v3426_v32, %v7841_v17 }
 0x687   :  { %v3628_v52 = vpop.f32.mrf.mxu2  ;;  %v3742_v16 = vpop.f32.mrf.mxu3  ;;  %4207 = vmatpush.bf16.msra.mxu3 %v5733_v22  ;;  %v5844_v22 = vld [vmem:[%s8076_s10] ss:$0 sm:$0xff] }
 0x688   :  { %v3772_v38 = vadd.f32 %v3628_v52, %v3448_v46  ;;  %v3788_v47 = vadd.f32 %v3742_v16, %v3464_v62  ;;  %v3843_v63 = vmax.f32 %v3841_v59, 0.0  ;;  %v3317_v35 = vpop.f32.mrf.mxu0 }
 0x689   :  { %v3453_v42 = vadd.f32 %v3317_v35, %v7855_v6 }
 0x68a   :  { %v3804_v14 = vmax.f32 %v3772_v38, %v3788_v47  ;;  %v3431_v38 = vpop.f32.mrf.mxu1 }
 0x68b   :  { %v3469_v8 = vadd.f32 %v3431_v38, %v7857_v39 }
 0x68c   :  { %v3824_v61 = vadd.f32 %v7940_v36, %v3804_v14  ;;  %v3452_v14 = vadd.f32 %v3314_v40, %v7847_v5 }
 0x68e   :  { %v3842_v4 = vmax.f32 %v3822_v54, %v3824_v61  ;;  %v3468_v54 = vadd.f32 %v3428_v43, %v7849_v53 }
 0x68f   :  { %v3631_v12 = vpop.f32.mrf.mxu2  ;;  %v3745_v1 = vpop.f32.mrf.mxu3 }
 0x690   :  { %v3844_v31 = vmax.f32 %v3842_v4, 0.0  ;;  %v3773_v37 = vadd.f32 %v3631_v12, %v3449_v34  ;;  %v3789_v9 = vadd.f32 %v3745_v1, %v3465_v56 }
 0x692   :  { %v5812_v11 = vpack.c.bf16 %v3844_v31, %v3843_v63  ;;  %v3805_v51 = vmax.f32 %v3773_v37, %v3789_v9  ;;  %v3319_v63 = vpop.f32.mrf.mxu0  ;;  %v3433_v31 = vpop.f32.mrf.mxu1 }
 0x693   :  { %v3454_v23 = vadd.f32 %v3319_v63, %v7863_v20  ;;  %v3470_v6 = vadd.f32 %v3433_v31, %v7865_v55 }
 0x694   :  { %5835 = vst [vmem:[#allocation3] sm:$0xff] %v5812_v11   ;;  %v3825_v16 = vadd.f32 %v7940_v36, %v3805_v51 }
 0x697   :  { %v3633_v58 = vpop.f32.mrf.mxu2  ;;  %v3747_v48 = vpop.f32.mrf.mxu3 }
 0x698   :  { %v3774_v0 = vadd.f32 %v3633_v58, %v3450_v18  ;;  %v3790_v27 = vadd.f32 %v3747_v48, %v3466_v57 }
 0x69a   :  { %v3806_v30 = vmax.f32 %v3774_v0, %v3790_v27  ;;  %v3322_v51 = vpop.f32.mrf.mxu0  ;;  %v3436_v24 = vpop.f32.mrf.mxu1 }
 0x69b   :  { %v5714_v60 = vld [vmem:[#allocation3] sm:$0xff]  ;;  %v3455_v18 = vadd.f32 %v3322_v51, %v7880_v19  ;;  %v3471_v57 = vadd.f32 %v3436_v24, %v7882_v21 }
 0x69c   :  { %3964 = vmatmul.bf16.vlgmr.msra.gmra.mxu0 %v5714_v60  ;;  %v3826_v56 = vadd.f32 %v7940_v36, %v3806_v30 }
 0x69f   :  { %v3636_v41 = vpop.f32.mrf.mxu2  ;;  %v3750_v59 = vpop.f32.mrf.mxu3 }
 0x6a0   :  { %v3775_v46 = vadd.f32 %v3636_v41, %v3451_v10  ;;  %v3791_v62 = vadd.f32 %v3750_v59, %v3467_v7 }
 0x6a2   :  { %v3807_v52 = vmax.f32 %v3775_v46, %v3791_v62  ;;  %v3324_v30 = vpop.f32.mrf.mxu0  ;;  %v3438_v60 = vpop.f32.mrf.mxu1 }
 0x6a3   :  { %v3456_v43 = vadd.f32 %v3324_v30, %v7894_v50  ;;  %v3472_v15 = vadd.f32 %v3438_v60, %v7896_v33  ;;  %v4231_v50 = vld [vmem:[%s8075_s9 + $0x18] sm:$0x1] }
 0x6a4   :  { %v3827_v26 = vadd.f32 %v7940_v36, %v3807_v52  ;;  %v4249_v33 = vunpack.c.l.b16 %v4231_v50 }
 0x6a6   :  { %v3849_v47 = vmax.f32 %v3825_v16, %v3827_v26  ;;  %v4253_v38 = vpack.c.b16 %v4249_v33, %v4249_v33 }
 0x6a7   :  { %v3638_v45 = vpop.f32.mrf.mxu2  ;;  %v3752_v61 = vpop.f32.mrf.mxu3 }
 0x6a8   :  { %v3776_v17 = vadd.f32 %v3638_v45, %v3452_v14  ;;  %v3792_v4 = vadd.f32 %v3752_v61, %v3468_v54  ;;  %v3851_v12 = vmax.f32 %v3849_v47, 0.0  ;;  %v4263_v47 = vsel %vm4261_vm2, %v4253_v38, 0  ;;  %v5742_v14 = vld [vmem:[%s8075_s9 + $0x8] sm:$0xff]  ;;  %v5741_v54 = vld [vmem:[%s8075_s9] sm:$0xff] }
 0x6a9   :  { %4269 = vmatpush.bf16.msrb.mxu0 %v4263_v47 }
 0x6aa   :  { %v3808_v34 = vmax.f32 %v3776_v17, %v3792_v4 }
 0x6ac   :  { %v3828_v29 = vadd.f32 %v7940_v36, %v3808_v34 }
 0x6ae   :  { %v3850_v13 = vmax.f32 %v3826_v56, %v3828_v29 }
 0x6af   :  { %v3641_v2 = vpop.f32.mrf.mxu2  ;;  %v3755_v44 = vpop.f32.mrf.mxu3 }
 0x6b0   :  { %v3852_v5 = vmax.f32 %v3850_v13, 0.0  ;;  %v3777_v1 = vadd.f32 %v3641_v2, %v3453_v42  ;;  %v3793_v53 = vadd.f32 %v3755_v44, %v3469_v8  ;;  %v5843_v44 = vld [vmem:[%s8074_s8] ss:$0 sm:$0xff] }
 0x6b2   :  { %v5817_v37 = vpack.c.bf16 %v3852_v5, %v3851_v12  ;;  %v3809_v9 = vmax.f32 %v3777_v1, %v3793_v53 }
 0x6b4   :  { %5836 = vst [vmem:[#allocation3 + $0x10] sm:$0xff] %v5817_v37   ;;  %v3829_v55 = vadd.f32 %v7940_v36, %v3809_v9 }
 0x6b7   :  { %v3643_v39 = vpop.f32.mrf.mxu2  ;;  %v3757_v32 = vpop.f32.mrf.mxu3 }
 0x6b8   :  { %v3778_v3 = vadd.f32 %v3643_v39, %v3454_v23  ;;  %v3794_v28 = vadd.f32 %v3757_v32, %v3470_v6 }
 0x6ba   :  { %v3810_v11 = vmax.f32 %v3778_v3, %v3794_v28 }
 0x6bb   :  { %v5723_v49 = vld [vmem:[#allocation3 + $0x10] sm:$0xff] }
 0x6bc   :  { %4119 = vmatmul.bf16.vlgmr.msra.gmra.mxu2 %v5723_v49  ;;  %v3830_v59 = vadd.f32 %v7940_v36, %v3810_v11 }
 0x6bf   :  { %v3646_v58 = vpop.f32.mrf.mxu2  ;;  %v3760_v48 = vpop.f32.mrf.mxu3 }
 0x6c0   :  { %v3779_v0 = vadd.f32 %v3646_v58, %v3455_v18  ;;  %v3795_v20 = vadd.f32 %v3760_v48, %v3471_v57 }
 0x6c2   :  { %v3811_v27 = vmax.f32 %v3779_v0, %v3795_v20 }
 0x6c4   :  { %v3831_v25 = vadd.f32 %v7940_v36, %v3811_v27 }
 0x6c6   :  { %v3857_v40 = vmax.f32 %v3829_v55, %v3831_v25 }
 0x6c7   :  { %v3648_v10 = vpop.f32.mrf.mxu2  ;;  %v3762_v19 = vpop.f32.mrf.mxu3 }
 0x6c8   :  { %v3780_v7 = vadd.f32 %v3648_v10, %v3456_v43  ;;  %v3796_v21 = vadd.f32 %v3762_v19, %v3472_v15  ;;  %v3859_v52 = vmax.f32 %v3857_v40, 0.0 }
 0x6ca   :  { %v3812_v41 = vmax.f32 %v3780_v7, %v3796_v21 }
 0x6cc   :  { %v3832_v46 = vadd.f32 %v7940_v36, %v3812_v41  ;;  %v5743_v36 = vld [vmem:[%s8075_s9 + $0x10] sm:$0xff] }
 0x6cd   :  { %4270 = vmatpush.bf16.msrb.mxu0 %v5743_v36 }
 0x6ce   :  { %v3858_v62 = vmax.f32 %v3830_v59, %v3832_v46 }
 0x6d0   :  { %v3860_v16 = vmax.f32 %v3858_v62, 0.0 }
 0x6d1   :  { %4271 = vmatpush.bf16.msrb.mxu0 %v5742_v14 }
 0x6d2   :  { %v5822_v26 = vpack.c.bf16 %v3860_v16, %v3859_v52 }
 0x6d4   :  { %5837 = vst [vmem:[#allocation3 + $0x18] sm:$0xff] %v5822_v26  }
 0x6d5   :  { %4272 = vmatpush.bf16.msrb.mxu0 %v5741_v54 }
 0x6db   :  { %v5732_v35 = vld [vmem:[#allocation3 + $0x18] sm:$0xff] }
 0x6dc   :  { %4208 = vmatmul.bf16.vlgmr.msra.gmra.mxu3 %v5732_v35 }
 0x6f9   :  { %v4033_v61 = vpop.f32.mrf.mxu1 }
 0x701   :  { %v4035_v13 = vpop.f32.mrf.mxu1 }
 0x719   :  { %v3965_v45 = vpop.f32.mrf.mxu0 }
 0x71a   :  { %v4034_v34 = vadd.f32 %v4033_v61, %v3965_v45 }
 0x721   :  { %v3967_v56 = vpop.f32.mrf.mxu0 }
 0x722   :  { %v4036_v8 = vadd.f32 %v4035_v13, %v3967_v56 }
 0x73f   :  { %v4120_v17 = vpop.f32.mrf.mxu2 }
 0x740   :  { %v4125_v29 = vadd.f32 %v4120_v17, %v4034_v34 }
 0x747   :  { %v4122_v42 = vpop.f32.mrf.mxu2 }
 0x748   :  { %v4126_v12 = vadd.f32 %v4122_v42, %v4036_v8 }
 0x75f   :  { %v4209_v4 = vpop.f32.mrf.mxu3 }
 0x760   :  { %v4214_v2 = vadd.f32 %v4209_v4, %v4125_v29 }
 0x762   :  { %v4220_v1 = vadd.f32 %v5843_v44, %v4214_v2 }
 0x764   :  { %v4222_v31 = vmax.f32 %v4220_v1, 0.0 }
 0x767   :  { %v4211_v5 = vpop.f32.mrf.mxu3 }
 0x768   :  { %v4215_v53 = vadd.f32 %v4211_v5, %v4126_v12 }
 0x76a   :  { %v4221_v63 = vadd.f32 %v5843_v44, %v4215_v53 }
 0x76c   :  { %v4223_v37 = vmax.f32 %v4221_v63, 0.0 }
 0x76e   :  { %v4224_v9 = vpack.c.bf16 %v4223_v37, %v4222_v31 }
 0x770   :  { %5543 = vmatmul.msk.bf16.vlgmr.msrb.gmra.mxu0 %vm4257_vm3, %v4224_v9 }
 0x7ed   :  { %v4274_v23 = vpop.f32.mrf.mxu0 }
 0x7ee   :  { %v4275_v6 = vadd.f32 %v5844_v22, %v4274_v23 }
 0x7f0   :  { %v4280_v39 = vsel %vm4279_vm4, %v4275_v6, -inf }
 0x7f1   :  { %4281 = vmax.xlane.f32.xlu0 %v4280_v39 }
 0x7f5   :  { %v4276_v32 = vpop.f32.mrf.mxu0 }
 0x7f6   :  { %v4277_v3 = vadd.f32 %v5844_v22, %v4276_v32 }
 0x7f8   :  { %v4283_v28 = vsel %vm4279_vm4, %v4277_v3, -inf }
 0x7f9   :  { %4284 = vmax.xlane.f32.xlu0 %v4283_v28 }
 0x864   :  { %v4282_v11 = vpop.xlane.xlu0 %4281 }
 0x865   :  { %v4286_v51 = vsub.f32 %v4275_v6, %v4282_v11 }
 0x867   :  { %v4288_v24 = vmul.f32 1.442695, %v4286_v51 }
 0x869   :  { %5845 = vpow2.f32 %v4288_v24 }
 0x86c   :  { %v4285_v49 = vpop.xlane.xlu0 %4284 }
 0x86d   :  { %v4287_v18 = vsub.f32 %v4277_v3, %v4285_v49 }
 0x86f   :  { %v5846_v57 = vpop.eup %5845  ;;  %v4290_v58 = vmul.f32 1.442695, %v4287_v18 }
 0x870   :  { %v4292_v48 = vsel %vm4279_vm4, %v5846_v57, 0.0 }
 0x871   :  { %5847 = vpow2.f32 %v4290_v58  ;;  %4293 = vadd.xlane.f32.xlu1 %v4292_v48 }
 0x877   :  { %v5848_v0 = vpop.eup %5847 }
 0x878   :  { %v4295_v20 = vsel %vm4279_vm4, %v5848_v0, 0.0 }
 0x879   :  { %4296 = vadd.xlane.f32.xlu1 %v4295_v20 }
 0x8e4   :  { %v4294_v27 = vpop.xlane.xlu1 %4293 }
 0x8e5   :  { %5849 = vlog2.f32 %v4294_v27 }
 0x8eb   :  { %v5850_v55 = vpop.eup %5849 }
 0x8ec   :  { %v4299_v25 = vmul.f32 0.6931472, %v5850_v55  ;;  %v4297_v30 = vpop.xlane.xlu1 %4296 }
 0x8ed   :  { %5851 = vlog2.f32 %v4297_v30 }
 0x8ee   :  { %v4302_v60 = vsub.f32 %v4286_v51, %v4299_v25 }
 0x8f0   :  { %4304 = vst.msk [vmem:[%s8077_s11] sm:$0xff] %vm4279_vm4, %v4302_v60 }
 0x8f3   :  { %v5852_v40 = vpop.eup %5851 }
 0x8f4   :  { %v4301_v43 = vmul.f32 0.6931472, %v5852_v40 }
 0x8f6   :  { %v4303_v15 = vsub.f32 %v4287_v18, %v4301_v43 }
 0x8f8   :  { %4305 = vst.msk [vmem:[%s8077_s11 + $0x8] sm:$0xff] %vm4279_vm4, %v4303_v15 }
 0x8f9   :  { %4310 = vsyncpa [#allocation5], 1 }

</bundles_post_ra>
